<compile_context>
chip_gen: v5e
topology: v5e:2x2
jax: 0.10.0
libtpu: 0.0.40
codegen_flags: <defaults>
</compile_context>

<pallas_src>
import math

import jax
import jax.numpy as jnp
from jax.experimental import pallas as pl
from jax.experimental.pallas import tpu as pltpu

# ----------------------------- model config (small, lane-dense) --------------
N_VOCAB = 128
N_CTX = 8          # decoder sequence length
N_STATE = 128      # hidden dim (lane-dense: multiple of 128)
N_HEAD = 4
N_LAYER = 2
HEAD_DIM = N_STATE // N_HEAD     # 32
ENC_LEN = 16       # cross-attention (encoder) length
N_MLP = 4 * N_STATE
DTYPE = jnp.float32
LN_EPS = 1e-5
NEG_INF = -1e30


# ----------------------------- fused Pallas kernel ---------------------------
def _decoder_kernel(
    tok_ref, pos_ref, emb_ref,
    attn_ln_g_ref, attn_ln_b_ref,
    attn_qkv_w_ref, attn_qkv_b_ref,
    attn_dense_w_ref, attn_dense_b_ref,
    cross_ln_g_ref, cross_ln_b_ref,
    cross_q_w_ref, cross_q_b_ref,
    cross_dense_w_ref, cross_dense_b_ref,
    mlp_ln_g_ref, mlp_ln_b_ref,
    mlp1_w_ref, mlp1_b_ref, mlp2_w_ref, mlp2_b_ref,
    cross_k_ref, cross_v_ref,
    ln_g_ref, ln_b_ref,
    logits_ref,
):
    f32 = jnp.float32
    S, D = N_CTX, N_STATE
    scale = f32(1.0 / math.sqrt(HEAD_DIM))

    def layer_norm(x, g, b):
        mu = jnp.mean(x, axis=-1, keepdims=True)
        xc = x - mu
        var = jnp.mean(xc * xc, axis=-1, keepdims=True)
        return xc * jax.lax.rsqrt(var + LN_EPS) * g + b      # rsqrt -> EUP

    def gelu(x):
        # tanh approximation (matches tensorrt_llm.functional.gelu)
        return 0.5 * x * (1.0 + jnp.tanh(
            0.7978845608028654 * (x + 0.044715 * x * x * x)))

    def attention(q, k, v, bias):
        # q: [S, D], k/v: [T, D]; heads are contiguous lane slices of width
        # HEAD_DIM.  Fold the 1/sqrt(hd) scale into Q once (one [S, D] mul)
        # instead of scaling each per-head score matrix.
        q = q * scale
        outs = []
        for h in range(N_HEAD):
            lo = h * HEAD_DIM
            qh = q[:, lo:lo + HEAD_DIM]
            kh = k[:, lo:lo + HEAD_DIM]
            vh = v[:, lo:lo + HEAD_DIM]
            # q @ k^T as a transb contraction (no materialized transpose)
            s = jax.lax.dot_general(qh, kh, (((1,), (1,)), ((), ())),
                                    preferred_element_type=f32)
            if bias is not None:
                s = s + bias                                  # additive mask
            m = jnp.max(s, axis=-1, keepdims=True)
            p = jnp.exp(s - m)                                # EUP exp
            denom = jnp.sum(p, axis=-1, keepdims=True)
            p = p * pl.reciprocal(denom, approx=True)         # EUP reciprocal
            outs.append(jnp.dot(p, vh, preferred_element_type=f32))
        return jnp.concatenate(outs, axis=-1)                 # [S, D]

    # --- token embedding via one-hot matmul (keeps the gather on the MXU) ---
    emb_tab = emb_ref[...].astype(f32)                        # [V, D]
    tok = tok_ref[...]                                        # [S, 1] int32
    vocab_iota = jax.lax.broadcasted_iota(jnp.int32, (S, N_VOCAB), 1)
    onehot = (tok == vocab_iota).astype(f32)
    x = jnp.dot(onehot, emb_tab, preferred_element_type=f32) + \
        pos_ref[...].astype(f32)

    # --- causal mask as an additive bias, hoisted out of the layer loop ---
    qi = jax.lax.broadcasted_iota(jnp.int32, (S, S), 0)
    ki = jax.lax.broadcasted_iota(jnp.int32, (S, S), 1)
    causal_bias = jnp.where(ki <= qi, f32(0.0), f32(NEG_INF))  # built once

    for li in range(N_LAYER):
        # --- self attention (causal) ---
        residual1 = x
        h = layer_norm(x, attn_ln_g_ref[li:li + 1, :], attn_ln_b_ref[li:li + 1, :])
        qkv = jnp.dot(h, attn_qkv_w_ref[li], preferred_element_type=f32) \
            + attn_qkv_b_ref[li:li + 1, :]
        q = qkv[:, 0 * D:1 * D]
        k = qkv[:, 1 * D:2 * D]
        v = qkv[:, 2 * D:3 * D]
        attn = attention(q, k, v, causal_bias)
        attn = jnp.dot(attn, attn_dense_w_ref[li], preferred_element_type=f32) \
            + attn_dense_b_ref[li:li + 1, :]
        x = attn + residual1

        # --- cross attention (K/V from precomputed encoder cache) ---
        residual_c = x
        h = layer_norm(x, cross_ln_g_ref[li:li + 1, :], cross_ln_b_ref[li:li + 1, :])
        cq = jnp.dot(h, cross_q_w_ref[li], preferred_element_type=f32) \
            + cross_q_b_ref[li:li + 1, :]
        ck = cross_k_ref[li].astype(f32)                      # [ENC_LEN, D]
        cv = cross_v_ref[li].astype(f32)
        cattn = attention(cq, ck, cv, None)
        cattn = jnp.dot(cattn, cross_dense_w_ref[li], preferred_element_type=f32) \
            + cross_dense_b_ref[li:li + 1, :]
        x = residual_c + cattn

        # --- MLP ---
        residual2 = x
        h = layer_norm(x, mlp_ln_g_ref[li:li + 1, :], mlp_ln_b_ref[li:li + 1, :])
        h = gelu(jnp.dot(h, mlp1_w_ref[li], preferred_element_type=f32)
                 + mlp1_b_ref[li:li + 1, :])
        h = jnp.dot(h, mlp2_w_ref[li], preferred_element_type=f32) \
            + mlp2_b_ref[li:li + 1, :]
        x = h + residual2

    # --- final LN + logits = x @ token_embedding^T (transb contraction) ---
    x = layer_norm(x, ln_g_ref[...], ln_b_ref[...])
    logits = jax.lax.dot_general(x, emb_tab, (((1,), (1,)), ((), ())),
                                 preferred_element_type=f32)
    logits_ref[0] = logits.astype(logits_ref.dtype)           # [1, S, V] out


# ----------------------------- wrapper ---------------------------------------
@jax.jit
def whisper_decoder_forward(tokens, positional_embedding, params, cross_kv_caches):
    """tokens: [1, S] int32; positional_embedding: [S, D];
    cross_kv_caches: list of N_LAYER arrays [1, 2, n_head, enc_len, head_size]."""
    S = tokens.shape[1]
    tok2d = tokens.reshape(S, 1).astype(jnp.int32)

    # Fold the TRT-LLM-convention cross KV caches once into lane-dense
    # [L, enc_len, n_state] K / V slabs (heads contiguous on the lane axis).
    ckv = jnp.stack([c[0] for c in cross_kv_caches], axis=0)  # [L, 2, H, T, hd]
    ckv = ckv.transpose(0, 1, 3, 2, 4).reshape(N_LAYER, 2, ENC_LEN, N_STATE)
    cross_k = ckv[:, 0]
    cross_v = ckv[:, 1]

    p = params
    logits = pl.pallas_call(
        _decoder_kernel,
        out_shape=jax.ShapeDtypeStruct((1, S, N_VOCAB), DTYPE),
        compiler_params=pltpu.CompilerParams(vmem_limit_bytes=32 * 1024 * 1024),
    )(
        tok2d, positional_embedding, p["token_embedding"],
        p["attn_ln_g"], p["attn_ln_b"],
        p["attn_qkv_w"], p["attn_qkv_b"],
        p["attn_dense_w"], p["attn_dense_b"],
        p["cross_ln_g"], p["cross_ln_b"],
        p["cross_q_w"], p["cross_q_b"],
        p["cross_dense_w"], p["cross_dense_b"],
        p["mlp_ln_g"], p["mlp_ln_b"],
        p["mlp1_w"], p["mlp1_b"], p["mlp2_w"], p["mlp2_b"],
        cross_k, cross_v,
        p["ln_g"], p["ln_b"],
    )
    return logits                                             # [1, S, N_VOCAB]


# ----------------------------- deterministic init ----------------------------
def init_params(key):
    def w(k, shape, scale=0.02):
        return (scale * jax.random.normal(k, shape, dtype=jnp.float32)).astype(DTYPE)

    keys = jax.random.split(key, 9)
    L, D, V, M = N_LAYER, N_STATE, N_VOCAB, N_MLP
    # Per-layer weights are pre-stacked along a leading layer axis (one-time,
    # at init) so the fused kernel indexes them with static layer indices.
    return {
        "token_embedding": w(keys[0], (V, D)),
        "ln_g": jnp.ones((1, D), DTYPE),
        "ln_b": jnp.zeros((1, D), DTYPE),
        "attn_ln_g": jnp.ones((L, D), DTYPE),
        "attn_ln_b": jnp.zeros((L, D), DTYPE),
        "attn_qkv_w": w(keys[1], (L, D, 3 * D)),
        "attn_qkv_b": w(keys[2], (L, 3 * D)),
        "attn_dense_w": w(keys[3], (L, D, D)),
        "attn_dense_b": jnp.zeros((L, D), DTYPE),
        "cross_ln_g": jnp.ones((L, D), DTYPE),
        "cross_ln_b": jnp.zeros((L, D), DTYPE),
        "cross_q_w": w(keys[4], (L, D, D)),
        "cross_q_b": w(keys[5], (L, D)),
        "cross_dense_w": w(keys[6], (L, D, D)),
        "cross_dense_b": jnp.zeros((L, D), DTYPE),
        "mlp_ln_g": jnp.ones((L, D), DTYPE),
        "mlp_ln_b": jnp.zeros((L, D), DTYPE),
        "mlp1_w": w(keys[7], (L, D, M)),
        "mlp1_b": jnp.zeros((L, M), DTYPE),
        "mlp2_w": w(keys[8], (L, M, D)),
        "mlp2_b": jnp.zeros((L, D), DTYPE),
    }


# ----------------------------- main -------------------------------------------
if __name__ == "__main__":
    key = jax.random.PRNGKey(0)
    k_par, k_tok, k_pos, k_kv = jax.random.split(key, 4)

    params = init_params(k_par)

    tokens = jax.random.randint(k_tok, (1, N_CTX), 0, N_VOCAB, dtype=jnp.int32)
    positional_embedding = (0.02 * jax.random.normal(
        k_pos, (N_CTX, N_STATE), dtype=jnp.float32)).astype(DTYPE)

    # cross KV caches, one per layer: [1, 2, n_head, enc_len, head_size]
    kv_keys = jax.random.split(k_kv, N_LAYER)
    cross_kv_caches = [
        (0.1 * jax.random.normal(
            kv_keys[i], (1, 2, N_HEAD, ENC_LEN, HEAD_DIM), dtype=jnp.float32)
         ).astype(DTYPE)
        for i in range(N_LAYER)
    ]

    logits = whisper_decoder_forward(tokens, positional_embedding, params,
                                     cross_kv_caches)
    jax.block_until_ready(logits)
    assert logits.shape == (1, N_CTX, N_VOCAB)
    assert bool(jnp.all(jnp.isfinite(logits)))
    print("KERNEL_OK")
</pallas_src>

<mosaic_0001>
module attributes {stable_mosaic.version = 11 : i64} {
  func.func @_decoder_kernel(%arg0: memref<8x1xi32, #tpu.memory_space<vmem>>, %arg1: memref<8x128xf32, #tpu.memory_space<vmem>>, %arg2: memref<128x128xf32, #tpu.memory_space<vmem>>, %arg3: memref<2x128xf32, #tpu.memory_space<vmem>>, %arg4: memref<2x128xf32, #tpu.memory_space<vmem>>, %arg5: memref<2x128x384xf32, #tpu.memory_space<vmem>>, %arg6: memref<2x384xf32, #tpu.memory_space<vmem>>, %arg7: memref<2x128x128xf32, #tpu.memory_space<vmem>>, %arg8: memref<2x128xf32, #tpu.memory_space<vmem>>, %arg9: memref<2x128xf32, #tpu.memory_space<vmem>>, %arg10: memref<2x128xf32, #tpu.memory_space<vmem>>, %arg11: memref<2x128x128xf32, #tpu.memory_space<vmem>>, %arg12: memref<2x128xf32, #tpu.memory_space<vmem>>, %arg13: memref<2x128x128xf32, #tpu.memory_space<vmem>>, %arg14: memref<2x128xf32, #tpu.memory_space<vmem>>, %arg15: memref<2x128xf32, #tpu.memory_space<vmem>>, %arg16: memref<2x128xf32, #tpu.memory_space<vmem>>, %arg17: memref<2x128x512xf32, #tpu.memory_space<vmem>>, %arg18: memref<2x512xf32, #tpu.memory_space<vmem>>, %arg19: memref<2x512x128xf32, #tpu.memory_space<vmem>>, %arg20: memref<2x128xf32, #tpu.memory_space<vmem>>, %arg21: memref<2x16x128xf32, #tpu.memory_space<vmem>>, %arg22: memref<2x16x128xf32, #tpu.memory_space<vmem>>, %arg23: memref<1x128xf32, #tpu.memory_space<vmem>>, %arg24: memref<1x128xf32, #tpu.memory_space<vmem>>, %arg25: memref<1x8x128xf32, #tpu.memory_space<vmem>>) attributes {dimension_semantics = [], scalar_prefetch = 0 : i64, scratch_operands = 0 : i64, tpu.core_type = #tpu.core_type<tc>} {
    %c0 = arith.constant 0 : index
    %c0_0 = arith.constant 0 : index
    %0 = vector.load %arg2[%c0, %c0_0] : memref<128x128xf32, #tpu.memory_space<vmem>>, vector<128x128xf32>
    %c0_1 = arith.constant 0 : index
    %c0_2 = arith.constant 0 : index
    %1 = vector.load %arg0[%c0_1, %c0_2] : memref<8x1xi32, #tpu.memory_space<vmem>>, vector<8x1xi32>
    %2 = tpu.iota {dimensions = array<i32: 1>} : vector<8x128xi32>
    %3 = vector.broadcast %1 : vector<8x1xi32> to vector<8x128xi32>
    %4 = arith.cmpi eq, %3, %2 : vector<8x128xi32>
    %5 = arith.extui %4 : vector<8x128xi1> to vector<8x128xi32>
    %6 = arith.sitofp %5 : vector<8x128xi32> to vector<8x128xf32>
    %cst = arith.constant dense<0.000000e+00> : vector<8x128xf32>
    %7 = tpu.matmul %6, %0, %cst {dimension_numbers = #tpu.dot_dimension_numbers<[1], [0], [0], [1], [0, 0, 1, 1], [], []>} : vector<8x128xf32>, vector<128x128xf32>, vector<8x128xf32> -> vector<8x128xf32>
    %c0_3 = arith.constant 0 : index
    %c0_4 = arith.constant 0 : index
    %8 = vector.load %arg1[%c0_3, %c0_4] : memref<8x128xf32, #tpu.memory_space<vmem>>, vector<8x128xf32>
    %9 = arith.addf %7, %8 : vector<8x128xf32>
    %10 = tpu.iota {dimensions = array<i32: 0>} : vector<8x8xi32>
    %11 = tpu.iota {dimensions = array<i32: 1>} : vector<8x8xi32>
    %12 = arith.cmpi sle, %11, %10 : vector<8x8xi32>
    %cst_5 = arith.constant 0.000000e+00 : f32
    %cst_6 = arith.constant -1.000000e+30 : f32
    %13 = vector.broadcast %cst_5 : f32 to vector<8x8xf32>
    %14 = vector.broadcast %cst_6 : f32 to vector<8x8xf32>
    %15 = arith.select %12, %13, %14 : vector<8x8xi1>, vector<8x8xf32>
    %c0_7 = arith.constant 0 : index
    %c0_8 = arith.constant 0 : index
    %16 = vector.load %arg3[%c0_7, %c0_8] : memref<2x128xf32, #tpu.memory_space<vmem>>, vector<1x128xf32>
    %c0_9 = arith.constant 0 : index
    %c0_10 = arith.constant 0 : index
    %17 = vector.load %arg4[%c0_9, %c0_10] : memref<2x128xf32, #tpu.memory_space<vmem>>, vector<1x128xf32>
    %cst_11 = arith.constant dense<0.000000e+00> : vector<8xf32>
    %18 = vector.multi_reduction <add>, %9, %cst_11 [1] : vector<8x128xf32> to vector<8xf32>
    %19 = vector.shape_cast %18 : vector<8xf32> to vector<8x1xf32>
    %cst_12 = arith.constant 1.280000e+02 : f32
    %20 = vector.broadcast %cst_12 : f32 to vector<8x1xf32>
    %21 = arith.divf %19, %20 : vector<8x1xf32>
    %22 = vector.broadcast %21 : vector<8x1xf32> to vector<8x128xf32>
    %23 = arith.subf %9, %22 : vector<8x128xf32>
    %24 = arith.mulf %23, %23 : vector<8x128xf32>
    %cst_13 = arith.constant dense<0.000000e+00> : vector<8xf32>
    %25 = vector.multi_reduction <add>, %24, %cst_13 [1] : vector<8x128xf32> to vector<8xf32>
    %26 = vector.shape_cast %25 : vector<8xf32> to vector<8x1xf32>
    %cst_14 = arith.constant 1.280000e+02 : f32
    %27 = vector.broadcast %cst_14 : f32 to vector<8x1xf32>
    %28 = arith.divf %26, %27 : vector<8x1xf32>
    %cst_15 = arith.constant 9.99999974E-6 : f32
    %29 = vector.broadcast %cst_15 : f32 to vector<8x1xf32>
    %30 = arith.addf %28, %29 : vector<8x1xf32>
    %31 = math.rsqrt %30 : vector<8x1xf32>
    %32 = vector.broadcast %31 : vector<8x1xf32> to vector<8x128xf32>
    %33 = arith.mulf %23, %32 : vector<8x128xf32>
    %34 = vector.broadcast %16 : vector<1x128xf32> to vector<8x128xf32>
    %35 = arith.mulf %33, %34 : vector<8x128xf32>
    %36 = vector.broadcast %17 : vector<1x128xf32> to vector<8x128xf32>
    %37 = arith.addf %35, %36 : vector<8x128xf32>
    %c0_16 = arith.constant 0 : index
    %c0_17 = arith.constant 0 : index
    %c0_18 = arith.constant 0 : index
    %38 = vector.load %arg5[%c0_16, %c0_17, %c0_18] : memref<2x128x384xf32, #tpu.memory_space<vmem>>, vector<1x128x384xf32>
    %39 = vector.shape_cast %38 : vector<1x128x384xf32> to vector<128x384xf32>
    %cst_19 = arith.constant dense<0.000000e+00> : vector<8x384xf32>
    %40 = tpu.matmul %37, %39, %cst_19 {dimension_numbers = #tpu.dot_dimension_numbers<[1], [0], [0], [1], [0, 0, 1, 1], [], []>} : vector<8x128xf32>, vector<128x384xf32>, vector<8x384xf32> -> vector<8x384xf32>
    %c0_20 = arith.constant 0 : index
    %c0_21 = arith.constant 0 : index
    %41 = vector.load %arg6[%c0_20, %c0_21] : memref<2x384xf32, #tpu.memory_space<vmem>>, vector<1x384xf32>
    %42 = vector.broadcast %41 : vector<1x384xf32> to vector<8x384xf32>
    %43 = arith.addf %40, %42 : vector<8x384xf32>
    %44 = vector.extract_strided_slice %43 {offsets = [0, 0], sizes = [8, 128], strides = [1, 1]} : vector<8x384xf32> to vector<8x128xf32>
    %45 = vector.extract_strided_slice %43 {offsets = [0, 128], sizes = [8, 128], strides = [1, 1]} : vector<8x384xf32> to vector<8x128xf32>
    %46 = vector.extract_strided_slice %43 {offsets = [0, 256], sizes = [8, 128], strides = [1, 1]} : vector<8x384xf32> to vector<8x128xf32>
    %cst_22 = arith.constant 0.176776692 : f32
    %47 = vector.broadcast %cst_22 : f32 to vector<8x128xf32>
    %48 = arith.mulf %44, %47 : vector<8x128xf32>
    %49 = vector.extract_strided_slice %48 {offsets = [0, 0], sizes = [8, 32], strides = [1, 1]} : vector<8x128xf32> to vector<8x32xf32>
    %50 = vector.extract_strided_slice %45 {offsets = [0, 0], sizes = [8, 32], strides = [1, 1]} : vector<8x128xf32> to vector<8x32xf32>
    %51 = vector.extract_strided_slice %46 {offsets = [0, 0], sizes = [8, 32], strides = [1, 1]} : vector<8x128xf32> to vector<8x32xf32>
    %cst_23 = arith.constant dense<0.000000e+00> : vector<8x8xf32>
    %52 = tpu.matmul %49, %50, %cst_23 {dimension_numbers = #tpu.dot_dimension_numbers<[1], [1], [0], [0], [0, 0, 1, 0], [], []>} : vector<8x32xf32>, vector<8x32xf32>, vector<8x8xf32> -> vector<8x8xf32>
    %53 = arith.addf %52, %15 : vector<8x8xf32>
    %cst_24 = arith.constant dense<0xFF800000> : vector<8xf32>
    %54 = vector.multi_reduction <maximumf>, %53, %cst_24 [1] : vector<8x8xf32> to vector<8xf32>
    %55 = vector.shape_cast %54 : vector<8xf32> to vector<8x1xf32>
    %56 = vector.broadcast %55 : vector<8x1xf32> to vector<8x8xf32>
    %57 = arith.subf %53, %56 : vector<8x8xf32>
    %58 = math.exp %57 : vector<8x8xf32>
    %cst_25 = arith.constant dense<0.000000e+00> : vector<8xf32>
    %59 = vector.multi_reduction <add>, %58, %cst_25 [1] : vector<8x8xf32> to vector<8xf32>
    %60 = vector.shape_cast %59 : vector<8xf32> to vector<8x1xf32>
    %61 = tpu.reciprocal %60 {approx = true} : vector<8x1xf32> -> vector<8x1xf32>
    %62 = vector.broadcast %61 : vector<8x1xf32> to vector<8x8xf32>
    %63 = arith.mulf %58, %62 : vector<8x8xf32>
    %cst_26 = arith.constant dense<0.000000e+00> : vector<8x32xf32>
    %64 = tpu.matmul %63, %51, %cst_26 {dimension_numbers = #tpu.dot_dimension_numbers<[1], [0], [0], [1], [0, 0, 1, 1], [], []>} : vector<8x8xf32>, vector<8x32xf32>, vector<8x32xf32> -> vector<8x32xf32>
    %65 = vector.extract_strided_slice %48 {offsets = [0, 32], sizes = [8, 32], strides = [1, 1]} : vector<8x128xf32> to vector<8x32xf32>
    %66 = vector.extract_strided_slice %45 {offsets = [0, 32], sizes = [8, 32], strides = [1, 1]} : vector<8x128xf32> to vector<8x32xf32>
    %67 = vector.extract_strided_slice %46 {offsets = [0, 32], sizes = [8, 32], strides = [1, 1]} : vector<8x128xf32> to vector<8x32xf32>
    %cst_27 = arith.constant dense<0.000000e+00> : vector<8x8xf32>
    %68 = tpu.matmul %65, %66, %cst_27 {dimension_numbers = #tpu.dot_dimension_numbers<[1], [1], [0], [0], [0, 0, 1, 0], [], []>} : vector<8x32xf32>, vector<8x32xf32>, vector<8x8xf32> -> vector<8x8xf32>
    %69 = arith.addf %68, %15 : vector<8x8xf32>
    %cst_28 = arith.constant dense<0xFF800000> : vector<8xf32>
    %70 = vector.multi_reduction <maximumf>, %69, %cst_28 [1] : vector<8x8xf32> to vector<8xf32>
    %71 = vector.shape_cast %70 : vector<8xf32> to vector<8x1xf32>
    %72 = vector.broadcast %71 : vector<8x1xf32> to vector<8x8xf32>
    %73 = arith.subf %69, %72 : vector<8x8xf32>
    %74 = math.exp %73 : vector<8x8xf32>
    %cst_29 = arith.constant dense<0.000000e+00> : vector<8xf32>
    %75 = vector.multi_reduction <add>, %74, %cst_29 [1] : vector<8x8xf32> to vector<8xf32>
    %76 = vector.shape_cast %75 : vector<8xf32> to vector<8x1xf32>
    %77 = tpu.reciprocal %76 {approx = true} : vector<8x1xf32> -> vector<8x1xf32>
    %78 = vector.broadcast %77 : vector<8x1xf32> to vector<8x8xf32>
    %79 = arith.mulf %74, %78 : vector<8x8xf32>
    %cst_30 = arith.constant dense<0.000000e+00> : vector<8x32xf32>
    %80 = tpu.matmul %79, %67, %cst_30 {dimension_numbers = #tpu.dot_dimension_numbers<[1], [0], [0], [1], [0, 0, 1, 1], [], []>} : vector<8x8xf32>, vector<8x32xf32>, vector<8x32xf32> -> vector<8x32xf32>
    %81 = vector.extract_strided_slice %48 {offsets = [0, 64], sizes = [8, 32], strides = [1, 1]} : vector<8x128xf32> to vector<8x32xf32>
    %82 = vector.extract_strided_slice %45 {offsets = [0, 64], sizes = [8, 32], strides = [1, 1]} : vector<8x128xf32> to vector<8x32xf32>
    %83 = vector.extract_strided_slice %46 {offsets = [0, 64], sizes = [8, 32], strides = [1, 1]} : vector<8x128xf32> to vector<8x32xf32>
    %cst_31 = arith.constant dense<0.000000e+00> : vector<8x8xf32>
    %84 = tpu.matmul %81, %82, %cst_31 {dimension_numbers = #tpu.dot_dimension_numbers<[1], [1], [0], [0], [0, 0, 1, 0], [], []>} : vector<8x32xf32>, vector<8x32xf32>, vector<8x8xf32> -> vector<8x8xf32>
    %85 = arith.addf %84, %15 : vector<8x8xf32>
    %cst_32 = arith.constant dense<0xFF800000> : vector<8xf32>
    %86 = vector.multi_reduction <maximumf>, %85, %cst_32 [1] : vector<8x8xf32> to vector<8xf32>
    %87 = vector.shape_cast %86 : vector<8xf32> to vector<8x1xf32>
    %88 = vector.broadcast %87 : vector<8x1xf32> to vector<8x8xf32>
    %89 = arith.subf %85, %88 : vector<8x8xf32>
    %90 = math.exp %89 : vector<8x8xf32>
    %cst_33 = arith.constant dense<0.000000e+00> : vector<8xf32>
    %91 = vector.multi_reduction <add>, %90, %cst_33 [1] : vector<8x8xf32> to vector<8xf32>
    %92 = vector.shape_cast %91 : vector<8xf32> to vector<8x1xf32>
    %93 = tpu.reciprocal %92 {approx = true} : vector<8x1xf32> -> vector<8x1xf32>
    %94 = vector.broadcast %93 : vector<8x1xf32> to vector<8x8xf32>
    %95 = arith.mulf %90, %94 : vector<8x8xf32>
    %cst_34 = arith.constant dense<0.000000e+00> : vector<8x32xf32>
    %96 = tpu.matmul %95, %83, %cst_34 {dimension_numbers = #tpu.dot_dimension_numbers<[1], [0], [0], [1], [0, 0, 1, 1], [], []>} : vector<8x8xf32>, vector<8x32xf32>, vector<8x32xf32> -> vector<8x32xf32>
    %97 = vector.extract_strided_slice %48 {offsets = [0, 96], sizes = [8, 32], strides = [1, 1]} : vector<8x128xf32> to vector<8x32xf32>
    %98 = vector.extract_strided_slice %45 {offsets = [0, 96], sizes = [8, 32], strides = [1, 1]} : vector<8x128xf32> to vector<8x32xf32>
    %99 = vector.extract_strided_slice %46 {offsets = [0, 96], sizes = [8, 32], strides = [1, 1]} : vector<8x128xf32> to vector<8x32xf32>
    %cst_35 = arith.constant dense<0.000000e+00> : vector<8x8xf32>
    %100 = tpu.matmul %97, %98, %cst_35 {dimension_numbers = #tpu.dot_dimension_numbers<[1], [1], [0], [0], [0, 0, 1, 0], [], []>} : vector<8x32xf32>, vector<8x32xf32>, vector<8x8xf32> -> vector<8x8xf32>
    %101 = arith.addf %100, %15 : vector<8x8xf32>
    %cst_36 = arith.constant dense<0xFF800000> : vector<8xf32>
    %102 = vector.multi_reduction <maximumf>, %101, %cst_36 [1] : vector<8x8xf32> to vector<8xf32>
    %103 = vector.shape_cast %102 : vector<8xf32> to vector<8x1xf32>
    %104 = vector.broadcast %103 : vector<8x1xf32> to vector<8x8xf32>
    %105 = arith.subf %101, %104 : vector<8x8xf32>
    %106 = math.exp %105 : vector<8x8xf32>
    %cst_37 = arith.constant dense<0.000000e+00> : vector<8xf32>
    %107 = vector.multi_reduction <add>, %106, %cst_37 [1] : vector<8x8xf32> to vector<8xf32>
    %108 = vector.shape_cast %107 : vector<8xf32> to vector<8x1xf32>
    %109 = tpu.reciprocal %108 {approx = true} : vector<8x1xf32> -> vector<8x1xf32>
    %110 = vector.broadcast %109 : vector<8x1xf32> to vector<8x8xf32>
    %111 = arith.mulf %106, %110 : vector<8x8xf32>
    %cst_38 = arith.constant dense<0.000000e+00> : vector<8x32xf32>
    %112 = tpu.matmul %111, %99, %cst_38 {dimension_numbers = #tpu.dot_dimension_numbers<[1], [0], [0], [1], [0, 0, 1, 1], [], []>} : vector<8x8xf32>, vector<8x32xf32>, vector<8x32xf32> -> vector<8x32xf32>
    %113 = tpu.concatenate %64, %80, %96, %112 in 1 : vector<8x32xf32>, vector<8x32xf32>, vector<8x32xf32>, vector<8x32xf32> -> vector<8x128xf32>
    %c0_39 = arith.constant 0 : index
    %c0_40 = arith.constant 0 : index
    %c0_41 = arith.constant 0 : index
    %114 = vector.load %arg7[%c0_39, %c0_40, %c0_41] : memref<2x128x128xf32, #tpu.memory_space<vmem>>, vector<1x128x128xf32>
    %115 = vector.shape_cast %114 : vector<1x128x128xf32> to vector<128x128xf32>
    %cst_42 = arith.constant dense<0.000000e+00> : vector<8x128xf32>
    %116 = tpu.matmul %113, %115, %cst_42 {dimension_numbers = #tpu.dot_dimension_numbers<[1], [0], [0], [1], [0, 0, 1, 1], [], []>} : vector<8x128xf32>, vector<128x128xf32>, vector<8x128xf32> -> vector<8x128xf32>
    %c0_43 = arith.constant 0 : index
    %c0_44 = arith.constant 0 : index
    %117 = vector.load %arg8[%c0_43, %c0_44] : memref<2x128xf32, #tpu.memory_space<vmem>>, vector<1x128xf32>
    %118 = vector.broadcast %117 : vector<1x128xf32> to vector<8x128xf32>
    %119 = arith.addf %116, %118 : vector<8x128xf32>
    %120 = arith.addf %119, %9 : vector<8x128xf32>
    %c0_45 = arith.constant 0 : index
    %c0_46 = arith.constant 0 : index
    %121 = vector.load %arg9[%c0_45, %c0_46] : memref<2x128xf32, #tpu.memory_space<vmem>>, vector<1x128xf32>
    %c0_47 = arith.constant 0 : index
    %c0_48 = arith.constant 0 : index
    %122 = vector.load %arg10[%c0_47, %c0_48] : memref<2x128xf32, #tpu.memory_space<vmem>>, vector<1x128xf32>
    %cst_49 = arith.constant dense<0.000000e+00> : vector<8xf32>
    %123 = vector.multi_reduction <add>, %120, %cst_49 [1] : vector<8x128xf32> to vector<8xf32>
    %124 = vector.shape_cast %123 : vector<8xf32> to vector<8x1xf32>
    %cst_50 = arith.constant 1.280000e+02 : f32
    %125 = vector.broadcast %cst_50 : f32 to vector<8x1xf32>
    %126 = arith.divf %124, %125 : vector<8x1xf32>
    %127 = vector.broadcast %126 : vector<8x1xf32> to vector<8x128xf32>
    %128 = arith.subf %120, %127 : vector<8x128xf32>
    %129 = arith.mulf %128, %128 : vector<8x128xf32>
    %cst_51 = arith.constant dense<0.000000e+00> : vector<8xf32>
    %130 = vector.multi_reduction <add>, %129, %cst_51 [1] : vector<8x128xf32> to vector<8xf32>
    %131 = vector.shape_cast %130 : vector<8xf32> to vector<8x1xf32>
    %cst_52 = arith.constant 1.280000e+02 : f32
    %132 = vector.broadcast %cst_52 : f32 to vector<8x1xf32>
    %133 = arith.divf %131, %132 : vector<8x1xf32>
    %cst_53 = arith.constant 9.99999974E-6 : f32
    %134 = vector.broadcast %cst_53 : f32 to vector<8x1xf32>
    %135 = arith.addf %133, %134 : vector<8x1xf32>
    %136 = math.rsqrt %135 : vector<8x1xf32>
    %137 = vector.broadcast %136 : vector<8x1xf32> to vector<8x128xf32>
    %138 = arith.mulf %128, %137 : vector<8x128xf32>
    %139 = vector.broadcast %121 : vector<1x128xf32> to vector<8x128xf32>
    %140 = arith.mulf %138, %139 : vector<8x128xf32>
    %141 = vector.broadcast %122 : vector<1x128xf32> to vector<8x128xf32>
    %142 = arith.addf %140, %141 : vector<8x128xf32>
    %c0_54 = arith.constant 0 : index
    %c0_55 = arith.constant 0 : index
    %c0_56 = arith.constant 0 : index
    %143 = vector.load %arg11[%c0_54, %c0_55, %c0_56] : memref<2x128x128xf32, #tpu.memory_space<vmem>>, vector<1x128x128xf32>
    %144 = vector.shape_cast %143 : vector<1x128x128xf32> to vector<128x128xf32>
    %cst_57 = arith.constant dense<0.000000e+00> : vector<8x128xf32>
    %145 = tpu.matmul %142, %144, %cst_57 {dimension_numbers = #tpu.dot_dimension_numbers<[1], [0], [0], [1], [0, 0, 1, 1], [], []>} : vector<8x128xf32>, vector<128x128xf32>, vector<8x128xf32> -> vector<8x128xf32>
    %c0_58 = arith.constant 0 : index
    %c0_59 = arith.constant 0 : index
    %146 = vector.load %arg12[%c0_58, %c0_59] : memref<2x128xf32, #tpu.memory_space<vmem>>, vector<1x128xf32>
    %147 = vector.broadcast %146 : vector<1x128xf32> to vector<8x128xf32>
    %148 = arith.addf %145, %147 : vector<8x128xf32>
    %c0_60 = arith.constant 0 : index
    %c0_61 = arith.constant 0 : index
    %c0_62 = arith.constant 0 : index
    %149 = vector.load %arg21[%c0_60, %c0_61, %c0_62] : memref<2x16x128xf32, #tpu.memory_space<vmem>>, vector<1x16x128xf32>
    %150 = vector.shape_cast %149 : vector<1x16x128xf32> to vector<16x128xf32>
    %c0_63 = arith.constant 0 : index
    %c0_64 = arith.constant 0 : index
    %c0_65 = arith.constant 0 : index
    %151 = vector.load %arg22[%c0_63, %c0_64, %c0_65] : memref<2x16x128xf32, #tpu.memory_space<vmem>>, vector<1x16x128xf32>
    %152 = vector.shape_cast %151 : vector<1x16x128xf32> to vector<16x128xf32>
    %cst_66 = arith.constant 0.176776692 : f32
    %153 = vector.broadcast %cst_66 : f32 to vector<8x128xf32>
    %154 = arith.mulf %148, %153 : vector<8x128xf32>
    %155 = vector.extract_strided_slice %154 {offsets = [0, 0], sizes = [8, 32], strides = [1, 1]} : vector<8x128xf32> to vector<8x32xf32>
    %156 = vector.extract_strided_slice %150 {offsets = [0, 0], sizes = [16, 32], strides = [1, 1]} : vector<16x128xf32> to vector<16x32xf32>
    %157 = vector.extract_strided_slice %152 {offsets = [0, 0], sizes = [16, 32], strides = [1, 1]} : vector<16x128xf32> to vector<16x32xf32>
    %cst_67 = arith.constant dense<0.000000e+00> : vector<8x16xf32>
    %158 = tpu.matmul %155, %156, %cst_67 {dimension_numbers = #tpu.dot_dimension_numbers<[1], [1], [0], [0], [0, 0, 1, 0], [], []>} : vector<8x32xf32>, vector<16x32xf32>, vector<8x16xf32> -> vector<8x16xf32>
    %cst_68 = arith.constant dense<0xFF800000> : vector<8xf32>
    %159 = vector.multi_reduction <maximumf>, %158, %cst_68 [1] : vector<8x16xf32> to vector<8xf32>
    %160 = vector.shape_cast %159 : vector<8xf32> to vector<8x1xf32>
    %161 = vector.broadcast %160 : vector<8x1xf32> to vector<8x16xf32>
    %162 = arith.subf %158, %161 : vector<8x16xf32>
    %163 = math.exp %162 : vector<8x16xf32>
    %cst_69 = arith.constant dense<0.000000e+00> : vector<8xf32>
    %164 = vector.multi_reduction <add>, %163, %cst_69 [1] : vector<8x16xf32> to vector<8xf32>
    %165 = vector.shape_cast %164 : vector<8xf32> to vector<8x1xf32>
    %166 = tpu.reciprocal %165 {approx = true} : vector<8x1xf32> -> vector<8x1xf32>
    %167 = vector.broadcast %166 : vector<8x1xf32> to vector<8x16xf32>
    %168 = arith.mulf %163, %167 : vector<8x16xf32>
    %cst_70 = arith.constant dense<0.000000e+00> : vector<8x32xf32>
    %169 = tpu.matmul %168, %157, %cst_70 {dimension_numbers = #tpu.dot_dimension_numbers<[1], [0], [0], [1], [0, 0, 1, 1], [], []>} : vector<8x16xf32>, vector<16x32xf32>, vector<8x32xf32> -> vector<8x32xf32>
    %170 = vector.extract_strided_slice %154 {offsets = [0, 32], sizes = [8, 32], strides = [1, 1]} : vector<8x128xf32> to vector<8x32xf32>
    %171 = vector.extract_strided_slice %150 {offsets = [0, 32], sizes = [16, 32], strides = [1, 1]} : vector<16x128xf32> to vector<16x32xf32>
    %172 = vector.extract_strided_slice %152 {offsets = [0, 32], sizes = [16, 32], strides = [1, 1]} : vector<16x128xf32> to vector<16x32xf32>
    %cst_71 = arith.constant dense<0.000000e+00> : vector<8x16xf32>
    %173 = tpu.matmul %170, %171, %cst_71 {dimension_numbers = #tpu.dot_dimension_numbers<[1], [1], [0], [0], [0, 0, 1, 0], [], []>} : vector<8x32xf32>, vector<16x32xf32>, vector<8x16xf32> -> vector<8x16xf32>
    %cst_72 = arith.constant dense<0xFF800000> : vector<8xf32>
    %174 = vector.multi_reduction <maximumf>, %173, %cst_72 [1] : vector<8x16xf32> to vector<8xf32>
    %175 = vector.shape_cast %174 : vector<8xf32> to vector<8x1xf32>
    %176 = vector.broadcast %175 : vector<8x1xf32> to vector<8x16xf32>
    %177 = arith.subf %173, %176 : vector<8x16xf32>
    %178 = math.exp %177 : vector<8x16xf32>
    %cst_73 = arith.constant dense<0.000000e+00> : vector<8xf32>
    %179 = vector.multi_reduction <add>, %178, %cst_73 [1] : vector<8x16xf32> to vector<8xf32>
    %180 = vector.shape_cast %179 : vector<8xf32> to vector<8x1xf32>
    %181 = tpu.reciprocal %180 {approx = true} : vector<8x1xf32> -> vector<8x1xf32>
    %182 = vector.broadcast %181 : vector<8x1xf32> to vector<8x16xf32>
    %183 = arith.mulf %178, %182 : vector<8x16xf32>
    %cst_74 = arith.constant dense<0.000000e+00> : vector<8x32xf32>
    %184 = tpu.matmul %183, %172, %cst_74 {dimension_numbers = #tpu.dot_dimension_numbers<[1], [0], [0], [1], [0, 0, 1, 1], [], []>} : vector<8x16xf32>, vector<16x32xf32>, vector<8x32xf32> -> vector<8x32xf32>
    %185 = vector.extract_strided_slice %154 {offsets = [0, 64], sizes = [8, 32], strides = [1, 1]} : vector<8x128xf32> to vector<8x32xf32>
    %186 = vector.extract_strided_slice %150 {offsets = [0, 64], sizes = [16, 32], strides = [1, 1]} : vector<16x128xf32> to vector<16x32xf32>
    %187 = vector.extract_strided_slice %152 {offsets = [0, 64], sizes = [16, 32], strides = [1, 1]} : vector<16x128xf32> to vector<16x32xf32>
    %cst_75 = arith.constant dense<0.000000e+00> : vector<8x16xf32>
    %188 = tpu.matmul %185, %186, %cst_75 {dimension_numbers = #tpu.dot_dimension_numbers<[1], [1], [0], [0], [0, 0, 1, 0], [], []>} : vector<8x32xf32>, vector<16x32xf32>, vector<8x16xf32> -> vector<8x16xf32>
    %cst_76 = arith.constant dense<0xFF800000> : vector<8xf32>
    %189 = vector.multi_reduction <maximumf>, %188, %cst_76 [1] : vector<8x16xf32> to vector<8xf32>
    %190 = vector.shape_cast %189 : vector<8xf32> to vector<8x1xf32>
    %191 = vector.broadcast %190 : vector<8x1xf32> to vector<8x16xf32>
    %192 = arith.subf %188, %191 : vector<8x16xf32>
    %193 = math.exp %192 : vector<8x16xf32>
    %cst_77 = arith.constant dense<0.000000e+00> : vector<8xf32>
    %194 = vector.multi_reduction <add>, %193, %cst_77 [1] : vector<8x16xf32> to vector<8xf32>
    %195 = vector.shape_cast %194 : vector<8xf32> to vector<8x1xf32>
    %196 = tpu.reciprocal %195 {approx = true} : vector<8x1xf32> -> vector<8x1xf32>
    %197 = vector.broadcast %196 : vector<8x1xf32> to vector<8x16xf32>
    %198 = arith.mulf %193, %197 : vector<8x16xf32>
    %cst_78 = arith.constant dense<0.000000e+00> : vector<8x32xf32>
    %199 = tpu.matmul %198, %187, %cst_78 {dimension_numbers = #tpu.dot_dimension_numbers<[1], [0], [0], [1], [0, 0, 1, 1], [], []>} : vector<8x16xf32>, vector<16x32xf32>, vector<8x32xf32> -> vector<8x32xf32>
    %200 = vector.extract_strided_slice %154 {offsets = [0, 96], sizes = [8, 32], strides = [1, 1]} : vector<8x128xf32> to vector<8x32xf32>
    %201 = vector.extract_strided_slice %150 {offsets = [0, 96], sizes = [16, 32], strides = [1, 1]} : vector<16x128xf32> to vector<16x32xf32>
    %202 = vector.extract_strided_slice %152 {offsets = [0, 96], sizes = [16, 32], strides = [1, 1]} : vector<16x128xf32> to vector<16x32xf32>
    %cst_79 = arith.constant dense<0.000000e+00> : vector<8x16xf32>
    %203 = tpu.matmul %200, %201, %cst_79 {dimension_numbers = #tpu.dot_dimension_numbers<[1], [1], [0], [0], [0, 0, 1, 0], [], []>} : vector<8x32xf32>, vector<16x32xf32>, vector<8x16xf32> -> vector<8x16xf32>
    %cst_80 = arith.constant dense<0xFF800000> : vector<8xf32>
    %204 = vector.multi_reduction <maximumf>, %203, %cst_80 [1] : vector<8x16xf32> to vector<8xf32>
    %205 = vector.shape_cast %204 : vector<8xf32> to vector<8x1xf32>
    %206 = vector.broadcast %205 : vector<8x1xf32> to vector<8x16xf32>
    %207 = arith.subf %203, %206 : vector<8x16xf32>
    %208 = math.exp %207 : vector<8x16xf32>
    %cst_81 = arith.constant dense<0.000000e+00> : vector<8xf32>
    %209 = vector.multi_reduction <add>, %208, %cst_81 [1] : vector<8x16xf32> to vector<8xf32>
    %210 = vector.shape_cast %209 : vector<8xf32> to vector<8x1xf32>
    %211 = tpu.reciprocal %210 {approx = true} : vector<8x1xf32> -> vector<8x1xf32>
    %212 = vector.broadcast %211 : vector<8x1xf32> to vector<8x16xf32>
    %213 = arith.mulf %208, %212 : vector<8x16xf32>
    %cst_82 = arith.constant dense<0.000000e+00> : vector<8x32xf32>
    %214 = tpu.matmul %213, %202, %cst_82 {dimension_numbers = #tpu.dot_dimension_numbers<[1], [0], [0], [1], [0, 0, 1, 1], [], []>} : vector<8x16xf32>, vector<16x32xf32>, vector<8x32xf32> -> vector<8x32xf32>
    %215 = tpu.concatenate %169, %184, %199, %214 in 1 : vector<8x32xf32>, vector<8x32xf32>, vector<8x32xf32>, vector<8x32xf32> -> vector<8x128xf32>
    %c0_83 = arith.constant 0 : index
    %c0_84 = arith.constant 0 : index
    %c0_85 = arith.constant 0 : index
    %216 = vector.load %arg13[%c0_83, %c0_84, %c0_85] : memref<2x128x128xf32, #tpu.memory_space<vmem>>, vector<1x128x128xf32>
    %217 = vector.shape_cast %216 : vector<1x128x128xf32> to vector<128x128xf32>
    %cst_86 = arith.constant dense<0.000000e+00> : vector<8x128xf32>
    %218 = tpu.matmul %215, %217, %cst_86 {dimension_numbers = #tpu.dot_dimension_numbers<[1], [0], [0], [1], [0, 0, 1, 1], [], []>} : vector<8x128xf32>, vector<128x128xf32>, vector<8x128xf32> -> vector<8x128xf32>
    %c0_87 = arith.constant 0 : index
    %c0_88 = arith.constant 0 : index
    %219 = vector.load %arg14[%c0_87, %c0_88] : memref<2x128xf32, #tpu.memory_space<vmem>>, vector<1x128xf32>
    %220 = vector.broadcast %219 : vector<1x128xf32> to vector<8x128xf32>
    %221 = arith.addf %218, %220 : vector<8x128xf32>
    %222 = arith.addf %120, %221 : vector<8x128xf32>
    %c0_89 = arith.constant 0 : index
    %c0_90 = arith.constant 0 : index
    %223 = vector.load %arg15[%c0_89, %c0_90] : memref<2x128xf32, #tpu.memory_space<vmem>>, vector<1x128xf32>
    %c0_91 = arith.constant 0 : index
    %c0_92 = arith.constant 0 : index
    %224 = vector.load %arg16[%c0_91, %c0_92] : memref<2x128xf32, #tpu.memory_space<vmem>>, vector<1x128xf32>
    %cst_93 = arith.constant dense<0.000000e+00> : vector<8xf32>
    %225 = vector.multi_reduction <add>, %222, %cst_93 [1] : vector<8x128xf32> to vector<8xf32>
    %226 = vector.shape_cast %225 : vector<8xf32> to vector<8x1xf32>
    %cst_94 = arith.constant 1.280000e+02 : f32
    %227 = vector.broadcast %cst_94 : f32 to vector<8x1xf32>
    %228 = arith.divf %226, %227 : vector<8x1xf32>
    %229 = vector.broadcast %228 : vector<8x1xf32> to vector<8x128xf32>
    %230 = arith.subf %222, %229 : vector<8x128xf32>
    %231 = arith.mulf %230, %230 : vector<8x128xf32>
    %cst_95 = arith.constant dense<0.000000e+00> : vector<8xf32>
    %232 = vector.multi_reduction <add>, %231, %cst_95 [1] : vector<8x128xf32> to vector<8xf32>
    %233 = vector.shape_cast %232 : vector<8xf32> to vector<8x1xf32>
    %cst_96 = arith.constant 1.280000e+02 : f32
    %234 = vector.broadcast %cst_96 : f32 to vector<8x1xf32>
    %235 = arith.divf %233, %234 : vector<8x1xf32>
    %cst_97 = arith.constant 9.99999974E-6 : f32
    %236 = vector.broadcast %cst_97 : f32 to vector<8x1xf32>
    %237 = arith.addf %235, %236 : vector<8x1xf32>
    %238 = math.rsqrt %237 : vector<8x1xf32>
    %239 = vector.broadcast %238 : vector<8x1xf32> to vector<8x128xf32>
    %240 = arith.mulf %230, %239 : vector<8x128xf32>
    %241 = vector.broadcast %223 : vector<1x128xf32> to vector<8x128xf32>
    %242 = arith.mulf %240, %241 : vector<8x128xf32>
    %243 = vector.broadcast %224 : vector<1x128xf32> to vector<8x128xf32>
    %244 = arith.addf %242, %243 : vector<8x128xf32>
    %c0_98 = arith.constant 0 : index
    %c0_99 = arith.constant 0 : index
    %c0_100 = arith.constant 0 : index
    %245 = vector.load %arg17[%c0_98, %c0_99, %c0_100] : memref<2x128x512xf32, #tpu.memory_space<vmem>>, vector<1x128x512xf32>
    %246 = vector.shape_cast %245 : vector<1x128x512xf32> to vector<128x512xf32>
    %cst_101 = arith.constant dense<0.000000e+00> : vector<8x512xf32>
    %247 = tpu.matmul %244, %246, %cst_101 {dimension_numbers = #tpu.dot_dimension_numbers<[1], [0], [0], [1], [0, 0, 1, 1], [], []>} : vector<8x128xf32>, vector<128x512xf32>, vector<8x512xf32> -> vector<8x512xf32>
    %c0_102 = arith.constant 0 : index
    %c0_103 = arith.constant 0 : index
    %248 = vector.load %arg18[%c0_102, %c0_103] : memref<2x512xf32, #tpu.memory_space<vmem>>, vector<1x512xf32>
    %249 = vector.broadcast %248 : vector<1x512xf32> to vector<8x512xf32>
    %250 = arith.addf %247, %249 : vector<8x512xf32>
    %cst_104 = arith.constant 5.000000e-01 : f32
    %251 = vector.broadcast %cst_104 : f32 to vector<8x512xf32>
    %252 = arith.mulf %251, %250 : vector<8x512xf32>
    %cst_105 = arith.constant 4.471500e-02 : f32
    %253 = vector.broadcast %cst_105 : f32 to vector<8x512xf32>
    %254 = arith.mulf %253, %250 : vector<8x512xf32>
    %255 = arith.mulf %254, %250 : vector<8x512xf32>
    %256 = arith.mulf %255, %250 : vector<8x512xf32>
    %257 = arith.addf %250, %256 : vector<8x512xf32>
    %cst_106 = arith.constant 0.797884583 : f32
    %258 = vector.broadcast %cst_106 : f32 to vector<8x512xf32>
    %259 = arith.mulf %258, %257 : vector<8x512xf32>
    %260 = math.tanh %259 : vector<8x512xf32>
    %cst_107 = arith.constant 1.000000e+00 : f32
    %261 = vector.broadcast %cst_107 : f32 to vector<8x512xf32>
    %262 = arith.addf %261, %260 : vector<8x512xf32>
    %263 = arith.mulf %252, %262 : vector<8x512xf32>
    %c0_108 = arith.constant 0 : index
    %c0_109 = arith.constant 0 : index
    %c0_110 = arith.constant 0 : index
    %264 = vector.load %arg19[%c0_108, %c0_109, %c0_110] : memref<2x512x128xf32, #tpu.memory_space<vmem>>, vector<1x512x128xf32>
    %265 = vector.shape_cast %264 : vector<1x512x128xf32> to vector<512x128xf32>
    %cst_111 = arith.constant dense<0.000000e+00> : vector<8x128xf32>
    %266 = tpu.matmul %263, %265, %cst_111 {dimension_numbers = #tpu.dot_dimension_numbers<[1], [0], [0], [1], [0, 0, 1, 1], [], []>} : vector<8x512xf32>, vector<512x128xf32>, vector<8x128xf32> -> vector<8x128xf32>
    %c0_112 = arith.constant 0 : index
    %c0_113 = arith.constant 0 : index
    %267 = vector.load %arg20[%c0_112, %c0_113] : memref<2x128xf32, #tpu.memory_space<vmem>>, vector<1x128xf32>
    %268 = vector.broadcast %267 : vector<1x128xf32> to vector<8x128xf32>
    %269 = arith.addf %266, %268 : vector<8x128xf32>
    %270 = arith.addf %269, %222 : vector<8x128xf32>
    %c1 = arith.constant 1 : index
    %c0_114 = arith.constant 0 : index
    %271 = vector.load %arg3[%c1, %c0_114] : memref<2x128xf32, #tpu.memory_space<vmem>>, vector<1x128xf32>
    %c1_115 = arith.constant 1 : index
    %c0_116 = arith.constant 0 : index
    %272 = vector.load %arg4[%c1_115, %c0_116] : memref<2x128xf32, #tpu.memory_space<vmem>>, vector<1x128xf32>
    %cst_117 = arith.constant dense<0.000000e+00> : vector<8xf32>
    %273 = vector.multi_reduction <add>, %270, %cst_117 [1] : vector<8x128xf32> to vector<8xf32>
    %274 = vector.shape_cast %273 : vector<8xf32> to vector<8x1xf32>
    %cst_118 = arith.constant 1.280000e+02 : f32
    %275 = vector.broadcast %cst_118 : f32 to vector<8x1xf32>
    %276 = arith.divf %274, %275 : vector<8x1xf32>
    %277 = vector.broadcast %276 : vector<8x1xf32> to vector<8x128xf32>
    %278 = arith.subf %270, %277 : vector<8x128xf32>
    %279 = arith.mulf %278, %278 : vector<8x128xf32>
    %cst_119 = arith.constant dense<0.000000e+00> : vector<8xf32>
    %280 = vector.multi_reduction <add>, %279, %cst_119 [1] : vector<8x128xf32> to vector<8xf32>
    %281 = vector.shape_cast %280 : vector<8xf32> to vector<8x1xf32>
    %cst_120 = arith.constant 1.280000e+02 : f32
    %282 = vector.broadcast %cst_120 : f32 to vector<8x1xf32>
    %283 = arith.divf %281, %282 : vector<8x1xf32>
    %cst_121 = arith.constant 9.99999974E-6 : f32
    %284 = vector.broadcast %cst_121 : f32 to vector<8x1xf32>
    %285 = arith.addf %283, %284 : vector<8x1xf32>
    %286 = math.rsqrt %285 : vector<8x1xf32>
    %287 = vector.broadcast %286 : vector<8x1xf32> to vector<8x128xf32>
    %288 = arith.mulf %278, %287 : vector<8x128xf32>
    %289 = vector.broadcast %271 : vector<1x128xf32> to vector<8x128xf32>
    %290 = arith.mulf %288, %289 : vector<8x128xf32>
    %291 = vector.broadcast %272 : vector<1x128xf32> to vector<8x128xf32>
    %292 = arith.addf %290, %291 : vector<8x128xf32>
    %c1_122 = arith.constant 1 : index
    %c0_123 = arith.constant 0 : index
    %c0_124 = arith.constant 0 : index
    %293 = vector.load %arg5[%c1_122, %c0_123, %c0_124] : memref<2x128x384xf32, #tpu.memory_space<vmem>>, vector<1x128x384xf32>
    %294 = vector.shape_cast %293 : vector<1x128x384xf32> to vector<128x384xf32>
    %cst_125 = arith.constant dense<0.000000e+00> : vector<8x384xf32>
    %295 = tpu.matmul %292, %294, %cst_125 {dimension_numbers = #tpu.dot_dimension_numbers<[1], [0], [0], [1], [0, 0, 1, 1], [], []>} : vector<8x128xf32>, vector<128x384xf32>, vector<8x384xf32> -> vector<8x384xf32>
    %c1_126 = arith.constant 1 : index
    %c0_127 = arith.constant 0 : index
    %296 = vector.load %arg6[%c1_126, %c0_127] : memref<2x384xf32, #tpu.memory_space<vmem>>, vector<1x384xf32>
    %297 = vector.broadcast %296 : vector<1x384xf32> to vector<8x384xf32>
    %298 = arith.addf %295, %297 : vector<8x384xf32>
    %299 = vector.extract_strided_slice %298 {offsets = [0, 0], sizes = [8, 128], strides = [1, 1]} : vector<8x384xf32> to vector<8x128xf32>
    %300 = vector.extract_strided_slice %298 {offsets = [0, 128], sizes = [8, 128], strides = [1, 1]} : vector<8x384xf32> to vector<8x128xf32>
    %301 = vector.extract_strided_slice %298 {offsets = [0, 256], sizes = [8, 128], strides = [1, 1]} : vector<8x384xf32> to vector<8x128xf32>
    %cst_128 = arith.constant 0.176776692 : f32
    %302 = vector.broadcast %cst_128 : f32 to vector<8x128xf32>
    %303 = arith.mulf %299, %302 : vector<8x128xf32>
    %304 = vector.extract_strided_slice %303 {offsets = [0, 0], sizes = [8, 32], strides = [1, 1]} : vector<8x128xf32> to vector<8x32xf32>
    %305 = vector.extract_strided_slice %300 {offsets = [0, 0], sizes = [8, 32], strides = [1, 1]} : vector<8x128xf32> to vector<8x32xf32>
    %306 = vector.extract_strided_slice %301 {offsets = [0, 0], sizes = [8, 32], strides = [1, 1]} : vector<8x128xf32> to vector<8x32xf32>
    %cst_129 = arith.constant dense<0.000000e+00> : vector<8x8xf32>
    %307 = tpu.matmul %304, %305, %cst_129 {dimension_numbers = #tpu.dot_dimension_numbers<[1], [1], [0], [0], [0, 0, 1, 0], [], []>} : vector<8x32xf32>, vector<8x32xf32>, vector<8x8xf32> -> vector<8x8xf32>
    %308 = arith.addf %307, %15 : vector<8x8xf32>
    %cst_130 = arith.constant dense<0xFF800000> : vector<8xf32>
    %309 = vector.multi_reduction <maximumf>, %308, %cst_130 [1] : vector<8x8xf32> to vector<8xf32>
    %310 = vector.shape_cast %309 : vector<8xf32> to vector<8x1xf32>
    %311 = vector.broadcast %310 : vector<8x1xf32> to vector<8x8xf32>
    %312 = arith.subf %308, %311 : vector<8x8xf32>
    %313 = math.exp %312 : vector<8x8xf32>
    %cst_131 = arith.constant dense<0.000000e+00> : vector<8xf32>
    %314 = vector.multi_reduction <add>, %313, %cst_131 [1] : vector<8x8xf32> to vector<8xf32>
    %315 = vector.shape_cast %314 : vector<8xf32> to vector<8x1xf32>
    %316 = tpu.reciprocal %315 {approx = true} : vector<8x1xf32> -> vector<8x1xf32>
    %317 = vector.broadcast %316 : vector<8x1xf32> to vector<8x8xf32>
    %318 = arith.mulf %313, %317 : vector<8x8xf32>
    %cst_132 = arith.constant dense<0.000000e+00> : vector<8x32xf32>
    %319 = tpu.matmul %318, %306, %cst_132 {dimension_numbers = #tpu.dot_dimension_numbers<[1], [0], [0], [1], [0, 0, 1, 1], [], []>} : vector<8x8xf32>, vector<8x32xf32>, vector<8x32xf32> -> vector<8x32xf32>
    %320 = vector.extract_strided_slice %303 {offsets = [0, 32], sizes = [8, 32], strides = [1, 1]} : vector<8x128xf32> to vector<8x32xf32>
    %321 = vector.extract_strided_slice %300 {offsets = [0, 32], sizes = [8, 32], strides = [1, 1]} : vector<8x128xf32> to vector<8x32xf32>
    %322 = vector.extract_strided_slice %301 {offsets = [0, 32], sizes = [8, 32], strides = [1, 1]} : vector<8x128xf32> to vector<8x32xf32>
    %cst_133 = arith.constant dense<0.000000e+00> : vector<8x8xf32>
    %323 = tpu.matmul %320, %321, %cst_133 {dimension_numbers = #tpu.dot_dimension_numbers<[1], [1], [0], [0], [0, 0, 1, 0], [], []>} : vector<8x32xf32>, vector<8x32xf32>, vector<8x8xf32> -> vector<8x8xf32>
    %324 = arith.addf %323, %15 : vector<8x8xf32>
    %cst_134 = arith.constant dense<0xFF800000> : vector<8xf32>
    %325 = vector.multi_reduction <maximumf>, %324, %cst_134 [1] : vector<8x8xf32> to vector<8xf32>
    %326 = vector.shape_cast %325 : vector<8xf32> to vector<8x1xf32>
    %327 = vector.broadcast %326 : vector<8x1xf32> to vector<8x8xf32>
    %328 = arith.subf %324, %327 : vector<8x8xf32>
    %329 = math.exp %328 : vector<8x8xf32>
    %cst_135 = arith.constant dense<0.000000e+00> : vector<8xf32>
    %330 = vector.multi_reduction <add>, %329, %cst_135 [1] : vector<8x8xf32> to vector<8xf32>
    %331 = vector.shape_cast %330 : vector<8xf32> to vector<8x1xf32>
    %332 = tpu.reciprocal %331 {approx = true} : vector<8x1xf32> -> vector<8x1xf32>
    %333 = vector.broadcast %332 : vector<8x1xf32> to vector<8x8xf32>
    %334 = arith.mulf %329, %333 : vector<8x8xf32>
    %cst_136 = arith.constant dense<0.000000e+00> : vector<8x32xf32>
    %335 = tpu.matmul %334, %322, %cst_136 {dimension_numbers = #tpu.dot_dimension_numbers<[1], [0], [0], [1], [0, 0, 1, 1], [], []>} : vector<8x8xf32>, vector<8x32xf32>, vector<8x32xf32> -> vector<8x32xf32>
    %336 = vector.extract_strided_slice %303 {offsets = [0, 64], sizes = [8, 32], strides = [1, 1]} : vector<8x128xf32> to vector<8x32xf32>
    %337 = vector.extract_strided_slice %300 {offsets = [0, 64], sizes = [8, 32], strides = [1, 1]} : vector<8x128xf32> to vector<8x32xf32>
    %338 = vector.extract_strided_slice %301 {offsets = [0, 64], sizes = [8, 32], strides = [1, 1]} : vector<8x128xf32> to vector<8x32xf32>
    %cst_137 = arith.constant dense<0.000000e+00> : vector<8x8xf32>
    %339 = tpu.matmul %336, %337, %cst_137 {dimension_numbers = #tpu.dot_dimension_numbers<[1], [1], [0], [0], [0, 0, 1, 0], [], []>} : vector<8x32xf32>, vector<8x32xf32>, vector<8x8xf32> -> vector<8x8xf32>
    %340 = arith.addf %339, %15 : vector<8x8xf32>
    %cst_138 = arith.constant dense<0xFF800000> : vector<8xf32>
    %341 = vector.multi_reduction <maximumf>, %340, %cst_138 [1] : vector<8x8xf32> to vector<8xf32>
    %342 = vector.shape_cast %341 : vector<8xf32> to vector<8x1xf32>
    %343 = vector.broadcast %342 : vector<8x1xf32> to vector<8x8xf32>
    %344 = arith.subf %340, %343 : vector<8x8xf32>
    %345 = math.exp %344 : vector<8x8xf32>
    %cst_139 = arith.constant dense<0.000000e+00> : vector<8xf32>
    %346 = vector.multi_reduction <add>, %345, %cst_139 [1] : vector<8x8xf32> to vector<8xf32>
    %347 = vector.shape_cast %346 : vector<8xf32> to vector<8x1xf32>
    %348 = tpu.reciprocal %347 {approx = true} : vector<8x1xf32> -> vector<8x1xf32>
    %349 = vector.broadcast %348 : vector<8x1xf32> to vector<8x8xf32>
    %350 = arith.mulf %345, %349 : vector<8x8xf32>
    %cst_140 = arith.constant dense<0.000000e+00> : vector<8x32xf32>
    %351 = tpu.matmul %350, %338, %cst_140 {dimension_numbers = #tpu.dot_dimension_numbers<[1], [0], [0], [1], [0, 0, 1, 1], [], []>} : vector<8x8xf32>, vector<8x32xf32>, vector<8x32xf32> -> vector<8x32xf32>
    %352 = vector.extract_strided_slice %303 {offsets = [0, 96], sizes = [8, 32], strides = [1, 1]} : vector<8x128xf32> to vector<8x32xf32>
    %353 = vector.extract_strided_slice %300 {offsets = [0, 96], sizes = [8, 32], strides = [1, 1]} : vector<8x128xf32> to vector<8x32xf32>
    %354 = vector.extract_strided_slice %301 {offsets = [0, 96], sizes = [8, 32], strides = [1, 1]} : vector<8x128xf32> to vector<8x32xf32>
    %cst_141 = arith.constant dense<0.000000e+00> : vector<8x8xf32>
    %355 = tpu.matmul %352, %353, %cst_141 {dimension_numbers = #tpu.dot_dimension_numbers<[1], [1], [0], [0], [0, 0, 1, 0], [], []>} : vector<8x32xf32>, vector<8x32xf32>, vector<8x8xf32> -> vector<8x8xf32>
    %356 = arith.addf %355, %15 : vector<8x8xf32>
    %cst_142 = arith.constant dense<0xFF800000> : vector<8xf32>
    %357 = vector.multi_reduction <maximumf>, %356, %cst_142 [1] : vector<8x8xf32> to vector<8xf32>
    %358 = vector.shape_cast %357 : vector<8xf32> to vector<8x1xf32>
    %359 = vector.broadcast %358 : vector<8x1xf32> to vector<8x8xf32>
    %360 = arith.subf %356, %359 : vector<8x8xf32>
    %361 = math.exp %360 : vector<8x8xf32>
    %cst_143 = arith.constant dense<0.000000e+00> : vector<8xf32>
    %362 = vector.multi_reduction <add>, %361, %cst_143 [1] : vector<8x8xf32> to vector<8xf32>
    %363 = vector.shape_cast %362 : vector<8xf32> to vector<8x1xf32>
    %364 = tpu.reciprocal %363 {approx = true} : vector<8x1xf32> -> vector<8x1xf32>
    %365 = vector.broadcast %364 : vector<8x1xf32> to vector<8x8xf32>
    %366 = arith.mulf %361, %365 : vector<8x8xf32>
    %cst_144 = arith.constant dense<0.000000e+00> : vector<8x32xf32>
    %367 = tpu.matmul %366, %354, %cst_144 {dimension_numbers = #tpu.dot_dimension_numbers<[1], [0], [0], [1], [0, 0, 1, 1], [], []>} : vector<8x8xf32>, vector<8x32xf32>, vector<8x32xf32> -> vector<8x32xf32>
    %368 = tpu.concatenate %319, %335, %351, %367 in 1 : vector<8x32xf32>, vector<8x32xf32>, vector<8x32xf32>, vector<8x32xf32> -> vector<8x128xf32>
    %c1_145 = arith.constant 1 : index
    %c0_146 = arith.constant 0 : index
    %c0_147 = arith.constant 0 : index
    %369 = vector.load %arg7[%c1_145, %c0_146, %c0_147] : memref<2x128x128xf32, #tpu.memory_space<vmem>>, vector<1x128x128xf32>
    %370 = vector.shape_cast %369 : vector<1x128x128xf32> to vector<128x128xf32>
    %cst_148 = arith.constant dense<0.000000e+00> : vector<8x128xf32>
    %371 = tpu.matmul %368, %370, %cst_148 {dimension_numbers = #tpu.dot_dimension_numbers<[1], [0], [0], [1], [0, 0, 1, 1], [], []>} : vector<8x128xf32>, vector<128x128xf32>, vector<8x128xf32> -> vector<8x128xf32>
    %c1_149 = arith.constant 1 : index
    %c0_150 = arith.constant 0 : index
    %372 = vector.load %arg8[%c1_149, %c0_150] : memref<2x128xf32, #tpu.memory_space<vmem>>, vector<1x128xf32>
    %373 = vector.broadcast %372 : vector<1x128xf32> to vector<8x128xf32>
    %374 = arith.addf %371, %373 : vector<8x128xf32>
    %375 = arith.addf %374, %270 : vector<8x128xf32>
    %c1_151 = arith.constant 1 : index
    %c0_152 = arith.constant 0 : index
    %376 = vector.load %arg9[%c1_151, %c0_152] : memref<2x128xf32, #tpu.memory_space<vmem>>, vector<1x128xf32>
    %c1_153 = arith.constant 1 : index
    %c0_154 = arith.constant 0 : index
    %377 = vector.load %arg10[%c1_153, %c0_154] : memref<2x128xf32, #tpu.memory_space<vmem>>, vector<1x128xf32>
    %cst_155 = arith.constant dense<0.000000e+00> : vector<8xf32>
    %378 = vector.multi_reduction <add>, %375, %cst_155 [1] : vector<8x128xf32> to vector<8xf32>
    %379 = vector.shape_cast %378 : vector<8xf32> to vector<8x1xf32>
    %cst_156 = arith.constant 1.280000e+02 : f32
    %380 = vector.broadcast %cst_156 : f32 to vector<8x1xf32>
    %381 = arith.divf %379, %380 : vector<8x1xf32>
    %382 = vector.broadcast %381 : vector<8x1xf32> to vector<8x128xf32>
    %383 = arith.subf %375, %382 : vector<8x128xf32>
    %384 = arith.mulf %383, %383 : vector<8x128xf32>
    %cst_157 = arith.constant dense<0.000000e+00> : vector<8xf32>
    %385 = vector.multi_reduction <add>, %384, %cst_157 [1] : vector<8x128xf32> to vector<8xf32>
    %386 = vector.shape_cast %385 : vector<8xf32> to vector<8x1xf32>
    %cst_158 = arith.constant 1.280000e+02 : f32
    %387 = vector.broadcast %cst_158 : f32 to vector<8x1xf32>
    %388 = arith.divf %386, %387 : vector<8x1xf32>
    %cst_159 = arith.constant 9.99999974E-6 : f32
    %389 = vector.broadcast %cst_159 : f32 to vector<8x1xf32>
    %390 = arith.addf %388, %389 : vector<8x1xf32>
    %391 = math.rsqrt %390 : vector<8x1xf32>
    %392 = vector.broadcast %391 : vector<8x1xf32> to vector<8x128xf32>
    %393 = arith.mulf %383, %392 : vector<8x128xf32>
    %394 = vector.broadcast %376 : vector<1x128xf32> to vector<8x128xf32>
    %395 = arith.mulf %393, %394 : vector<8x128xf32>
    %396 = vector.broadcast %377 : vector<1x128xf32> to vector<8x128xf32>
    %397 = arith.addf %395, %396 : vector<8x128xf32>
    %c1_160 = arith.constant 1 : index
    %c0_161 = arith.constant 0 : index
    %c0_162 = arith.constant 0 : index
    %398 = vector.load %arg11[%c1_160, %c0_161, %c0_162] : memref<2x128x128xf32, #tpu.memory_space<vmem>>, vector<1x128x128xf32>
    %399 = vector.shape_cast %398 : vector<1x128x128xf32> to vector<128x128xf32>
    %cst_163 = arith.constant dense<0.000000e+00> : vector<8x128xf32>
    %400 = tpu.matmul %397, %399, %cst_163 {dimension_numbers = #tpu.dot_dimension_numbers<[1], [0], [0], [1], [0, 0, 1, 1], [], []>} : vector<8x128xf32>, vector<128x128xf32>, vector<8x128xf32> -> vector<8x128xf32>
    %c1_164 = arith.constant 1 : index
    %c0_165 = arith.constant 0 : index
    %401 = vector.load %arg12[%c1_164, %c0_165] : memref<2x128xf32, #tpu.memory_space<vmem>>, vector<1x128xf32>
    %402 = vector.broadcast %401 : vector<1x128xf32> to vector<8x128xf32>
    %403 = arith.addf %400, %402 : vector<8x128xf32>
    %c1_166 = arith.constant 1 : index
    %c0_167 = arith.constant 0 : index
    %c0_168 = arith.constant 0 : index
    %404 = vector.load %arg21[%c1_166, %c0_167, %c0_168] : memref<2x16x128xf32, #tpu.memory_space<vmem>>, vector<1x16x128xf32>
    %405 = vector.shape_cast %404 : vector<1x16x128xf32> to vector<16x128xf32>
    %c1_169 = arith.constant 1 : index
    %c0_170 = arith.constant 0 : index
    %c0_171 = arith.constant 0 : index
    %406 = vector.load %arg22[%c1_169, %c0_170, %c0_171] : memref<2x16x128xf32, #tpu.memory_space<vmem>>, vector<1x16x128xf32>
    %407 = vector.shape_cast %406 : vector<1x16x128xf32> to vector<16x128xf32>
    %cst_172 = arith.constant 0.176776692 : f32
    %408 = vector.broadcast %cst_172 : f32 to vector<8x128xf32>
    %409 = arith.mulf %403, %408 : vector<8x128xf32>
    %410 = vector.extract_strided_slice %409 {offsets = [0, 0], sizes = [8, 32], strides = [1, 1]} : vector<8x128xf32> to vector<8x32xf32>
    %411 = vector.extract_strided_slice %405 {offsets = [0, 0], sizes = [16, 32], strides = [1, 1]} : vector<16x128xf32> to vector<16x32xf32>
    %412 = vector.extract_strided_slice %407 {offsets = [0, 0], sizes = [16, 32], strides = [1, 1]} : vector<16x128xf32> to vector<16x32xf32>
    %cst_173 = arith.constant dense<0.000000e+00> : vector<8x16xf32>
    %413 = tpu.matmul %410, %411, %cst_173 {dimension_numbers = #tpu.dot_dimension_numbers<[1], [1], [0], [0], [0, 0, 1, 0], [], []>} : vector<8x32xf32>, vector<16x32xf32>, vector<8x16xf32> -> vector<8x16xf32>
    %cst_174 = arith.constant dense<0xFF800000> : vector<8xf32>
    %414 = vector.multi_reduction <maximumf>, %413, %cst_174 [1] : vector<8x16xf32> to vector<8xf32>
    %415 = vector.shape_cast %414 : vector<8xf32> to vector<8x1xf32>
    %416 = vector.broadcast %415 : vector<8x1xf32> to vector<8x16xf32>
    %417 = arith.subf %413, %416 : vector<8x16xf32>
    %418 = math.exp %417 : vector<8x16xf32>
    %cst_175 = arith.constant dense<0.000000e+00> : vector<8xf32>
    %419 = vector.multi_reduction <add>, %418, %cst_175 [1] : vector<8x16xf32> to vector<8xf32>
    %420 = vector.shape_cast %419 : vector<8xf32> to vector<8x1xf32>
    %421 = tpu.reciprocal %420 {approx = true} : vector<8x1xf32> -> vector<8x1xf32>
    %422 = vector.broadcast %421 : vector<8x1xf32> to vector<8x16xf32>
    %423 = arith.mulf %418, %422 : vector<8x16xf32>
    %cst_176 = arith.constant dense<0.000000e+00> : vector<8x32xf32>
    %424 = tpu.matmul %423, %412, %cst_176 {dimension_numbers = #tpu.dot_dimension_numbers<[1], [0], [0], [1], [0, 0, 1, 1], [], []>} : vector<8x16xf32>, vector<16x32xf32>, vector<8x32xf32> -> vector<8x32xf32>
    %425 = vector.extract_strided_slice %409 {offsets = [0, 32], sizes = [8, 32], strides = [1, 1]} : vector<8x128xf32> to vector<8x32xf32>
    %426 = vector.extract_strided_slice %405 {offsets = [0, 32], sizes = [16, 32], strides = [1, 1]} : vector<16x128xf32> to vector<16x32xf32>
    %427 = vector.extract_strided_slice %407 {offsets = [0, 32], sizes = [16, 32], strides = [1, 1]} : vector<16x128xf32> to vector<16x32xf32>
    %cst_177 = arith.constant dense<0.000000e+00> : vector<8x16xf32>
    %428 = tpu.matmul %425, %426, %cst_177 {dimension_numbers = #tpu.dot_dimension_numbers<[1], [1], [0], [0], [0, 0, 1, 0], [], []>} : vector<8x32xf32>, vector<16x32xf32>, vector<8x16xf32> -> vector<8x16xf32>
    %cst_178 = arith.constant dense<0xFF800000> : vector<8xf32>
    %429 = vector.multi_reduction <maximumf>, %428, %cst_178 [1] : vector<8x16xf32> to vector<8xf32>
    %430 = vector.shape_cast %429 : vector<8xf32> to vector<8x1xf32>
    %431 = vector.broadcast %430 : vector<8x1xf32> to vector<8x16xf32>
    %432 = arith.subf %428, %431 : vector<8x16xf32>
    %433 = math.exp %432 : vector<8x16xf32>
    %cst_179 = arith.constant dense<0.000000e+00> : vector<8xf32>
    %434 = vector.multi_reduction <add>, %433, %cst_179 [1] : vector<8x16xf32> to vector<8xf32>
    %435 = vector.shape_cast %434 : vector<8xf32> to vector<8x1xf32>
    %436 = tpu.reciprocal %435 {approx = true} : vector<8x1xf32> -> vector<8x1xf32>
    %437 = vector.broadcast %436 : vector<8x1xf32> to vector<8x16xf32>
    %438 = arith.mulf %433, %437 : vector<8x16xf32>
    %cst_180 = arith.constant dense<0.000000e+00> : vector<8x32xf32>
    %439 = tpu.matmul %438, %427, %cst_180 {dimension_numbers = #tpu.dot_dimension_numbers<[1], [0], [0], [1], [0, 0, 1, 1], [], []>} : vector<8x16xf32>, vector<16x32xf32>, vector<8x32xf32> -> vector<8x32xf32>
    %440 = vector.extract_strided_slice %409 {offsets = [0, 64], sizes = [8, 32], strides = [1, 1]} : vector<8x128xf32> to vector<8x32xf32>
    %441 = vector.extract_strided_slice %405 {offsets = [0, 64], sizes = [16, 32], strides = [1, 1]} : vector<16x128xf32> to vector<16x32xf32>
    %442 = vector.extract_strided_slice %407 {offsets = [0, 64], sizes = [16, 32], strides = [1, 1]} : vector<16x128xf32> to vector<16x32xf32>
    %cst_181 = arith.constant dense<0.000000e+00> : vector<8x16xf32>
    %443 = tpu.matmul %440, %441, %cst_181 {dimension_numbers = #tpu.dot_dimension_numbers<[1], [1], [0], [0], [0, 0, 1, 0], [], []>} : vector<8x32xf32>, vector<16x32xf32>, vector<8x16xf32> -> vector<8x16xf32>
    %cst_182 = arith.constant dense<0xFF800000> : vector<8xf32>
    %444 = vector.multi_reduction <maximumf>, %443, %cst_182 [1] : vector<8x16xf32> to vector<8xf32>
    %445 = vector.shape_cast %444 : vector<8xf32> to vector<8x1xf32>
    %446 = vector.broadcast %445 : vector<8x1xf32> to vector<8x16xf32>
    %447 = arith.subf %443, %446 : vector<8x16xf32>
    %448 = math.exp %447 : vector<8x16xf32>
    %cst_183 = arith.constant dense<0.000000e+00> : vector<8xf32>
    %449 = vector.multi_reduction <add>, %448, %cst_183 [1] : vector<8x16xf32> to vector<8xf32>
    %450 = vector.shape_cast %449 : vector<8xf32> to vector<8x1xf32>
    %451 = tpu.reciprocal %450 {approx = true} : vector<8x1xf32> -> vector<8x1xf32>
    %452 = vector.broadcast %451 : vector<8x1xf32> to vector<8x16xf32>
    %453 = arith.mulf %448, %452 : vector<8x16xf32>
    %cst_184 = arith.constant dense<0.000000e+00> : vector<8x32xf32>
    %454 = tpu.matmul %453, %442, %cst_184 {dimension_numbers = #tpu.dot_dimension_numbers<[1], [0], [0], [1], [0, 0, 1, 1], [], []>} : vector<8x16xf32>, vector<16x32xf32>, vector<8x32xf32> -> vector<8x32xf32>
    %455 = vector.extract_strided_slice %409 {offsets = [0, 96], sizes = [8, 32], strides = [1, 1]} : vector<8x128xf32> to vector<8x32xf32>
    %456 = vector.extract_strided_slice %405 {offsets = [0, 96], sizes = [16, 32], strides = [1, 1]} : vector<16x128xf32> to vector<16x32xf32>
    %457 = vector.extract_strided_slice %407 {offsets = [0, 96], sizes = [16, 32], strides = [1, 1]} : vector<16x128xf32> to vector<16x32xf32>
    %cst_185 = arith.constant dense<0.000000e+00> : vector<8x16xf32>
    %458 = tpu.matmul %455, %456, %cst_185 {dimension_numbers = #tpu.dot_dimension_numbers<[1], [1], [0], [0], [0, 0, 1, 0], [], []>} : vector<8x32xf32>, vector<16x32xf32>, vector<8x16xf32> -> vector<8x16xf32>
    %cst_186 = arith.constant dense<0xFF800000> : vector<8xf32>
    %459 = vector.multi_reduction <maximumf>, %458, %cst_186 [1] : vector<8x16xf32> to vector<8xf32>
    %460 = vector.shape_cast %459 : vector<8xf32> to vector<8x1xf32>
    %461 = vector.broadcast %460 : vector<8x1xf32> to vector<8x16xf32>
    %462 = arith.subf %458, %461 : vector<8x16xf32>
    %463 = math.exp %462 : vector<8x16xf32>
    %cst_187 = arith.constant dense<0.000000e+00> : vector<8xf32>
    %464 = vector.multi_reduction <add>, %463, %cst_187 [1] : vector<8x16xf32> to vector<8xf32>
    %465 = vector.shape_cast %464 : vector<8xf32> to vector<8x1xf32>
    %466 = tpu.reciprocal %465 {approx = true} : vector<8x1xf32> -> vector<8x1xf32>
    %467 = vector.broadcast %466 : vector<8x1xf32> to vector<8x16xf32>
    %468 = arith.mulf %463, %467 : vector<8x16xf32>
    %cst_188 = arith.constant dense<0.000000e+00> : vector<8x32xf32>
    %469 = tpu.matmul %468, %457, %cst_188 {dimension_numbers = #tpu.dot_dimension_numbers<[1], [0], [0], [1], [0, 0, 1, 1], [], []>} : vector<8x16xf32>, vector<16x32xf32>, vector<8x32xf32> -> vector<8x32xf32>
    %470 = tpu.concatenate %424, %439, %454, %469 in 1 : vector<8x32xf32>, vector<8x32xf32>, vector<8x32xf32>, vector<8x32xf32> -> vector<8x128xf32>
    %c1_189 = arith.constant 1 : index
    %c0_190 = arith.constant 0 : index
    %c0_191 = arith.constant 0 : index
    %471 = vector.load %arg13[%c1_189, %c0_190, %c0_191] : memref<2x128x128xf32, #tpu.memory_space<vmem>>, vector<1x128x128xf32>
    %472 = vector.shape_cast %471 : vector<1x128x128xf32> to vector<128x128xf32>
    %cst_192 = arith.constant dense<0.000000e+00> : vector<8x128xf32>
    %473 = tpu.matmul %470, %472, %cst_192 {dimension_numbers = #tpu.dot_dimension_numbers<[1], [0], [0], [1], [0, 0, 1, 1], [], []>} : vector<8x128xf32>, vector<128x128xf32>, vector<8x128xf32> -> vector<8x128xf32>
    %c1_193 = arith.constant 1 : index
    %c0_194 = arith.constant 0 : index
    %474 = vector.load %arg14[%c1_193, %c0_194] : memref<2x128xf32, #tpu.memory_space<vmem>>, vector<1x128xf32>
    %475 = vector.broadcast %474 : vector<1x128xf32> to vector<8x128xf32>
    %476 = arith.addf %473, %475 : vector<8x128xf32>
    %477 = arith.addf %375, %476 : vector<8x128xf32>
    %c1_195 = arith.constant 1 : index
    %c0_196 = arith.constant 0 : index
    %478 = vector.load %arg15[%c1_195, %c0_196] : memref<2x128xf32, #tpu.memory_space<vmem>>, vector<1x128xf32>
    %c1_197 = arith.constant 1 : index
    %c0_198 = arith.constant 0 : index
    %479 = vector.load %arg16[%c1_197, %c0_198] : memref<2x128xf32, #tpu.memory_space<vmem>>, vector<1x128xf32>
    %cst_199 = arith.constant dense<0.000000e+00> : vector<8xf32>
    %480 = vector.multi_reduction <add>, %477, %cst_199 [1] : vector<8x128xf32> to vector<8xf32>
    %481 = vector.shape_cast %480 : vector<8xf32> to vector<8x1xf32>
    %cst_200 = arith.constant 1.280000e+02 : f32
    %482 = vector.broadcast %cst_200 : f32 to vector<8x1xf32>
    %483 = arith.divf %481, %482 : vector<8x1xf32>
    %484 = vector.broadcast %483 : vector<8x1xf32> to vector<8x128xf32>
    %485 = arith.subf %477, %484 : vector<8x128xf32>
    %486 = arith.mulf %485, %485 : vector<8x128xf32>
    %cst_201 = arith.constant dense<0.000000e+00> : vector<8xf32>
    %487 = vector.multi_reduction <add>, %486, %cst_201 [1] : vector<8x128xf32> to vector<8xf32>
    %488 = vector.shape_cast %487 : vector<8xf32> to vector<8x1xf32>
    %cst_202 = arith.constant 1.280000e+02 : f32
    %489 = vector.broadcast %cst_202 : f32 to vector<8x1xf32>
    %490 = arith.divf %488, %489 : vector<8x1xf32>
    %cst_203 = arith.constant 9.99999974E-6 : f32
    %491 = vector.broadcast %cst_203 : f32 to vector<8x1xf32>
    %492 = arith.addf %490, %491 : vector<8x1xf32>
    %493 = math.rsqrt %492 : vector<8x1xf32>
    %494 = vector.broadcast %493 : vector<8x1xf32> to vector<8x128xf32>
    %495 = arith.mulf %485, %494 : vector<8x128xf32>
    %496 = vector.broadcast %478 : vector<1x128xf32> to vector<8x128xf32>
    %497 = arith.mulf %495, %496 : vector<8x128xf32>
    %498 = vector.broadcast %479 : vector<1x128xf32> to vector<8x128xf32>
    %499 = arith.addf %497, %498 : vector<8x128xf32>
    %c1_204 = arith.constant 1 : index
    %c0_205 = arith.constant 0 : index
    %c0_206 = arith.constant 0 : index
    %500 = vector.load %arg17[%c1_204, %c0_205, %c0_206] : memref<2x128x512xf32, #tpu.memory_space<vmem>>, vector<1x128x512xf32>
    %501 = vector.shape_cast %500 : vector<1x128x512xf32> to vector<128x512xf32>
    %cst_207 = arith.constant dense<0.000000e+00> : vector<8x512xf32>
    %502 = tpu.matmul %499, %501, %cst_207 {dimension_numbers = #tpu.dot_dimension_numbers<[1], [0], [0], [1], [0, 0, 1, 1], [], []>} : vector<8x128xf32>, vector<128x512xf32>, vector<8x512xf32> -> vector<8x512xf32>
    %c1_208 = arith.constant 1 : index
    %c0_209 = arith.constant 0 : index
    %503 = vector.load %arg18[%c1_208, %c0_209] : memref<2x512xf32, #tpu.memory_space<vmem>>, vector<1x512xf32>
    %504 = vector.broadcast %503 : vector<1x512xf32> to vector<8x512xf32>
    %505 = arith.addf %502, %504 : vector<8x512xf32>
    %cst_210 = arith.constant 5.000000e-01 : f32
    %506 = vector.broadcast %cst_210 : f32 to vector<8x512xf32>
    %507 = arith.mulf %506, %505 : vector<8x512xf32>
    %cst_211 = arith.constant 4.471500e-02 : f32
    %508 = vector.broadcast %cst_211 : f32 to vector<8x512xf32>
    %509 = arith.mulf %508, %505 : vector<8x512xf32>
    %510 = arith.mulf %509, %505 : vector<8x512xf32>
    %511 = arith.mulf %510, %505 : vector<8x512xf32>
    %512 = arith.addf %505, %511 : vector<8x512xf32>
    %cst_212 = arith.constant 0.797884583 : f32
    %513 = vector.broadcast %cst_212 : f32 to vector<8x512xf32>
    %514 = arith.mulf %513, %512 : vector<8x512xf32>
    %515 = math.tanh %514 : vector<8x512xf32>
    %cst_213 = arith.constant 1.000000e+00 : f32
    %516 = vector.broadcast %cst_213 : f32 to vector<8x512xf32>
    %517 = arith.addf %516, %515 : vector<8x512xf32>
    %518 = arith.mulf %507, %517 : vector<8x512xf32>
    %c1_214 = arith.constant 1 : index
    %c0_215 = arith.constant 0 : index
    %c0_216 = arith.constant 0 : index
    %519 = vector.load %arg19[%c1_214, %c0_215, %c0_216] : memref<2x512x128xf32, #tpu.memory_space<vmem>>, vector<1x512x128xf32>
    %520 = vector.shape_cast %519 : vector<1x512x128xf32> to vector<512x128xf32>
    %cst_217 = arith.constant dense<0.000000e+00> : vector<8x128xf32>
    %521 = tpu.matmul %518, %520, %cst_217 {dimension_numbers = #tpu.dot_dimension_numbers<[1], [0], [0], [1], [0, 0, 1, 1], [], []>} : vector<8x512xf32>, vector<512x128xf32>, vector<8x128xf32> -> vector<8x128xf32>
    %c1_218 = arith.constant 1 : index
    %c0_219 = arith.constant 0 : index
    %522 = vector.load %arg20[%c1_218, %c0_219] : memref<2x128xf32, #tpu.memory_space<vmem>>, vector<1x128xf32>
    %523 = vector.broadcast %522 : vector<1x128xf32> to vector<8x128xf32>
    %524 = arith.addf %521, %523 : vector<8x128xf32>
    %525 = arith.addf %524, %477 : vector<8x128xf32>
    %c0_220 = arith.constant 0 : index
    %c0_221 = arith.constant 0 : index
    %526 = vector.load %arg23[%c0_220, %c0_221] : memref<1x128xf32, #tpu.memory_space<vmem>>, vector<1x128xf32>
    %c0_222 = arith.constant 0 : index
    %c0_223 = arith.constant 0 : index
    %527 = vector.load %arg24[%c0_222, %c0_223] : memref<1x128xf32, #tpu.memory_space<vmem>>, vector<1x128xf32>
    %cst_224 = arith.constant dense<0.000000e+00> : vector<8xf32>
    %528 = vector.multi_reduction <add>, %525, %cst_224 [1] : vector<8x128xf32> to vector<8xf32>
    %529 = vector.shape_cast %528 : vector<8xf32> to vector<8x1xf32>
    %cst_225 = arith.constant 1.280000e+02 : f32
    %530 = vector.broadcast %cst_225 : f32 to vector<8x1xf32>
    %531 = arith.divf %529, %530 : vector<8x1xf32>
    %532 = vector.broadcast %531 : vector<8x1xf32> to vector<8x128xf32>
    %533 = arith.subf %525, %532 : vector<8x128xf32>
    %534 = arith.mulf %533, %533 : vector<8x128xf32>
    %cst_226 = arith.constant dense<0.000000e+00> : vector<8xf32>
    %535 = vector.multi_reduction <add>, %534, %cst_226 [1] : vector<8x128xf32> to vector<8xf32>
    %536 = vector.shape_cast %535 : vector<8xf32> to vector<8x1xf32>
    %cst_227 = arith.constant 1.280000e+02 : f32
    %537 = vector.broadcast %cst_227 : f32 to vector<8x1xf32>
    %538 = arith.divf %536, %537 : vector<8x1xf32>
    %cst_228 = arith.constant 9.99999974E-6 : f32
    %539 = vector.broadcast %cst_228 : f32 to vector<8x1xf32>
    %540 = arith.addf %538, %539 : vector<8x1xf32>
    %541 = math.rsqrt %540 : vector<8x1xf32>
    %542 = vector.broadcast %541 : vector<8x1xf32> to vector<8x128xf32>
    %543 = arith.mulf %533, %542 : vector<8x128xf32>
    %544 = vector.broadcast %526 : vector<1x128xf32> to vector<8x128xf32>
    %545 = arith.mulf %543, %544 : vector<8x128xf32>
    %546 = vector.broadcast %527 : vector<1x128xf32> to vector<8x128xf32>
    %547 = arith.addf %545, %546 : vector<8x128xf32>
    %cst_229 = arith.constant dense<0.000000e+00> : vector<8x128xf32>
    %548 = tpu.matmul %547, %0, %cst_229 {dimension_numbers = #tpu.dot_dimension_numbers<[1], [1], [0], [0], [0, 0, 1, 0], [], []>} : vector<8x128xf32>, vector<128x128xf32>, vector<8x128xf32> -> vector<8x128xf32>
    %c0_230 = arith.constant 0 : index
    %c0_231 = arith.constant 0 : index
    %c0_232 = arith.constant 0 : index
    %549 = vector.load %arg25[%c0_230, %c0_231, %c0_232] : memref<1x8x128xf32, #tpu.memory_space<vmem>>, vector<1x8x128xf32>
    %550 = vector.shape_cast %549 : vector<1x8x128xf32> to vector<8x128xf32>
    %551 = vector.shape_cast %548 : vector<8x128xf32> to vector<1x8x128xf32>
    tpu.vector_store %arg25[%c0_230, %c0_231, %c0_232], %551 {strides = array<i32>} : memref<1x8x128xf32, #tpu.memory_space<vmem>>, vector<1x8x128xf32>,
    return
  }
}

</mosaic_0001>

<bundles_post_ra>
// kernel: whisper_decoder_forward.1
= control target key start
LH: loop header
LB: loop body
LE: loop exit
PB: predicated region body
PF: predicated region fallthrough
CT: control target
= control target key end

     0   :  { %s4275_s0 = inlined_call_operand.vmem [shape: s32[8,1], index: 0, kind: input, shape index: {}]   ;;  %s4276_s1 = inlined_call_operand.vmem [shape: f32[8,128], index: 1, kind: input, shape index: {}]   ;;  %s4277_s2 = inlined_call_operand.vmem [shape: f32[128,128], index: 2, kind: input, shape index: {}]   ;;  %s4278_s3 = inlined_call_operand.vmem [shape: f32[2,128], index: 3, kind: input, shape index: {}]   ;;  %s4279_s4 = inlined_call_operand.vmem [shape: f32[2,128], index: 4, kind: input, shape index: {}]   ;;  %s4280_s5 = inlined_call_operand.hbm [shape: f32[2,128,384], index: 5, kind: input, shape index: {}]   ;;  %s4281_s6 = inlined_call_operand.vmem [shape: f32[2,384], index: 6, kind: input, shape index: {}]   ;;  %s4282_s7 = inlined_call_operand.vmem [shape: f32[2,128,128], index: 7, kind: input, shape index: {}]   ;;  %s4283_s8 = inlined_call_operand.vmem [shape: f32[2,128], index: 8, kind: input, shape index: {}]   ;;  %s4284_s9 = inlined_call_operand.vmem [shape: f32[2,128], index: 9, kind: input, shape index: {}]   ;;  %s4285_s10 = inlined_call_operand.vmem [shape: f32[2,128], index: 10, kind: input, shape index: {}]   ;;  %s4286_s11 = inlined_call_operand.hbm [shape: f32[2,128,128], index: 11, kind: input, shape index: {}]   ;;  %s4287_s12 = inlined_call_operand.vmem [shape: f32[2,128], index: 12, kind: input, shape index: {}]   ;;  %s4288_s13 = inlined_call_operand.hbm [shape: f32[2,128,128], index: 13, kind: input, shape index: {}]   ;;  %s4289_s14 = inlined_call_operand.vmem [shape: f32[2,128], index: 14, kind: input, shape index: {}]   ;;  %s4290_s15 = inlined_call_operand.vmem [shape: f32[2,128], index: 15, kind: input, shape index: {}]   ;;  %s4291_s16 = inlined_call_operand.vmem [shape: f32[2,128], index: 16, kind: input, shape index: {}]   ;;  %s4292_s17 = inlined_call_operand.vmem [shape: f32[2,128,512], index: 17, kind: input, shape index: {}]   ;;  %s4293_s18 = inlined_call_operand.vmem [shape: f32[2,512], index: 18, kind: input, shape index: {}]   ;;  %s4294_s19 = inlined_call_operand.hbm [shape: f32[2,512,128], index: 19, kind: input, shape index: {}]   ;;  %s4295_s20 = inlined_call_operand.vmem [shape: f32[2,128], index: 20, kind: input, shape index: {}]   ;;  %s4296_s21 = inlined_call_operand.vmem [shape: f32[2,16,128], index: 21, kind: input, shape index: {}]   ;;  %s4297_s22 = inlined_call_operand.vmem [shape: f32[2,16,128], index: 22, kind: input, shape index: {}]   ;;  %s4298_s23 = inlined_call_operand.vmem [shape: f32[1,128], index: 23, kind: input, shape index: {}]   ;;  %s4299_s24 = inlined_call_operand.vmem [shape: f32[1,128], index: 24, kind: input, shape index: {}]   ;;  %s4300_s25 = inlined_call_operand.hbm [shape: f32[1,8,128], index: 25, kind: output, shape index: {}]  }
   0x1   :  { %4310 = sst [smem:[#allocation15_spill]] %s4275_s0 }
   0x2   :  { %4311 = sst [smem:[#allocation16_spill]] %s4276_s1 }
   0x3   :  { %4312 = sst [smem:[#allocation17_spill]] %s4277_s2 }
   0x4   :  { %4313 = sst [smem:[#allocation18_spill]] %s4278_s3 }
   0x5   :  { %4314 = sst [smem:[#allocation19_spill]] %s4279_s4 }
   0x6   :  { %4315 = sst [smem:[#allocation20_spill]] %s4280_s5 }
   0x7   :  { %4316 = sst [smem:[#allocation21_spill]] %s4281_s6 }
   0x8   :  { %4317 = sst [smem:[#allocation22_spill]] %s4282_s7 }
   0x9   :  { %4318 = sst [smem:[#allocation23_spill]] %s4283_s8 }
   0xa   :  { %4319 = sst [smem:[#allocation24_spill]] %s4284_s9 }
   0xb   :  { %4320 = sst [smem:[#allocation25_spill]] %s4300_s25 }
   0xc   :  { %30 = vsyncpa [#allocation3], 0 }
   0xd   :  { %31 = vsyncpa [#allocation6], 0 }
   0xe   :  { %32 = vsyncpa [#allocation9], 0  ;;  %s71_s6 = sshll.u32 %s4286_s11, 4  ;;  %s72_s6 = int_to_ptr.hbm [resolvable:$true] %s71_s6 }
   0xf   :  { %33 = vsyncpa [#allocation4], 0  ;;  %s3179_s30 = smov [#allocation5]   ;;  %s4321_s1 = sld [smem:[#allocation20_spill]] }
  0x10   :  { %s73_s7 = sshll.u32 %s3179_s30, 4  ;;  %s3180_s27 = smov 128   ;;  %s74_s7 = int_to_ptr.vmem [resolvable:$true] %s73_s7 }
  0x11   :  { %s3181_s4 = smov 8   ;;  %s3182_s28 = smov [#allocation2]  }
  0x12   :  { %79 = dma.hbm_to_vmem [thread:$0]  %s72_s6, 4096, %s74_s7, [#allocation6], %s3180_s27, %s3180_s27, %s3181_s4  }
  0x13   :  { %s50_s9 = sshll.u32 %s3182_s28, 4  ;;  %s3183_s5 = smov 384   ;;  %s51_s9 = int_to_ptr.vmem [resolvable:$true] %s50_s9 }
  0x14   :  { %s3184_s0 = smov 24   ;;  %s86_s2 = sshll.u32 %s4288_s13, 4  ;;  %s87_s2 = int_to_ptr.hbm [resolvable:$true] %s86_s2 }
  0x15   :  { %s48_s8 = sshll.u32 %s4321_s1, 4  ;;  %s3185_s30 = smov [#allocation7]   ;;  %s49_s8 = int_to_ptr.hbm [resolvable:$true] %s48_s8 }
  0x16   :  { %56 = dma.hbm_to_vmem [thread:$0]  %s49_s8, 12288, %s51_s9, [#allocation3], %s3183_s5, %s3183_s5, %s3184_s0  }
  0x17   :  { %s88_s25 = sshll.u32 %s3185_s30, 4  ;;  %s109_s1 = sshll.u32 %s4294_s19, 4  ;;  %s89_s25 = int_to_ptr.vmem [resolvable:$true] %s88_s25  ;;  %s110_s1 = int_to_ptr.hbm [resolvable:$true] %s109_s1 }
  0x18   :  { %94 = dma.hbm_to_vmem [thread:$0]  %s87_s2, 4096, %s89_s25, [#allocation6], %s3180_s27, %s3180_s27, %s3181_s4  }
  0x19   :  { %s3186_s6 = smov [#allocation8]  }
  0x1a   :  { %s111_s7 = sshll.u32 %s3186_s6, 4  ;;  %s112_s7 = int_to_ptr.vmem [resolvable:$true] %s111_s7 }
  0x1b   :  { %117 = dma.hbm_to_vmem [thread:$0]  %s110_s1, 16384, %s112_s7, [#allocation9], %s3180_s27, %s3180_s27, %s3181_s4  }
  0x1c   :  { %3171 = dma.done.wait [#allocation3], 12288  }
  0x1d   :  { %3172 = vsyncadd [#allocation3], 4294955008 }
  0x1e   :  { %3173 = dma.done.wait [#allocation6], 8192  }
  0x1f   :  { %3174 = vsyncadd [#allocation6], 4294959104 }
  0x20   :  { %3175 = dma.done.wait [#allocation9], 16384  }
  0x21   :  { %3176 = vsyncadd [#allocation9], 4294950912  ;;  %v3187_v0 = vmov 0   ;;  %s4322_s28 = sld [smem:[#allocation15_spill]]  ;;  %v161_v18 = vlaneseq  ;;  %v3188_v21 = vmov 1.0   ;;  %v3189_v25 = vmov 128.0  }
  0x22   :  { %2886 = vset.pattern.permute.xlu0 %v3187_v0  ;;  %s4323_s25 = sld [smem:[#allocation17_spill]]  ;;  %2939 = vrcp.f32 %v3189_v25  ;;  %v272_v26 = vld [vmem:[#allocation2 + $0x168] sm:$0xff]  ;;  %v269_v27 = vld [vmem:[#allocation2 + $0x150] sm:$0xff]  ;;  %v266_v28 = vld [vmem:[#allocation2 + $0x138] sm:$0xff]  ;;  %vm344_vm5 = vcmask 261120   ;;  %s3190_s2 = smov 96  }
  0x23   :  { %v3389_v19 = vand.u32 127, %v161_v18  ;;  %s4324_s8 = sld [smem:[#allocation16_spill]]  ;;  %283 = vmatpush.msra.mxu2 %v272_v26  ;;  %v263_v30 = vld [vmem:[#allocation2 + $0x120] sm:$0xff]  ;;  %v274_v31 = vld [vmem:[#allocation2 + $0x178] sm:$0xff]  ;;  %v260_v33 = vld [vmem:[#allocation2 + $0x108] sm:$0xff]  ;;  %s3191_s30 = smov 32  }
  0x24   :  { %v271_v32 = vld [vmem:[#allocation2 + $0x160] sm:$0xff]  ;;  %323 = vmatpush.msra.mxu3 %v274_v31  ;;  %v257_v35 = vld [vmem:[#allocation2 + $0xf0] sm:$0xff]  ;;  %v254_v36 = vld [vmem:[#allocation2 + $0xd8] sm:$0xff]  ;;  %s4325_s19 = sld [smem:[#allocation18_spill]]  ;;  %vm371_vm7 = vcmask 64512   ;;  %s4308_s3 = smov 64  }
  0x25   :  { %284 = vmatpush.msra.mxu2 %v269_v27  ;;  %v251_v38 = vld [vmem:[#allocation2 + $0xc0] sm:$0xff]  ;;  %v248_v39 = vld [vmem:[#allocation2 + $0xa8] sm:$0xff]  ;;  %v245_v41 = vld [vmem:[#allocation2 + $0x90] sm:$0xff]  ;;  %s4326_s27 = sld [smem:[#allocation19_spill]]  ;;  %vm615_vm8 = vcmask 523264   ;;  %vm617_vm9 = vcmask 785408  }
  0x26   :  { %324 = vmatpush.msra.mxu3 %v271_v32  ;;  %v242_v42 = vld [vmem:[#allocation2 + $0x78] sm:$0xff]  ;;  %v239_v44 = vld [vmem:[#allocation2 + $0x60] sm:$0xff]  ;;  %v236_v45 = vld [vmem:[#allocation2 + $0x48] sm:$0xff]  ;;  %s4327_s29 = sld [smem:[#allocation21_spill]]  ;;  %vm756_vm13 = vcmask 130048  }
  0x27   :  { %v160_v1 = vld [vmem:[%s4322_s28] sm:$0xff]  ;;  %285 = vmatpush.msra.mxu2 %v266_v28  ;;  %v233_v51 = vld [vmem:[#allocation2 + $0x30] sm:$0xff]  ;;  %v268_v52 = vld [vmem:[#allocation2 + $0x148] sm:$0xff]  ;;  %s4328_s6 = sld [smem:[#allocation22_spill]] }
  0x28   :  { %v159_v2 = vld [vmem:[%s4323_s25 + $0x78] sm:$0xff]  ;;  %v158_v3 = vld [vmem:[%s4323_s25 + $0x70] sm:$0xff]  ;;  %164 = vperm.xlu0 %2886, %v160_v1   ;;  %v157_v4 = vld [vmem:[%s4323_s25 + $0x68] sm:$0xff]  ;;  %v2940_v29 = vpop.eup %2939  ;;  %325 = vmatpush.msra.mxu3 %v268_v52  ;;  %s4329_s1 = sld [smem:[#allocation23_spill]] }
  0x29   :  { %170 = vmatpush.msra.mxu0 %v159_v2  ;;  %v156_v5 = vld [vmem:[%s4323_s25 + $0x60] sm:$0xff]  ;;  %v155_v6 = vld [vmem:[%s4323_s25 + $0x58] sm:$0xff]  ;;  %v154_v7 = vld [vmem:[%s4323_s25 + $0x50] sm:$0xff]  ;;  %v199_v34 = vmul.f32 128.0, %v2940_v29  ;;  %286 = vmatpush.msra.mxu2 %v263_v30  ;;  %vm203_vm1 = vweird.f32 %v2940_v29  ;;  %s4330_s0 = sld [smem:[#allocation24_spill]] }
  0x2a   :  { %v153_v8 = vld [vmem:[%s4323_s25 + $0x48] sm:$0xff]  ;;  %v152_v9 = vld [vmem:[%s4323_s25 + $0x40] sm:$0xff]  ;;  %v151_v10 = vld [vmem:[%s4323_s25 + $0x38] sm:$0xff]  ;;  %s4332_s4 = sld [smem:[#allocation25_spill]] }
  0x2b   :  { %171 = vmatpush.msra.mxu0 %v158_v3  ;;  %v150_v11 = vld [vmem:[%s4323_s25 + $0x30] sm:$0xff]  ;;  %v149_v12 = vld [vmem:[%s4323_s25 + $0x28] sm:$0xff]  ;;  %v148_v13 = vld [vmem:[%s4323_s25 + $0x20] sm:$0xff]  ;;  %287 = vmatpush.msra.mxu2 %v260_v33  ;;  %v200_v37 = vsub.f32 1.0, %v199_v34 }
  0x2c   :  { %v147_v14 = vld [vmem:[%s4323_s25 + $0x18] sm:$0xff]  ;;  %v146_v15 = vld [vmem:[%s4323_s25 + $0x10] sm:$0xff]  ;;  %v145_v16 = vld [vmem:[%s4323_s25 + $0x8] sm:$0xff] }
  0x2d   :  { %172 = vmatpush.msra.mxu0 %v157_v4  ;;  %v144_v17 = vld [vmem:[%s4323_s25] sm:$0xff]  ;;  %288 = vmatpush.msra.mxu2 %v257_v35  ;;  %v201_v40 = vmul.f32 %v2940_v29, %v200_v37  ;;  %v230_v53 = vld [vmem:[#allocation2 + $0x18] sm:$0xff]  ;;  %v265_v54 = vld [vmem:[#allocation2 + $0x130] sm:$0xff] }
  0x2e   :  { %v169_v22 = vld [vmem:[%s4324_s8] sm:$0xff]  ;;  %326 = vmatpush.msra.mxu3 %v265_v54  ;;  %v273_v56 = vld [vmem:[#allocation2 + $0x170] sm:$0xff]  ;;  %v262_v57 = vld [vmem:[#allocation2 + $0x118] sm:$0xff]  ;;  %v3192_v54 = vmov -1e+30  }
  0x2f   :  { %173 = vmatpush.msra.mxu0 %v156_v5  ;;  %289 = vmatpush.msra.mxu2 %v254_v36  ;;  %v202_v43 = vadd.f32 %v2940_v29, %v201_v40  ;;  %v227_v55 = vld [vmem:[#allocation2] sm:$0xff]  ;;  %v270_v58 = vld [vmem:[#allocation2 + $0x158] sm:$0xff]  ;;  %v256_v61 = vld [vmem:[#allocation2 + $0xe8] sm:$0xff] }
  0x30   :  { %327 = vmatpush.msra.mxu3 %v262_v57  ;;  %v259_v59 = vld [vmem:[#allocation2 + $0x100] sm:$0xff]  ;;  %v264_v62 = vld [vmem:[#allocation2 + $0x128] sm:$0xff]  ;;  %v253_v63 = vld [vmem:[#allocation2 + $0xd0] sm:$0xff] }
  0x31   :  { %174 = vmatpush.msra.mxu0 %v155_v6  ;;  %290 = vmatpush.msra.mxu2 %v251_v38  ;;  %v3398_v46 = vsel %vm203_vm1, %v2940_v29, %v202_v43  ;;  %v267_v60 = vld [vmem:[#allocation2 + $0x140] sm:$0xff]  ;;  %v261_v0 = vld [vmem:[#allocation2 + $0x110] sm:$0xff]  ;;  %v250_v1 = vld [vmem:[#allocation2 + $0xb8] sm:$0xff] }
  0x32   :  { %328 = vmatpush.msra.mxu3 %v259_v59  ;;  %v258_v2 = vld [vmem:[#allocation2 + $0xf8] sm:$0xff]  ;;  %v247_v3 = vld [vmem:[#allocation2 + $0xa0] sm:$0xff]  ;;  %v244_v5 = vld [vmem:[#allocation2 + $0x88] sm:$0xff] }
  0x33   :  { %175 = vmatpush.msra.mxu0 %v154_v7  ;;  %291 = vmatpush.msra.mxu2 %v248_v39  ;;  %v255_v4 = vld [vmem:[#allocation2 + $0xe0] sm:$0xff]  ;;  %v252_v6 = vld [vmem:[#allocation2 + $0xc8] sm:$0xff]  ;;  %v241_v7 = vld [vmem:[#allocation2 + $0x70] sm:$0xff] }
  0x34   :  { %329 = vmatpush.msra.mxu3 %v256_v61  ;;  %v2917_v32 = vld [vmem:[%s4325_s19] ss:$0 sm:$0xff] }
  0x35   :  { %176 = vmatpush.msra.mxu0 %v153_v8  ;;  %292 = vmatpush.msra.mxu2 %v245_v41  ;;  %v249_v8 = vld [vmem:[#allocation2 + $0xb0] sm:$0xff]  ;;  %v2918_v35 = vld [vmem:[%s4326_s27] ss:$0 sm:$0xff] }
  0x36   :  { %330 = vmatpush.msra.mxu3 %v253_v63  ;;  %v275_v39 = vld [vmem:[%s4327_s29] ss:$2 sm:$0x7] }
  0x37   :  { %177 = vmatpush.msra.mxu0 %v152_v9  ;;  %293 = vmatpush.msra.mxu2 %v242_v42  ;;  %v238_v9 = vld [vmem:[#allocation2 + $0x58] sm:$0xff]  ;;  %v277_v40 = vperm.slane %v275_v39, 0  ;;  %v278_v41 = vperm.slane %v275_v39, 1  ;;  %v279_v42 = vperm.slane %v275_v39, 2 }
  0x38   :  { %331 = vmatpush.msra.mxu3 %v250_v1 }
  0x39   :  { %178 = vmatpush.msra.mxu0 %v151_v10  ;;  %294 = vmatpush.msra.mxu2 %v239_v44  ;;  %v246_v10 = vld [vmem:[#allocation2 + $0x98] sm:$0xff] }
  0x3a   :  { %332 = vmatpush.msra.mxu3 %v247_v3 }
  0x3b   :  { %179 = vmatpush.msra.mxu0 %v150_v11  ;;  %295 = vmatpush.msra.mxu2 %v236_v45  ;;  %v235_v11 = vld [vmem:[#allocation2 + $0x40] sm:$0xff] }
  0x3c   :  { %333 = vmatpush.msra.mxu3 %v244_v5 }
  0x3d   :  { %180 = vmatpush.msra.mxu0 %v149_v12  ;;  %296 = vmatpush.msra.mxu2 %v233_v51  ;;  %v243_v12 = vld [vmem:[#allocation2 + $0x80] sm:$0xff] }
  0x3e   :  { %334 = vmatpush.msra.mxu3 %v241_v7 }
  0x3f   :  { %181 = vmatpush.msra.mxu0 %v148_v13  ;;  %297 = vmatpush.msra.mxu2 %v230_v53  ;;  %v232_v13 = vld [vmem:[#allocation2 + $0x28] sm:$0xff]  ;;  %v191_v53 = vshrl.u32 %v161_v18, 7 }
  0x40   :  { %335 = vmatpush.msra.mxu3 %v238_v9 }
  0x41   :  { %182 = vmatpush.msra.mxu0 %v147_v14  ;;  %298 = vmatpush.msra.mxu2 %v227_v55  ;;  %v240_v14 = vld [vmem:[#allocation2 + $0x68] sm:$0xff]  ;;  %vm192_vm6 = vcmp.le.s32.totalorder %v3389_v19, %v191_v53  ;;  %v629_v53 = vld [vmem:[%s4328_s6 + $0x50] sm:$0xff] }
  0x42   :  { %336 = vmatpush.msra.mxu3 %v235_v11  ;;  %v3430_v55 = vsel %vm192_vm6, 0.0, %v3192_v54  ;;  %v628_v54 = vld [vmem:[%s4328_s6 + $0x48] sm:$0xff] }
  0x43   :  { %183 = vmatpush.msra.mxu0 %v146_v15  ;;  %303 = vmatpush.msrb.mxu2 %v273_v56  ;;  %v229_v15 = vld [vmem:[#allocation2 + $0x10] sm:$0xff] }
  0x44   :  { %337 = vmatpush.msra.mxu3 %v232_v13 }
  0x45   :  { %184 = vmatpush.msra.mxu0 %v145_v16  ;;  %304 = vmatpush.msrb.mxu2 %v270_v58  ;;  %v237_v16 = vld [vmem:[#allocation2 + $0x50] sm:$0xff] }
  0x46   :  { %338 = vmatpush.msra.mxu3 %v229_v15 }
  0x47   :  { %185 = vmatpush.msra.mxu0 %v144_v17  ;;  %305 = vmatpush.msrb.mxu2 %v267_v60  ;;  %v234_v17 = vld [vmem:[#allocation2 + $0x38] sm:$0xff] }
  0x49   :  { %306 = vmatpush.msrb.mxu2 %v264_v62 }
  0x4b   :  { %307 = vmatpush.msrb.mxu2 %v261_v0 }
  0x4d   :  { %308 = vmatpush.msrb.mxu2 %v258_v2 }
  0x4f   :  { %309 = vmatpush.msrb.mxu2 %v255_v4 }
  0x51   :  { %310 = vmatpush.msrb.mxu2 %v252_v6 }
  0x53   :  { %311 = vmatpush.msrb.mxu2 %v249_v8 }
  0x55   :  { %312 = vmatpush.msrb.mxu2 %v246_v10 }
  0x57   :  { %313 = vmatpush.msrb.mxu2 %v243_v12 }
  0x59   :  { %314 = vmatpush.msrb.mxu2 %v240_v14 }
  0x5b   :  { %315 = vmatpush.msrb.mxu2 %v237_v16 }
  0x5d   :  { %316 = vmatpush.msrb.mxu2 %v234_v17 }
  0x9a   :  { %v165_v20 = vpop.permute.xlu0 %164 }
  0x9b   :  { %vm166_vm0 = vcmp.eq.s32.totalorder %v165_v20, %v3389_v19  ;;  %v231_v20 = vld [vmem:[#allocation2 + $0x20] sm:$0xff] }
  0x9c   :  { %2727 = vmatmul.msk.f32.vlgmr.msra.gmra.mxu0 %vm166_vm0, %v3188_v21  ;;  %317 = vmatpush.msrb.mxu2 %v231_v20 }
 0x119   :  { %v187_v23 = vpop.f32.mrf.mxu0 }
 0x11a   :  { %v3395_v24 = vadd.f32 %v187_v23, %v169_v22  ;;  %v228_v23 = vld [vmem:[#allocation2 + $0x8] sm:$0xff] }
 0x11b   :  { %318 = vmatpush.msrb.mxu2 %v228_v23 }
 0x11c   :  { %196 = vadd.xlane.f32.xlu0 %v3395_v24 }
 0x18f   :  { %v197_v47 = vpop.xlane.xlu0 %196 }
 0x190   :  { %v205_v48 = vmul.f32 %v3398_v46, %v197_v47 }
 0x192   :  { %v3402_v49 = vsub.f32 %v3395_v24, %v205_v48 }
 0x194   :  { %v207_v50 = vmul.f32 %v3402_v49, %v3402_v49 }
 0x196   :  { %208 = vadd.xlane.f32.xlu1 %v207_v50 }
 0x209   :  { %v209_v21 = vpop.xlane.xlu1 %208 }
 0x20a   :  { %v210_v22 = vmul.f32 %v209_v21, %v3398_v46 }
 0x20c   :  { %v211_v25 = vadd.f32 1e-05, %v210_v22 }
 0x20e   :  { %2941 = vrsqrt.f32 %v211_v25  ;;  %vm218_vm3 = vweird.f32 %v211_v25 }
 0x214   :  { %v2942_v26 = vpop.eup %2941 }
 0x215   :  { %v213_v27 = vmul.f32 %v2942_v26, %v211_v25  ;;  %vm219_vm2 = vweird.f32 %v2942_v26 }
 0x216   :  { %vm220_vm4 = vmor %vm218_vm3, %vm219_vm2 }
 0x217   :  { %v214_v28 = vmul.f32 %v2942_v26, %v213_v27 }
 0x219   :  { %v215_v29 = vmul.f32 0.5, %v214_v28 }
 0x21b   :  { %v216_v30 = vsub.f32 1.5, %v215_v29 }
 0x21d   :  { %v217_v31 = vmul.f32 %v2942_v26, %v216_v30 }
 0x21f   :  { %v221_v33 = vsel %vm220_vm4, %v2942_v26, %v217_v31 }
 0x220   :  { %v222_v34 = vmul.f32 %v221_v33, %v3402_v49 }
 0x222   :  { %v224_v36 = vmul.f32 %v2917_v32, %v222_v34 }
 0x224   :  { %v226_v37 = vadd.f32 %v2918_v35, %v224_v36 }
 0x226   :  { %299 = vmatmul.f32.vlgmr.msra.gmra.mxu2 %v226_v37  ;;  %339 = vmatmul.f32.vlgmr.msra.gmra.mxu3 %v226_v37 }
 0x22e   :  { %319 = vmatmul.f32.vlgmr.msrb.gmra.mxu2 %v226_v37 }
 0x2a9   :  { %v300_v38 = vpop.f32.mrf.mxu2  ;;  %v340_v43 = vpop.f32.mrf.mxu3 }
 0x2aa   :  { %v301_v44 = vadd.f32 %v300_v38, %v277_v40  ;;  %v3417_v48 = vadd.f32 %v340_v43, %v279_v42 }
 0x2ac   :  { %v343_v49 = vmul.f32 0.17677669, %v301_v44 }
 0x2b1   :  { %v320_v45 = vpop.f32.mrf.mxu2 }
 0x2b2   :  { %v321_v47 = vadd.f32 %v320_v45, %v278_v41 }
 0x2b4   :  { %408 = vrot.lane.b32.xlu2 %v321_v47, %s3190_s2  ;;  %2728 = vmatpush.xpose.msk.msrb.mxu3 %vm344_vm5, %v321_v47 }
 0x2b7   :  { %2729 = vmatmul.msk.f32.vlgmr.msrb.gmra.mxu3 %vm344_vm5, %v343_v49 }
 0x2b8   :  { %401 = vmatpush.msra.mxu3 %v3417_v48 }
 0x2bc   :  { %539 = vrot.lane.b32.xlu2 %v321_v47, %s3191_s30 }
 0x2c4   :  { %537 = vrot.lane.b32.xlu2 %v343_v49, %s3191_s30 }
 0x30e   :  { %v409_v50 = vpop.permute.xlu2 %408 }
 0x30f   :  { %2731 = vmatpush.xpose.msk.msrb.mxu3 %vm344_vm5, %v409_v50  ;;  %v632_v50 = vld [vmem:[%s4328_s6 + $0x68] sm:$0xff] }
 0x316   :  { %v540_v51 = vpop.permute.xlu2 %539 }
 0x317   :  { %2737 = vmatpush.xpose.msk.msra.mxu2 %vm344_vm5, %v540_v51  ;;  %v631_v51 = vld [vmem:[%s4328_s6 + $0x60] sm:$0xff] }
 0x31e   :  { %v538_v52 = vpop.permute.xlu2 %537 }
 0x31f   :  { %2738 = vmatmul.msk.f32.vlgmr.msra.gmra.mxu2 %vm344_vm5, %v538_v52  ;;  %v630_v52 = vld [vmem:[%s4328_s6 + $0x58] sm:$0xff] }
 0x33a   :  { %v368_v56 = vpop.f32.mrf.mxu3 }
 0x33b   :  { %v369_v57 = vadd.f32 %v368_v56, %v3430_v55  ;;  %v627_v56 = vld [vmem:[%s4328_s6 + $0x40] sm:$0xff] }
 0x33d   :  { %v372_v58 = vsel %vm371_vm7, %v369_v57, -inf }
 0x33e   :  { %373 = vmax.xlane.f32.xlu1 %v372_v58  ;;  %v625_v58 = vld [vmem:[%s4328_s6 + $0x30] sm:$0xff] }
 0x357   :  { %406 = vrot.lane.b32.xlu1 %v343_v49, %s3190_s2 }
 0x35f   :  { %474 = vrot.lane.b32.xlu1 %v321_v47, %s4308_s3 }
 0x3a2   :  { %v562_v59 = vpop.f32.mrf.mxu2 }
 0x3a3   :  { %v563_v18 = vadd.f32 %v562_v59, %v3430_v55  ;;  %v624_v59 = vld [vmem:[%s4328_s6 + $0x28] sm:$0xff] }
 0x3a5   :  { %v565_v19 = vsel %vm371_vm7, %v563_v18, -inf }
 0x3a6   :  { %566 = vmax.xlane.f32.xlu0 %v565_v19  ;;  %v622_v19 = vld [vmem:[%s4328_s6 + $0x18] sm:$0xff] }
 0x3b1   :  { %v374_v60 = vpop.xlane.xlu1 %373 }
 0x3b2   :  { %v375_v61 = vsub.f32 %v369_v57, %v374_v60  ;;  %v626_v57 = vld [vmem:[%s4328_s6 + $0x38] sm:$0xff]  ;;  %v621_v60 = vld [vmem:[%s4328_s6 + $0x10] sm:$0xff] }
 0x3b4   :  { %v376_v62 = vmul.f32 1.442695, %v375_v61  ;;  %v620_v61 = vld [vmem:[%s4328_s6 + $0x8] sm:$0xff] }
 0x3b6   :  { %2943 = vpow2.f32 %v376_v62  ;;  %v619_v62 = vld [vmem:[%s4328_s6] sm:$0xff] }
 0x3bc   :  { %v2944_v63 = vpop.eup %2943 }
 0x3bd   :  { %v378_v0 = vsel %vm371_vm7, %v2944_v63, 0.0 }
 0x3be   :  { %379 = vadd.xlane.f32.xlu2 %v378_v0 }
 0x3c9   :  { %v407_v1 = vpop.permute.xlu1 %406 }
 0x3d1   :  { %v475_v2 = vpop.permute.xlu1 %474 }
 0x3d2   :  { %2734 = vmatpush.xpose.msk.msrb.mxu0 %vm344_vm5, %v475_v2 }
 0x3d6   :  { %472 = vrot.lane.b32.xlu2 %v343_v49, %s4308_s3  ;;  %v633_v49 = vld [vmem:[%s4328_s6 + $0x70] sm:$0xff] }
 0x419   :  { %v567_v3 = vpop.xlane.xlu0 %566 }
 0x41a   :  { %v568_v4 = vsub.f32 %v563_v18, %v567_v3  ;;  %v623_v18 = vld [vmem:[%s4328_s6 + $0x20] sm:$0xff] }
 0x41c   :  { %v569_v5 = vmul.f32 1.442695, %v568_v4 }
 0x41e   :  { %2945 = vpow2.f32 %v569_v5  ;;  %v2919_v5 = vld [vmem:[%s4329_s1] ss:$0 sm:$0xff] }
 0x424   :  { %v2946_v6 = vpop.eup %2945 }
 0x425   :  { %v571_v7 = vsel %vm371_vm7, %v2946_v6, 0.0 }
 0x426   :  { %572 = vadd.xlane.f32.xlu0 %v571_v7 }
 0x431   :  { %v380_v8 = vpop.xlane.xlu2 %379 }
 0x432   :  { %2947 = vrcp.f32 %v380_v8 }
 0x438   :  { %v2948_v9 = vpop.eup %2947 }
 0x439   :  { %v382_v10 = vmul.f32 %v2948_v9, %v2944_v63  ;;  %v473_v11 = vpop.permute.xlu2 %472  ;;  %v699_v9 = vld [vmem:[#allocation5 + $0x78] sm:$0xff] }
 0x43a   :  { %446 = vrot.lane.b32.xlu0 %v3417_v48, %s3190_s2  ;;  %2735 = vmatmul.msk.f32.vlgmr.msrb.gmra.mxu0 %vm344_vm5, %v473_v11 }
 0x43b   :  { %2730 = vmatmul.msk.f32.vlgmr.msra.gmra.mxu3 %vm371_vm7, %v382_v10  ;;  %v698_v10 = vld [vmem:[#allocation5 + $0x70] sm:$0xff] }
 0x443   :  { %2732 = vmatmul.msk.f32.vlgmr.msrb.gmra.mxu3 %vm344_vm5, %v407_v1 }
 0x499   :  { %v573_v12 = vpop.xlane.xlu0 %572 }
 0x4ac   :  { %v447_v13 = vpop.permute.xlu0 %446 }
 0x4ad   :  { %467 = vmatpush.msra.mxu3 %v447_v13 }
 0x4b7   :  { %v497_v14 = vpop.f32.mrf.mxu0 }
 0x4b8   :  { %v498_v15 = vadd.f32 %v497_v14, %v3430_v55 }
 0x4ba   :  { %v500_v16 = vsel %vm371_vm7, %v498_v15, -inf }
 0x4bb   :  { %501 = vmax.xlane.f32.xlu2 %v500_v16  ;;  %v696_v16 = vld [vmem:[#allocation5 + $0x60] sm:$0xff] }
 0x4be   :  { %v3449_v17 = vpop.f32.mrf.mxu3 }
 0x4c6   :  { %v431_v20 = vpop.f32.mrf.mxu3 }
 0x4c7   :  { %v432_v21 = vadd.f32 %v431_v20, %v3430_v55  ;;  %v693_v20 = vld [vmem:[#allocation5 + $0x48] sm:$0xff] }
 0x4c9   :  { %v434_v22 = vsel %vm371_vm7, %v432_v21, -inf }
 0x4ca   :  { %435 = vmax.xlane.f32.xlu1 %v434_v22  ;;  %v691_v22 = vld [vmem:[#allocation5 + $0x38] sm:$0xff] }
 0x4d3   :  { %511 = vrot.lane.b32.xlu2 %v3417_v48, %s4308_s3 }
 0x52e   :  { %v502_v23 = vpop.xlane.xlu2 %501 }
 0x52f   :  { %v503_v25 = vsub.f32 %v498_v15, %v502_v23  ;;  %v697_v15 = vld [vmem:[#allocation5 + $0x68] sm:$0xff]  ;;  %v690_v23 = vld [vmem:[#allocation5 + $0x30] sm:$0xff] }
 0x531   :  { %v504_v26 = vmul.f32 1.442695, %v503_v25  ;;  %v689_v25 = vld [vmem:[#allocation5 + $0x28] sm:$0xff] }
 0x533   :  { %2949 = vpow2.f32 %v504_v26  ;;  %v688_v26 = vld [vmem:[#allocation5 + $0x20] sm:$0xff] }
 0x536   :  { %v512_v27 = vpop.permute.xlu2 %511 }
 0x537   :  { %532 = vmatpush.msra.mxu1 %v512_v27  ;;  %v687_v27 = vld [vmem:[#allocation5 + $0x18] sm:$0xff] }
 0x539   :  { %v2950_v28 = vpop.eup %2949  ;;  %702 = vmatpush.msrb.mxu1 %v699_v9 }
 0x53a   :  { %v506_v29 = vsel %vm371_vm7, %v2950_v28, 0.0 }
 0x53b   :  { %507 = vadd.xlane.f32.xlu1 %v506_v29  ;;  %703 = vmatpush.msrb.mxu1 %v698_v10  ;;  %v685_v29 = vld [vmem:[#allocation5 + $0x8] sm:$0xff] }
 0x53d   :  { %v436_v30 = vpop.xlane.xlu1 %435  ;;  %704 = vmatpush.msrb.mxu1 %v697_v15 }
 0x53e   :  { %v437_v31 = vsub.f32 %v432_v21, %v436_v30  ;;  %v692_v21 = vld [vmem:[#allocation5 + $0x40] sm:$0xff] }
 0x53f   :  { %705 = vmatpush.msrb.mxu1 %v696_v16  ;;  %v684_v30 = vld [vmem:[#allocation5] sm:$0xff] }
 0x540   :  { %v438_v32 = vmul.f32 1.442695, %v437_v31  ;;  %v723_v31 = vld [vmem:[%s4296_s21 + $0x8] sm:$0xff] }
 0x541   :  { %2740 = vmatpush.xpose.msk.msrb.mxu2 %vm344_vm5, %v723_v31 }
 0x542   :  { %2951 = vpow2.f32 %v438_v32 }
 0x548   :  { %v2952_v33 = vpop.eup %2951 }
 0x549   :  { %v440_v34 = vsel %vm371_vm7, %v2952_v33, 0.0 }
 0x54a   :  { %441 = vadd.xlane.f32.xlu0 %v440_v34  ;;  %v722_v34 = vld [vmem:[%s4296_s21] sm:$0xff] }
 0x54b   :  { %2741 = vmatpush.xpose.msk.msrb.mxu2 %vm344_vm5, %v722_v34 }
 0x55e   :  { %576 = vrot.lane.b32.xlu0 %v3417_v48, %s3191_s30  ;;  %v634_v48 = vld [vmem:[%s4328_s6 + $0x78] sm:$0xff] }
 0x55f   :  { %637 = vmatpush.msra.mxu0 %v634_v48 }
 0x561   :  { %638 = vmatpush.msra.mxu0 %v633_v49 }
 0x563   :  { %639 = vmatpush.msra.mxu0 %v632_v50  ;;  %v2922_v50 = vld [vmem:[%s4287_s12] ss:$0 sm:$0xff] }
 0x565   :  { %640 = vmatpush.msra.mxu0 %v631_v51 }
 0x567   :  { %641 = vmatpush.msra.mxu0 %v630_v52 }
 0x569   :  { %642 = vmatpush.msra.mxu0 %v629_v53 }
 0x56b   :  { %643 = vmatpush.msra.mxu0 %v628_v54 }
 0x56d   :  { %644 = vmatpush.msra.mxu0 %v627_v56 }
 0x56f   :  { %645 = vmatpush.msra.mxu0 %v626_v57 }
 0x571   :  { %646 = vmatpush.msra.mxu0 %v625_v58 }
 0x573   :  { %647 = vmatpush.msra.mxu0 %v624_v59 }
 0x575   :  { %648 = vmatpush.msra.mxu0 %v623_v18 }
 0x577   :  { %649 = vmatpush.msra.mxu0 %v622_v19 }
 0x579   :  { %650 = vmatpush.msra.mxu0 %v621_v60 }
 0x57b   :  { %651 = vmatpush.msra.mxu0 %v620_v61 }
 0x57d   :  { %652 = vmatpush.msra.mxu0 %v619_v62 }
 0x5ae   :  { %v508_v35 = vpop.xlane.xlu1 %507 }
 0x5af   :  { %2953 = vrcp.f32 %v508_v35 }
 0x5b5   :  { %v2954_v36 = vpop.eup %2953 }
 0x5b6   :  { %v510_v37 = vmul.f32 %v2954_v36, %v2950_v28  ;;  %v686_v28 = vld [vmem:[#allocation5 + $0x10] sm:$0xff] }
 0x5b8   :  { %2736 = vmatmul.msk.f32.vlgmr.msra.gmra.mxu1 %vm371_vm7, %v510_v37 }
 0x5bd   :  { %v442_v38 = vpop.xlane.xlu0 %441 }
 0x5be   :  { %2955 = vrcp.f32 %v442_v38 }
 0x5bf   :  { %2957 = vrcp.f32 %v573_v12 }
 0x5c4   :  { %v2956_v39 = vpop.eup %2955 }
 0x5c5   :  { %v444_v40 = vmul.f32 %v2956_v39, %v2952_v33  ;;  %v2958_v41 = vpop.eup %2957 }
 0x5c6   :  { %v575_v42 = vmul.f32 %v2958_v41, %v2946_v6 }
 0x5c7   :  { %2733 = vmatmul.msk.f32.vlgmr.msra.gmra.mxu3 %vm371_vm7, %v444_v40 }
 0x5d0   :  { %v577_v43 = vpop.permute.xlu0 %576 }
 0x5d1   :  { %597 = vmatpush.msrb.mxu3 %v577_v43 }
 0x5d2   :  { %2739 = vmatmul.msk.f32.vlgmr.msrb.gmra.mxu3 %vm371_vm7, %v575_v42  ;;  %v2920_v42 = vld [vmem:[%s4330_s0] ss:$0 sm:$0xff] }
 0x635   :  { %v534_v44 = vpop.f32.mrf.mxu1 }
 0x636   :  { %607 = vrot.lane.b32.xlu0 %v534_v44, %s4308_s3 }
 0x64a   :  { %v469_v45 = vpop.f32.mrf.mxu3 }
 0x64b   :  { %603 = vrot.lane.b32.xlu1 %v469_v45, %s3191_s30  ;;  %v2921_v45 = vld [vmem:[%s4285_s10] ss:$0 sm:$0xff] }
 0x653   :  { %795 = vrot.lane.b32.xlu1 %v723_v31, %s3190_s2 }
 0x655   :  { %v599_v47 = vpop.f32.mrf.mxu3 }
 0x656   :  { %611 = vrot.lane.b32.xlu0 %v599_v47, %s3190_s2 }
 0x65b   :  { %793 = vrot.lane.b32.xlu1 %v722_v34, %s3190_s2 }
 0x663   :  { %869 = vrot.lane.b32.xlu1 %v723_v31, %s4308_s3 }
 0x66b   :  { %867 = vrot.lane.b32.xlu1 %v722_v34, %s4308_s3 }
 0x6a8   :  { %v608_v63 = vpop.permute.xlu0 %607 }
 0x6bd   :  { %v604_v0 = vpop.permute.xlu1 %603 }
 0x6be   :  { %v614_v1 = vsel %vm344_vm5, %v3449_v17, %v604_v0  ;;  %v695_v17 = vld [vmem:[#allocation5 + $0x58] sm:$0xff] }
 0x6bf   :  { %v616_v3 = vsel %vm615_vm8, %v614_v1, %v608_v63  ;;  %706 = vmatpush.msrb.mxu1 %v695_v17 }
 0x6c5   :  { %v796_v49 = vpop.permute.xlu1 %795 }
 0x6c6   :  { %2744 = vmatpush.xpose.msk.msra.mxu2 %vm344_vm5, %v796_v49 }
 0x6c8   :  { %v612_v2 = vpop.permute.xlu0 %611 }
 0x6c9   :  { %v618_v4 = vsel %vm617_vm9, %v616_v3, %v612_v2 }
 0x6ca   :  { %653 = vmatmul.f32.vlgmr.msra.gmra.mxu0 %v618_v4 }
 0x6cd   :  { %v794_v51 = vpop.permute.xlu1 %793 }
 0x6ce   :  { %2745 = vmatpush.xpose.msk.msra.mxu2 %vm344_vm5, %v794_v51 }
 0x6d5   :  { %v870_v56 = vpop.permute.xlu1 %869 }
 0x6dd   :  { %v868_v57 = vpop.permute.xlu1 %867 }
 0x747   :  { %v654_v6 = vpop.f32.mrf.mxu0 }
 0x748   :  { %v655_v7 = vadd.f32 %v2919_v5, %v654_v6 }
 0x74a   :  { %v3521_v8 = vadd.f32 %v655_v7, %v3395_v24  ;;  %v694_v24 = vld [vmem:[#allocation5 + $0x50] sm:$0xff] }
 0x74b   :  { %707 = vmatpush.msrb.mxu1 %v694_v24 }
 0x74c   :  { %660 = vadd.xlane.f32.xlu0 %v3521_v8 }
 0x74d   :  { %708 = vmatpush.msrb.mxu1 %v693_v20 }
 0x74f   :  { %709 = vmatpush.msrb.mxu1 %v692_v21 }
 0x751   :  { %710 = vmatpush.msrb.mxu1 %v691_v22 }
 0x753   :  { %711 = vmatpush.msrb.mxu1 %v690_v23 }
 0x755   :  { %712 = vmatpush.msrb.mxu1 %v689_v25 }
 0x757   :  { %713 = vmatpush.msrb.mxu1 %v688_v26 }
 0x759   :  { %714 = vmatpush.msrb.mxu1 %v687_v27 }
 0x75b   :  { %715 = vmatpush.msrb.mxu1 %v686_v28 }
 0x75d   :  { %716 = vmatpush.msrb.mxu1 %v685_v29 }
 0x75f   :  { %717 = vmatpush.msrb.mxu1 %v684_v30 }
 0x7bf   :  { %v661_v11 = vpop.xlane.xlu0 %660 }
 0x7c0   :  { %v662_v12 = vmul.f32 %v661_v11, %v3398_v46  ;;  %v724_v11 = vld [vmem:[%s4297_s22] sm:$0xff] }
 0x7c2   :  { %v663_v13 = vsub.f32 %v3521_v8, %v662_v12  ;;  %v725_v12 = vld [vmem:[%s4297_s22 + $0x8] sm:$0xff] }
 0x7c3   :  { %785 = vmatpush.msra.mxu3 %v725_v12 }
 0x7c4   :  { %v664_v14 = vmul.f32 %v663_v13, %v663_v13 }
 0x7c5   :  { %786 = vmatpush.msra.mxu3 %v724_v11 }
 0x7c6   :  { %665 = vadd.xlane.f32.xlu2 %v664_v14 }
 0x7de   :  { %941 = vrot.lane.b32.xlu2 %v723_v31, %s3191_s30 }
 0x839   :  { %v666_v32 = vpop.xlane.xlu2 %665 }
 0x83a   :  { %v667_v33 = vmul.f32 %v666_v32, %v3398_v46 }
 0x83c   :  { %v668_v35 = vadd.f32 1e-05, %v667_v33 }
 0x83e   :  { %2959 = vrsqrt.f32 %v668_v35  ;;  %vm675_vm11 = vweird.f32 %v668_v35 }
 0x841   :  { %v942_v58 = vpop.permute.xlu2 %941 }
 0x844   :  { %v2960_v36 = vpop.eup %2959 }
 0x845   :  { %v670_v37 = vmul.f32 %v2960_v36, %v668_v35  ;;  %vm676_vm10 = vweird.f32 %v2960_v36 }
 0x846   :  { %vm677_vm12 = vmor %vm675_vm11, %vm676_vm10 }
 0x847   :  { %v671_v38 = vmul.f32 %v2960_v36, %v670_v37 }
 0x849   :  { %v672_v39 = vmul.f32 0.5, %v671_v38 }
 0x84b   :  { %v673_v40 = vsub.f32 1.5, %v672_v39 }
 0x84d   :  { %v674_v41 = vmul.f32 %v2960_v36, %v673_v40 }
 0x84f   :  { %v678_v43 = vsel %vm677_vm12, %v2960_v36, %v674_v41 }
 0x850   :  { %v679_v44 = vmul.f32 %v678_v43, %v663_v13  ;;  %v2887_v13 = vpack.i.bf16 %v724_v11, %v725_v12 }
 0x852   :  { %v681_v47 = vmul.f32 %v2920_v42, %v679_v44 }
 0x854   :  { %v683_v48 = vadd.f32 %v2921_v45, %v681_v47 }
 0x856   :  { %718 = vmatmul.f32.vlgmr.msrb.gmra.mxu1 %v683_v48 }
 0x8d3   :  { %v719_v52 = vpop.f32.mrf.mxu1 }
 0x8d4   :  { %v720_v53 = vadd.f32 %v2922_v50, %v719_v52 }
 0x8d6   :  { %v726_v54 = vmul.f32 0.17677669, %v720_v53 }
 0x8d8   :  { %865 = vrot.lane.b32.xlu0 %v726_v54, %s4308_s3  ;;  %791 = vrot.lane.b32.xlu1 %v726_v54, %s3190_s2 }
 0x8d9   :  { %2742 = vmatmul.msk.f32.vlgmr.msrb.gmra.mxu2 %vm344_vm5, %v726_v54 }
 0x8da   :  { %2748 = vmatpush.xpose.msk.msrb.mxu2 %vm344_vm5, %v870_v56  ;;  %v1039_v56 = vld [vmem:[#allocation7 + $0x78] sm:$0xff] }
 0x8db   :  { %1042 = vmatpush.msrb.mxu0 %v1039_v56  ;;  %v1123_v56 = vld [vmem:[%s4292_s17 + $0x110] sm:$0xff] }
 0x8de   :  { %2749 = vmatpush.xpose.msk.msrb.mxu2 %vm344_vm5, %v868_v57  ;;  %v1038_v57 = vld [vmem:[#allocation7 + $0x70] sm:$0xff] }
 0x8df   :  { %1043 = vmatpush.msrb.mxu0 %v1038_v57  ;;  %v1124_v57 = vld [vmem:[%s4292_s17 + $0x118] sm:$0xff] }
 0x8e0   :  { %939 = vrot.lane.b32.xlu1 %v722_v34, %s3191_s30 }
 0x8e8   :  { %937 = vrot.lane.b32.xlu1 %v726_v54, %s3191_s30 }
 0x94a   :  { %v792_v59 = vpop.permute.xlu1 %791  ;;  %v866_v18 = vpop.permute.xlu0 %865 }
 0x94b   :  { %2746 = vmatmul.msk.f32.vlgmr.msra.gmra.mxu2 %vm344_vm5, %v792_v59 }
 0x94c   :  { %2752 = vmatpush.xpose.msk.msra.mxu2 %vm344_vm5, %v942_v58  ;;  %v1037_v58 = vld [vmem:[#allocation7 + $0x68] sm:$0xff] }
 0x94d   :  { %1044 = vmatpush.msrb.mxu0 %v1037_v58  ;;  %v1117_v58 = vld [vmem:[%s4292_s17 + $0xe0] sm:$0xff] }
 0x952   :  { %v940_v19 = vpop.permute.xlu1 %939 }
 0x953   :  { %2750 = vmatmul.msk.f32.vlgmr.msrb.gmra.mxu2 %vm344_vm5, %v866_v18  ;;  %v1036_v18 = vld [vmem:[#allocation7 + $0x60] sm:$0xff] }
 0x954   :  { %2753 = vmatpush.xpose.msk.msra.mxu2 %vm344_vm5, %v940_v19  ;;  %v1035_v19 = vld [vmem:[#allocation7 + $0x58] sm:$0xff]  ;;  %1045 = vmatpush.msrb.mxu0 %v1036_v18  ;;  %v1119_v18 = vld [vmem:[%s4292_s17 + $0xf0] sm:$0xff] }
 0x956   :  { %1046 = vmatpush.msrb.mxu0 %v1035_v19  ;;  %v1120_v19 = vld [vmem:[%s4292_s17 + $0xf8] sm:$0xff] }
 0x95a   :  { %v938_v60 = vpop.permute.xlu1 %937 }
 0x95b   :  { %2754 = vmatmul.msk.f32.vlgmr.msra.gmra.mxu2 %vm344_vm5, %v938_v60  ;;  %v1034_v60 = vld [vmem:[#allocation7 + $0x50] sm:$0xff] }
 0x95c   :  { %v753_v61 = vpop.f32.mrf.mxu2  ;;  %1047 = vmatpush.msrb.mxu0 %v1034_v60  ;;  %v1113_v60 = vld [vmem:[%s4292_s17 + $0xc0] sm:$0xff] }
 0x95d   :  { %v757_v62 = vsel %vm756_vm13, %v753_v61, -inf }
 0x95e   :  { %758 = vmax.xlane.f32.xlu0 %v757_v62  ;;  %v1032_v62 = vld [vmem:[#allocation7 + $0x40] sm:$0xff] }
 0x9ce   :  { %v820_v63 = vpop.f32.mrf.mxu2 }
 0x9cf   :  { %v823_v0 = vsel %vm756_vm13, %v820_v63, -inf }
 0x9d0   :  { %824 = vmax.xlane.f32.xlu1 %v823_v0 }
 0x9d1   :  { %v759_v1 = vpop.xlane.xlu0 %758 }
 0x9d2   :  { %v760_v2 = vsub.f32 %v753_v61, %v759_v1  ;;  %v1033_v61 = vld [vmem:[#allocation7 + $0x48] sm:$0xff]  ;;  %v1030_v1 = vld [vmem:[#allocation7 + $0x30] sm:$0xff] }
 0x9d3   :  { %1048 = vmatpush.msrb.mxu0 %v1033_v61  ;;  %v1114_v61 = vld [vmem:[%s4292_s17 + $0xc8] sm:$0xff] }
 0x9d4   :  { %v761_v3 = vmul.f32 1.442695, %v760_v2  ;;  %v1029_v2 = vld [vmem:[#allocation7 + $0x28] sm:$0xff] }
 0x9d5   :  { %1049 = vmatpush.msrb.mxu0 %v1032_v62  ;;  %v1115_v62 = vld [vmem:[%s4292_s17 + $0xd0] sm:$0xff] }
 0x9d6   :  { %2961 = vpow2.f32 %v761_v3  ;;  %v894_v4 = vpop.f32.mrf.mxu2  ;;  %v1028_v3 = vld [vmem:[#allocation7 + $0x20] sm:$0xff] }
 0x9d7   :  { %v897_v5 = vsel %vm756_vm13, %v894_v4, -inf }
 0x9d8   :  { %898 = vmax.xlane.f32.xlu2 %v897_v5  ;;  %v1026_v5 = vld [vmem:[#allocation7 + $0x10] sm:$0xff] }
 0x9dc   :  { %v2962_v6 = vpop.eup %2961 }
 0x9dd   :  { %v763_v7 = vsel %vm756_vm13, %v2962_v6, 0.0 }
 0x9de   :  { %764 = vadd.xlane.f32.xlu1 %v763_v7  ;;  %v966_v9 = vpop.f32.mrf.mxu2  ;;  %v1024_v7 = vld [vmem:[#allocation7] sm:$0xff] }
 0x9df   :  { %v969_v10 = vsel %vm756_vm13, %v966_v9, -inf }
 0x9e0   :  { %970 = vmax.xlane.f32.xlu0 %v969_v10 }
 0x9f4   :  { %2888 = vrot.lane.b32.xlu0 %v2887_v13, %s3190_s2 }
 0xa43   :  { %v825_v14 = vpop.xlane.xlu1 %824 }
 0xa44   :  { %v826_v15 = vsub.f32 %v820_v63, %v825_v14  ;;  %v1031_v63 = vld [vmem:[#allocation7 + $0x38] sm:$0xff] }
 0xa45   :  { %1050 = vmatpush.msrb.mxu0 %v1031_v63  ;;  %v1116_v63 = vld [vmem:[%s4292_s17 + $0xd8] sm:$0xff] }
 0xa46   :  { %v827_v16 = vmul.f32 1.442695, %v826_v15  ;;  %v2923_v15 = vld [vmem:[%s4289_s14] ss:$0 sm:$0xff] }
 0xa47   :  { %1051 = vmatpush.msrb.mxu0 %v1030_v1  ;;  %v1110_v1 = vld [vmem:[%s4292_s17 + $0xa8] sm:$0xff] }
 0xa48   :  { %2963 = vpow2.f32 %v827_v16 }
 0xa49   :  { %1052 = vmatpush.msrb.mxu0 %v1029_v2  ;;  %v1111_v2 = vld [vmem:[%s4292_s17 + $0xb0] sm:$0xff] }
 0xa4b   :  { %v899_v17 = vpop.xlane.xlu2 %898  ;;  %1053 = vmatpush.msrb.mxu0 %v1028_v3  ;;  %v1112_v3 = vld [vmem:[%s4292_s17 + $0xb8] sm:$0xff] }
 0xa4c   :  { %v900_v24 = vsub.f32 %v894_v4, %v899_v17  ;;  %v1027_v4 = vld [vmem:[#allocation7 + $0x18] sm:$0xff] }
 0xa4d   :  { %1054 = vmatpush.msrb.mxu0 %v1027_v4  ;;  %v1105_v4 = vld [vmem:[%s4292_s17 + $0x80] sm:$0xff] }
 0xa4e   :  { %v2964_v20 = vpop.eup %2963  ;;  %v901_v21 = vmul.f32 1.442695, %v900_v24 }
 0xa4f   :  { %v829_v22 = vsel %vm756_vm13, %v2964_v20, 0.0  ;;  %1055 = vmatpush.msrb.mxu0 %v1026_v5  ;;  %v1106_v5 = vld [vmem:[%s4292_s17 + $0x88] sm:$0xff] }
 0xa50   :  { %2965 = vpow2.f32 %v901_v21  ;;  %830 = vadd.xlane.f32.xlu2 %v829_v22  ;;  %v1150_v21 = vld [vmem:[%s4292_s17 + $0x1e8] sm:$0xff]  ;;  %v1151_v22 = vld [vmem:[%s4292_s17 + $0x1f0] sm:$0xff] }
 0xa51   :  { %v765_v23 = vpop.xlane.xlu1 %764  ;;  %1183 = vmatpush.msrb.mxu2 %v1150_v21  ;;  %v1095_v21 = vld [vmem:[%s4292_s17 + $0x30] sm:$0xff] }
 0xa52   :  { %2967 = vrcp.f32 %v765_v23  ;;  %v1145_v23 = vld [vmem:[%s4292_s17 + $0x1c0] sm:$0xff] }
 0xa53   :  { %v971_v25 = vpop.xlane.xlu0 %970 }
 0xa54   :  { %v972_v26 = vsub.f32 %v966_v9, %v971_v25  ;;  %v1146_v25 = vld [vmem:[%s4292_s17 + $0x1c8] sm:$0xff] }
 0xa55   :  { %1184 = vmatpush.msrb.mxu2 %v1146_v25  ;;  %v1091_v25 = vld [vmem:[%s4292_s17 + $0x10] sm:$0xff] }
 0xa56   :  { %v2966_v27 = vpop.eup %2965  ;;  %v973_v28 = vmul.f32 1.442695, %v972_v26  ;;  %v1147_v26 = vld [vmem:[%s4292_s17 + $0x1d0] sm:$0xff] }
 0xa57   :  { %v903_v29 = vsel %vm756_vm13, %v2966_v27, 0.0 }
 0xa58   :  { %v2968_v30 = vpop.eup %2967  ;;  %2969 = vpow2.f32 %v973_v28  ;;  %904 = vadd.xlane.f32.xlu1 %v903_v29 }
 0xa59   :  { %v767_v31 = vmul.f32 %v2968_v30, %v2962_v6  ;;  %v1025_v6 = vld [vmem:[#allocation7 + $0x8] sm:$0xff] }
 0xa5a   :  { %1056 = vmatpush.msrb.mxu0 %v1025_v6  ;;  %v1107_v6 = vld [vmem:[%s4292_s17 + $0x90] sm:$0xff] }
 0xa5b   :  { %2743 = vmatmul.msk.f32.vlgmr.msra.gmra.mxu3 %vm756_vm13, %v767_v31 }
 0xa5c   :  { %1057 = vmatpush.msrb.mxu0 %v1024_v7  ;;  %v1108_v7 = vld [vmem:[%s4292_s17 + $0x98] sm:$0xff] }
 0xa5e   :  { %v2970_v32 = vpop.eup %2969 }
 0xa5f   :  { %v975_v33 = vsel %vm756_vm13, %v2970_v32, 0.0 }
 0xa60   :  { %976 = vadd.xlane.f32.xlu1 %v975_v33  ;;  %v1142_v33 = vld [vmem:[%s4292_s17 + $0x1a8] sm:$0xff] }
 0xa61   :  { %1185 = vmatpush.msrb.mxu2 %v1142_v33 }
 0xa66   :  { %v2889_v34 = vpop.permute.xlu0 %2888 }
 0xa67   :  { %v2890_v35 = vunpack.i.l.bf16 %v2889_v34  ;;  %v2891_v36 = vunpack.i.h.bf16 %v2889_v34  ;;  %v1143_v34 = vld [vmem:[%s4292_s17 + $0x1b0] sm:$0xff] }
 0xa68   :  { %2893 = vrot.lane.b32.xlu2 %v2887_v13, %s4308_s3 }
 0xa69   :  { %859 = vmatpush.msrb.mxu3 %v2890_v35  ;;  %v1144_v35 = vld [vmem:[%s4292_s17 + $0x1b8] sm:$0xff] }
 0xa6b   :  { %860 = vmatpush.msrb.mxu3 %v2891_v36  ;;  %v1137_v36 = vld [vmem:[%s4292_s17 + $0x180] sm:$0xff] }
 0xa79   :  { %2898 = vrot.lane.b32.xlu1 %v2887_v13, %s3191_s30 }
 0xac3   :  { %v831_v37 = vpop.xlane.xlu2 %830 }
 0xac4   :  { %2971 = vrcp.f32 %v831_v37  ;;  %v1138_v37 = vld [vmem:[%s4292_s17 + $0x188] sm:$0xff] }
 0xac5   :  { %1186 = vmatpush.msrb.mxu2 %v1138_v37 }
 0xaca   :  { %v2972_v38 = vpop.eup %2971 }
 0xacb   :  { %v833_v39 = vmul.f32 %v2972_v38, %v2964_v20  ;;  %v905_v40 = vpop.xlane.xlu1 %904  ;;  %v2894_v41 = vpop.permute.xlu2 %2893  ;;  %v1149_v20 = vld [vmem:[%s4292_s17 + $0x1e0] sm:$0xff]  ;;  %v1139_v38 = vld [vmem:[%s4292_s17 + $0x190] sm:$0xff] }
 0xacc   :  { %2973 = vrcp.f32 %v905_v40  ;;  %v2896_v42 = vunpack.i.h.bf16 %v2894_v41  ;;  %v2895_v43 = vunpack.i.l.bf16 %v2894_v41  ;;  %1163 = vmatpush.msra.mxu1 %v1149_v20  ;;  %v1133_v40 = vld [vmem:[%s4292_s17 + $0x160] sm:$0xff]  ;;  %v1134_v41 = vld [vmem:[%s4292_s17 + $0x168] sm:$0xff] }
 0xacd   :  { %2747 = vmatmul.msk.f32.vlgmr.msrb.gmra.mxu3 %vm756_vm13, %v833_v39  ;;  %v1140_v39 = vld [vmem:[%s4292_s17 + $0x198] sm:$0xff]  ;;  %1187 = vmatpush.msrb.mxu2 %v1134_v41  ;;  %v1094_v20 = vld [vmem:[%s4292_s17 + $0x28] sm:$0xff] }
 0xace   :  { %931 = vmatpush.msra.mxu3 %v2895_v43  ;;  %1164 = vmatpush.msra.mxu1 %v1145_v23  ;;  %v1136_v43 = vld [vmem:[%s4292_s17 + $0x178] sm:$0xff]  ;;  %v1090_v23 = vld [vmem:[%s4292_s17 + $0x8] sm:$0xff] }
 0xad0   :  { %932 = vmatpush.msra.mxu3 %v2896_v42  ;;  %v1135_v42 = vld [vmem:[%s4292_s17 + $0x170] sm:$0xff] }
 0xad2   :  { %v2974_v44 = vpop.eup %2973 }
 0xad3   :  { %v907_v45 = vmul.f32 %v2974_v44, %v2966_v27  ;;  %v977_v47 = vpop.xlane.xlu1 %976  ;;  %v1148_v27 = vld [vmem:[%s4292_s17 + $0x1d8] sm:$0xff]  ;;  %v1129_v44 = vld [vmem:[%s4292_s17 + $0x140] sm:$0xff] }
 0xad4   :  { %2975 = vrcp.f32 %v977_v47  ;;  %v1131_v47 = vld [vmem:[%s4292_s17 + $0x150] sm:$0xff] }
 0xad5   :  { %2751 = vmatmul.msk.f32.vlgmr.msra.gmra.mxu3 %vm756_vm13, %v907_v45  ;;  %v1130_v45 = vld [vmem:[%s4292_s17 + $0x148] sm:$0xff] }
 0xad6   :  { %1188 = vmatpush.msrb.mxu2 %v1130_v45 }
 0xada   :  { %v2976_v49 = vpop.eup %2975 }
 0xadb   :  { %v979_v52 = vmul.f32 %v2976_v49, %v2970_v32  ;;  %v1141_v32 = vld [vmem:[%s4292_s17 + $0x1a0] sm:$0xff] }
 0xadc   :  { %1165 = vmatpush.msra.mxu1 %v1141_v32  ;;  %v1125_v49 = vld [vmem:[%s4292_s17 + $0x120] sm:$0xff]  ;;  %v1292_v32 = vld [vmem:[#allocation8 + $0x68] sm:$0xff] }
 0xade   :  { %v788_v53 = vpop.f32.mrf.mxu3  ;;  %1166 = vmatpush.msra.mxu1 %v1137_v36  ;;  %v1326_v36 = vld [vmem:[#allocation8 + $0x178] sm:$0xff] }
 0xae0   :  { %1167 = vmatpush.msra.mxu1 %v1133_v40 }
 0xae2   :  { %1168 = vmatpush.msra.mxu1 %v1129_v44 }
 0xae4   :  { %1169 = vmatpush.msra.mxu1 %v1125_v49 }
 0xaeb   :  { %v2899_v48 = vpop.permute.xlu1 %2898 }
 0xaec   :  { %v2900_v50 = vunpack.i.l.bf16 %v2899_v48  ;;  %v2901_v51 = vunpack.i.h.bf16 %v2899_v48  ;;  %v1132_v48 = vld [vmem:[%s4292_s17 + $0x158] sm:$0xff] }
 0xaee   :  { %1003 = vmatpush.msrb.mxu3 %v2900_v50  ;;  %v1126_v50 = vld [vmem:[%s4292_s17 + $0x128] sm:$0xff] }
 0xaef   :  { %1189 = vmatpush.msrb.mxu2 %v1126_v50 }
 0xaf0   :  { %1004 = vmatpush.msrb.mxu3 %v2901_v51  ;;  %v1127_v51 = vld [vmem:[%s4292_s17 + $0x130] sm:$0xff] }
 0xaf1   :  { %2755 = vmatmul.msk.f32.vlgmr.msrb.gmra.mxu3 %vm756_vm13, %v979_v52  ;;  %v1128_v52 = vld [vmem:[%s4292_s17 + $0x138] sm:$0xff] }
 0xaf2   :  { %1203 = vmatpush.msra.mxu3 %v1151_v22  ;;  %v1096_v22 = vld [vmem:[%s4292_s17 + $0x38] sm:$0xff] }
 0xaf4   :  { %1204 = vmatpush.msra.mxu3 %v1147_v26  ;;  %v1092_v26 = vld [vmem:[%s4292_s17 + $0x18] sm:$0xff] }
 0xaf6   :  { %1205 = vmatpush.msra.mxu3 %v1143_v34  ;;  %v1340_v34 = vld [vmem:[#allocation8 + $0x1e8] sm:$0xff] }
 0xaf8   :  { %1206 = vmatpush.msra.mxu3 %v1139_v38  ;;  %v1291_v38 = vld [vmem:[#allocation8 + $0x60] sm:$0xff] }
 0xafa   :  { %1207 = vmatpush.msra.mxu3 %v1135_v42 }
 0xafc   :  { %1208 = vmatpush.msra.mxu3 %v1131_v47 }
 0xafe   :  { %1209 = vmatpush.msra.mxu3 %v1127_v51  ;;  %v2925_v51 = vld [vmem:[%s4291_s16] ss:$0 sm:$0xff] }
 0xb00   :  { %1210 = vmatpush.msra.mxu3 %v1123_v56  ;;  %v1309_v56 = vld [vmem:[#allocation8 + $0xf0] sm:$0xff] }
 0xb02   :  { %1211 = vmatpush.msra.mxu3 %v1119_v18  ;;  %v1324_v18 = vld [vmem:[#allocation8 + $0x168] sm:$0xff] }
 0xb04   :  { %1212 = vmatpush.msra.mxu3 %v1115_v62  ;;  %v1323_v62 = vld [vmem:[#allocation8 + $0x160] sm:$0xff] }
 0xb06   :  { %1213 = vmatpush.msra.mxu3 %v1111_v2  ;;  %v1322_v2 = vld [vmem:[#allocation8 + $0x158] sm:$0xff] }
 0xb08   :  { %1214 = vmatpush.msra.mxu3 %v1107_v6  ;;  %v1321_v6 = vld [vmem:[#allocation8 + $0x150] sm:$0xff] }
 0xb50   :  { %v862_v54 = vpop.f32.mrf.mxu3 }
 0xb51   :  { %1010 = vrot.lane.b32.xlu0 %v862_v54, %s3191_s30  ;;  %v1122_v54 = vld [vmem:[%s4292_s17 + $0x108] sm:$0xff] }
 0xb52   :  { %1190 = vmatpush.msrb.mxu2 %v1122_v54  ;;  %v1290_v54 = vld [vmem:[#allocation8 + $0x58] sm:$0xff] }
 0xb58   :  { %v934_v59 = vpop.f32.mrf.mxu3 }
 0xb59   :  { %1014 = vrot.lane.b32.xlu0 %v934_v59, %s4308_s3  ;;  %v1118_v59 = vld [vmem:[%s4292_s17 + $0xe8] sm:$0xff] }
 0xb5a   :  { %1191 = vmatpush.msrb.mxu2 %v1118_v59  ;;  %v1289_v59 = vld [vmem:[#allocation8 + $0x50] sm:$0xff] }
 0xb5c   :  { %1192 = vmatpush.msrb.mxu2 %v1114_v61  ;;  %v1307_v61 = vld [vmem:[#allocation8 + $0xe0] sm:$0xff] }
 0xb5e   :  { %1193 = vmatpush.msrb.mxu2 %v1110_v1  ;;  %v1306_v1 = vld [vmem:[#allocation8 + $0xd8] sm:$0xff] }
 0xb60   :  { %1194 = vmatpush.msrb.mxu2 %v1106_v5  ;;  %v1305_v5 = vld [vmem:[#allocation8 + $0xd0] sm:$0xff] }
 0xb74   :  { %v1006_v0 = vpop.f32.mrf.mxu3 }
 0xb75   :  { %1018 = vrot.lane.b32.xlu2 %v1006_v0, %s3190_s2  ;;  %v1109_v0 = vld [vmem:[%s4292_s17 + $0xa0] sm:$0xff] }
 0xbc3   :  { %v1011_v9 = vpop.permute.xlu0 %1010 }
 0xbc4   :  { %v1021_v11 = vsel %vm344_vm5, %v788_v53, %v1011_v9  ;;  %v1121_v53 = vld [vmem:[%s4292_s17 + $0x100] sm:$0xff] }
 0xbc5   :  { %1170 = vmatpush.msra.mxu1 %v1121_v53  ;;  %v1101_v9 = vld [vmem:[%s4292_s17 + $0x60] sm:$0xff] }
 0xbc7   :  { %1171 = vmatpush.msra.mxu1 %v1117_v58  ;;  %v1338_v58 = vld [vmem:[#allocation8 + $0x1d8] sm:$0xff] }
 0xbc9   :  { %1172 = vmatpush.msra.mxu1 %v1113_v60  ;;  %v1288_v60 = vld [vmem:[#allocation8 + $0x48] sm:$0xff] }
 0xbcb   :  { %v1015_v10 = vpop.permute.xlu0 %1014  ;;  %1173 = vmatpush.msra.mxu1 %v1109_v0  ;;  %v1287_v0 = vld [vmem:[#allocation8 + $0x40] sm:$0xff] }
 0xbcc   :  { %v1022_v12 = vsel %vm615_vm8, %v1021_v11, %v1015_v10  ;;  %v1102_v10 = vld [vmem:[%s4292_s17 + $0x68] sm:$0xff]  ;;  %v1103_v11 = vld [vmem:[%s4292_s17 + $0x70] sm:$0xff] }
 0xbcd   :  { %1174 = vmatpush.msra.mxu1 %v1105_v4  ;;  %1195 = vmatpush.msrb.mxu2 %v1102_v10  ;;  %v1286_v4 = vld [vmem:[#allocation8 + $0x38] sm:$0xff]  ;;  %v1304_v10 = vld [vmem:[#allocation8 + $0xc8] sm:$0xff] }
 0xbce   :  { %1215 = vmatpush.msra.mxu3 %v1103_v11  ;;  %v1320_v11 = vld [vmem:[#allocation8 + $0x148] sm:$0xff] }
 0xbcf   :  { %v1019_v13 = vpop.permute.xlu2 %1018  ;;  %1175 = vmatpush.msra.mxu1 %v1101_v9  ;;  %v1285_v9 = vld [vmem:[#allocation8 + $0x30] sm:$0xff] }
 0xbd0   :  { %v1023_v14 = vsel %vm617_vm9, %v1022_v12, %v1019_v13  ;;  %v1104_v12 = vld [vmem:[%s4292_s17 + $0x78] sm:$0xff]  ;;  %v1097_v13 = vld [vmem:[%s4292_s17 + $0x40] sm:$0xff] }
 0xbd1   :  { %1058 = vmatmul.f32.vlgmr.msrb.gmra.mxu0 %v1023_v14  ;;  %v1098_v14 = vld [vmem:[%s4292_s17 + $0x48] sm:$0xff]  ;;  %1176 = vmatpush.msra.mxu1 %v1097_v13 }
 0xbd2   :  { %1196 = vmatpush.msrb.mxu2 %v1098_v14  ;;  %v1284_v13 = vld [vmem:[#allocation8 + $0x28] sm:$0xff]  ;;  %v1303_v14 = vld [vmem:[#allocation8 + $0xc0] sm:$0xff] }
 0xbd4   :  { %1197 = vmatpush.msrb.mxu2 %v1094_v20  ;;  %v1302_v20 = vld [vmem:[#allocation8 + $0xb8] sm:$0xff] }
 0xbd6   :  { %1198 = vmatpush.msrb.mxu2 %v1090_v23  ;;  %v1301_v23 = vld [vmem:[#allocation8 + $0xb0] sm:$0xff] }
 0xc4e   :  { %v1059_v16 = vpop.f32.mrf.mxu0 }
 0xc4f   :  { %v1060_v17 = vadd.f32 %v2923_v15, %v1059_v16  ;;  %v1099_v15 = vld [vmem:[%s4292_s17 + $0x50] sm:$0xff]  ;;  %v1100_v16 = vld [vmem:[%s4292_s17 + $0x58] sm:$0xff] }
 0xc50   :  { %1216 = vmatpush.msra.mxu3 %v1099_v15  ;;  %v1319_v15 = vld [vmem:[#allocation8 + $0x140] sm:$0xff] }
 0xc51   :  { %v3594_v24 = vadd.f32 %v1060_v17, %v3521_v8  ;;  %v1152_v8 = vld [vmem:[%s4292_s17 + $0x1f8] sm:$0xff]  ;;  %v1093_v17 = vld [vmem:[%s4292_s17 + $0x20] sm:$0xff] }
 0xc52   :  { %1223 = vmatpush.msra.mxu0 %v1152_v8  ;;  %v1089_v8 = vld [vmem:[%s4292_s17] sm:$0xff]  ;;  %1177 = vmatpush.msra.mxu1 %v1093_v17 }
 0xc53   :  { %1065 = vadd.xlane.f32.xlu0 %v3594_v24  ;;  %1217 = vmatpush.msra.mxu3 %v1095_v21  ;;  %v1283_v17 = vld [vmem:[#allocation8 + $0x20] sm:$0xff]  ;;  %v1318_v21 = vld [vmem:[#allocation8 + $0x138] sm:$0xff] }
 0xc54   :  { %1224 = vmatpush.msra.mxu0 %v1148_v27  ;;  %1178 = vmatpush.msra.mxu1 %v1089_v8  ;;  %v1294_v27 = vld [vmem:[#allocation8 + $0x78] sm:$0xff] }
 0xc55   :  { %1218 = vmatpush.msra.mxu3 %v1091_v25  ;;  %v1282_v8 = vld [vmem:[#allocation8 + $0x18] sm:$0xff]  ;;  %v1317_v25 = vld [vmem:[#allocation8 + $0x130] sm:$0xff] }
 0xc56   :  { %1225 = vmatpush.msra.mxu0 %v1144_v35  ;;  %1345 = vmatpush.msrb.mxu1 %v1294_v27  ;;  %v1310_v35 = vld [vmem:[#allocation8 + $0xf8] sm:$0xff]  ;;  %v1281_v27 = vld [vmem:[#allocation8 + $0x10] sm:$0xff] }
 0xc57   :  { %1365 = vmatpush.msra.mxu2 %v1310_v35  ;;  %1385 = vmatpush.msrb.mxu3 %v1326_v36  ;;  %v1328_v35 = vld [vmem:[#allocation8 + $0x188] sm:$0xff]  ;;  %v1279_v36 = vld [vmem:[#allocation8] sm:$0xff] }
 0xc58   :  { %1226 = vmatpush.msra.mxu0 %v1140_v39  ;;  %v1339_v39 = vld [vmem:[#allocation8 + $0x1e0] sm:$0xff] }
 0xc59   :  { %1366 = vmatpush.msra.mxu2 %v1309_v56 }
 0xc5a   :  { %1227 = vmatpush.msra.mxu0 %v1136_v43 }
 0xc5c   :  { %1228 = vmatpush.msra.mxu0 %v1132_v48  ;;  %v2924_v48 = vld [vmem:[%s4290_s15] ss:$0 sm:$0xff] }
 0xc5e   :  { %1229 = vmatpush.msra.mxu0 %v1128_v52 }
 0xc60   :  { %1230 = vmatpush.msra.mxu0 %v1124_v57  ;;  %v1325_v57 = vld [vmem:[#allocation8 + $0x170] sm:$0xff] }
 0xc61   :  { %1386 = vmatpush.msrb.mxu3 %v1325_v57 }
 0xc62   :  { %1231 = vmatpush.msra.mxu0 %v1120_v19  ;;  %v1337_v19 = vld [vmem:[#allocation8 + $0x1d0] sm:$0xff] }
 0xc63   :  { %1387 = vmatpush.msrb.mxu3 %v1324_v18 }
 0xc64   :  { %1232 = vmatpush.msra.mxu0 %v1116_v63  ;;  %v1336_v63 = vld [vmem:[#allocation8 + $0x1c8] sm:$0xff] }
 0xc65   :  { %1388 = vmatpush.msrb.mxu3 %v1323_v62 }
 0xc66   :  { %1233 = vmatpush.msra.mxu0 %v1112_v3  ;;  %v1335_v3 = vld [vmem:[#allocation8 + $0x1c0] sm:$0xff] }
 0xc67   :  { %1389 = vmatpush.msrb.mxu3 %v1322_v2 }
 0xc68   :  { %1234 = vmatpush.msra.mxu0 %v1108_v7  ;;  %v1334_v7 = vld [vmem:[#allocation8 + $0x1b8] sm:$0xff] }
 0xc69   :  { %1390 = vmatpush.msrb.mxu3 %v1321_v6 }
 0xc6a   :  { %1235 = vmatpush.msra.mxu0 %v1104_v12  ;;  %v1333_v12 = vld [vmem:[#allocation8 + $0x1b0] sm:$0xff] }
 0xc6b   :  { %1391 = vmatpush.msrb.mxu3 %v1320_v11 }
 0xc6c   :  { %1236 = vmatpush.msra.mxu0 %v1100_v16  ;;  %v1332_v16 = vld [vmem:[#allocation8 + $0x1a8] sm:$0xff] }
 0xc6d   :  { %1392 = vmatpush.msrb.mxu3 %v1319_v15 }
 0xc6e   :  { %1237 = vmatpush.msra.mxu0 %v1096_v22  ;;  %v1331_v22 = vld [vmem:[#allocation8 + $0x1a0] sm:$0xff] }
 0xc6f   :  { %1393 = vmatpush.msrb.mxu3 %v1318_v21 }
 0xc70   :  { %1238 = vmatpush.msra.mxu0 %v1092_v26  ;;  %v1330_v26 = vld [vmem:[#allocation8 + $0x198] sm:$0xff] }
 0xc71   :  { %1394 = vmatpush.msrb.mxu3 %v1317_v25 }
 0xcc6   :  { %v1066_v28 = vpop.xlane.xlu0 %1065 }
 0xcc7   :  { %v1067_v29 = vmul.f32 %v1066_v28, %v3398_v46  ;;  %v1342_v28 = vld [vmem:[#allocation8 + $0x1f8] sm:$0xff] }
 0xcc8   :  { %1405 = vmatpush.msrb.mxu0 %v1342_v28  ;;  %v1300_v28 = vld [vmem:[#allocation8 + $0xa8] sm:$0xff] }
 0xcc9   :  { %v3623_v30 = vsub.f32 %v3594_v24, %v1067_v29  ;;  %v1293_v29 = vld [vmem:[#allocation8 + $0x70] sm:$0xff] }
 0xcca   :  { %1346 = vmatpush.msrb.mxu1 %v1293_v29  ;;  %v1316_v29 = vld [vmem:[#allocation8 + $0x128] sm:$0xff] }
 0xccb   :  { %v1069_v31 = vmul.f32 %v3623_v30, %v3623_v30  ;;  %1395 = vmatpush.msrb.mxu3 %v1316_v29 }
 0xccc   :  { %1347 = vmatpush.msrb.mxu1 %v1292_v32  ;;  %v1280_v32 = vld [vmem:[#allocation8 + $0x8] sm:$0xff] }
 0xccd   :  { %1070 = vadd.xlane.f32.xlu2 %v1069_v31  ;;  %v1341_v31 = vld [vmem:[#allocation8 + $0x1f0] sm:$0xff] }
 0xcce   :  { %1406 = vmatpush.msrb.mxu0 %v1341_v31  ;;  %1348 = vmatpush.msrb.mxu1 %v1291_v38  ;;  %v1329_v31 = vld [vmem:[#allocation8 + $0x190] sm:$0xff]  ;;  %v1314_v38 = vld [vmem:[#allocation8 + $0x118] sm:$0xff] }
 0xcd0   :  { %1407 = vmatpush.msrb.mxu0 %v1340_v34  ;;  %1349 = vmatpush.msrb.mxu1 %v1290_v54  ;;  %v1315_v34 = vld [vmem:[#allocation8 + $0x120] sm:$0xff] }
 0xcd1   :  { %1396 = vmatpush.msrb.mxu3 %v1315_v34  ;;  %v2926_v34 = vld [vmem:[%s4295_s20] ss:$0 sm:$0xff] }
 0xcd2   :  { %1408 = vmatpush.msrb.mxu0 %v1339_v39  ;;  %1350 = vmatpush.msrb.mxu1 %v1289_v59  ;;  %v1327_v39 = vld [vmem:[#allocation8 + $0x180] sm:$0xff] }
 0xcd3   :  { %1397 = vmatpush.msrb.mxu3 %v1314_v38 }
 0xcd4   :  { %1409 = vmatpush.msrb.mxu0 %v1338_v58  ;;  %1351 = vmatpush.msrb.mxu1 %v1288_v60 }
 0xcd6   :  { %1410 = vmatpush.msrb.mxu0 %v1337_v19  ;;  %1352 = vmatpush.msrb.mxu1 %v1287_v0 }
 0xcd8   :  { %1411 = vmatpush.msrb.mxu0 %v1336_v63  ;;  %1353 = vmatpush.msrb.mxu1 %v1286_v4 }
 0xcda   :  { %1412 = vmatpush.msrb.mxu0 %v1335_v3  ;;  %1354 = vmatpush.msrb.mxu1 %v1285_v9 }
 0xcdc   :  { %1413 = vmatpush.msrb.mxu0 %v1334_v7  ;;  %1355 = vmatpush.msrb.mxu1 %v1284_v13 }
 0xcde   :  { %1414 = vmatpush.msrb.mxu0 %v1333_v12  ;;  %1356 = vmatpush.msrb.mxu1 %v1283_v17 }
 0xce0   :  { %1415 = vmatpush.msrb.mxu0 %v1332_v16  ;;  %1357 = vmatpush.msrb.mxu1 %v1282_v8 }
 0xce2   :  { %1416 = vmatpush.msrb.mxu0 %v1331_v22  ;;  %1358 = vmatpush.msrb.mxu1 %v1281_v27 }
 0xce4   :  { %1417 = vmatpush.msrb.mxu0 %v1330_v26  ;;  %1359 = vmatpush.msrb.mxu1 %v1280_v32 }
 0xce6   :  { %1418 = vmatpush.msrb.mxu0 %v1329_v31  ;;  %1360 = vmatpush.msrb.mxu1 %v1279_v36 }
 0xce8   :  { %1419 = vmatpush.msrb.mxu0 %v1328_v35 }
 0xcea   :  { %1420 = vmatpush.msrb.mxu0 %v1327_v39 }
 0xd40   :  { %v1071_v33 = vpop.xlane.xlu2 %1070 }
 0xd41   :  { %v1072_v37 = vmul.f32 %v1071_v33, %v3398_v46  ;;  %v1299_v33 = vld [vmem:[#allocation8 + $0xa0] sm:$0xff] }
 0xd43   :  { %v1073_v40 = vadd.f32 1e-05, %v1072_v37  ;;  %v1298_v37 = vld [vmem:[#allocation8 + $0x98] sm:$0xff] }
 0xd45   :  { %2977 = vrsqrt.f32 %v1073_v40  ;;  %vm1080_vm15 = vweird.f32 %v1073_v40 }
 0xd4b   :  { %v2978_v41 = vpop.eup %2977 }
 0xd4c   :  { %v1075_v42 = vmul.f32 %v2978_v41, %v1073_v40  ;;  %vm1081_vm14 = vweird.f32 %v2978_v41  ;;  %v1297_v40 = vld [vmem:[#allocation8 + $0x90] sm:$0xff] }
 0xd4d   :  { %vm1082_vm0 = vmor %vm1080_vm15, %vm1081_vm14 }
 0xd4e   :  { %v1076_v43 = vmul.f32 %v2978_v41, %v1075_v42  ;;  %v1296_v42 = vld [vmem:[#allocation8 + $0x88] sm:$0xff] }
 0xd50   :  { %v1077_v44 = vmul.f32 0.5, %v1076_v43  ;;  %v1153_v43 = vld [vmem:[%s4293_s18] ss:$2 sm:$0xf] }
 0xd51   :  { %v1156_v56 = vperm.slane %v1153_v43, 1  ;;  %v1157_v58 = vperm.slane %v1153_v43, 2 }
 0xd52   :  { %v1078_v45 = vsub.f32 1.5, %v1077_v44  ;;  %v1312_v44 = vld [vmem:[#allocation8 + $0x108] sm:$0xff] }
 0xd54   :  { %v1079_v47 = vmul.f32 %v2978_v41, %v1078_v45  ;;  %v1295_v45 = vld [vmem:[#allocation8 + $0x80] sm:$0xff] }
 0xd56   :  { %v1083_v49 = vsel %vm1082_vm0, %v2978_v41, %v1079_v47  ;;  %v1313_v41 = vld [vmem:[#allocation8 + $0x110] sm:$0xff]  ;;  %v1311_v47 = vld [vmem:[#allocation8 + $0x100] sm:$0xff] }
 0xd57   :  { %v1084_v50 = vmul.f32 %v1083_v49, %v3623_v30  ;;  %v1308_v30 = vld [vmem:[#allocation8 + $0xe8] sm:$0xff]  ;;  %1398 = vmatpush.msrb.mxu3 %v1313_v41  ;;  %v1158_v49 = vperm.slane %v1153_v43, 3 }
 0xd58   :  { %1367 = vmatpush.msra.mxu2 %v1308_v30 }
 0xd59   :  { %v1086_v52 = vmul.f32 %v2924_v48, %v1084_v50  ;;  %v1155_v48 = vperm.slane %v1153_v43, 0  ;;  %1399 = vmatpush.msrb.mxu3 %v1312_v44  ;;  %v1498_v44 = vld [vmem:[#allocation2 + $0x2e8] sm:$0xff] }
 0xd5a   :  { %1368 = vmatpush.msra.mxu2 %v1307_v61 }
 0xd5b   :  { %v1088_v53 = vadd.f32 %v2925_v51, %v1086_v52  ;;  %1400 = vmatpush.msrb.mxu3 %v1311_v47  ;;  %v1500_v47 = vld [vmem:[#allocation2 + $0x2f8] sm:$0xff] }
 0xd5c   :  { %1369 = vmatpush.msra.mxu2 %v1306_v1 }
 0xd5d   :  { %1179 = vmatmul.f32.vlgmr.msra.gmra.mxu1 %v1088_v53  ;;  %1199 = vmatmul.f32.vlgmr.msrb.gmra.mxu2 %v1088_v53 }
 0xd5e   :  { %1219 = vmatmul.f32.vlgmr.msra.gmra.mxu3 %v1088_v53  ;;  %1239 = vmatmul.f32.vlgmr.msra.gmra.mxu0 %v1088_v53 }
 0xd5f   :  { %1370 = vmatpush.msra.mxu2 %v1305_v5  ;;  %1510 = vmatpush.msra.mxu1 %v1498_v44  ;;  %v2927_v44 = vld [vmem:[%s4325_s19 + $0x1] ss:$0 sm:$0xff]  ;;  %s4331_s19 = smov 64  }
 0xd60   :  { %1550 = vmatpush.msra.mxu3 %v1500_v47 }
 0xd61   :  { %1371 = vmatpush.msra.mxu2 %v1304_v10 }
 0xd63   :  { %1372 = vmatpush.msra.mxu2 %v1303_v14 }
 0xd65   :  { %1373 = vmatpush.msra.mxu2 %v1302_v20 }
 0xd67   :  { %1374 = vmatpush.msra.mxu2 %v1301_v23 }
 0xd69   :  { %1375 = vmatpush.msra.mxu2 %v1300_v28 }
 0xd6b   :  { %1376 = vmatpush.msra.mxu2 %v1299_v33 }
 0xd6d   :  { %1377 = vmatpush.msra.mxu2 %v1298_v37 }
 0xd6f   :  { %1378 = vmatpush.msra.mxu2 %v1297_v40 }
 0xd71   :  { %1379 = vmatpush.msra.mxu2 %v1296_v42 }
 0xd73   :  { %1380 = vmatpush.msra.mxu2 %v1295_v45  ;;  %v1499_v45 = vld [vmem:[#allocation2 + $0x2f0] sm:$0xff] }
 0xd75   :  { %1530 = vmatpush.msrb.mxu2 %v1499_v45 }
 0xdda   :  { %v1180_v50 = vpop.f32.mrf.mxu1 }
 0xddb   :  { %v1181_v51 = vadd.f32 %v1180_v50, %v1155_v48  ;;  %v1240_v52 = vpop.f32.mrf.mxu0  ;;  %v1495_v48 = vld [vmem:[#allocation2 + $0x2d0] sm:$0xff]  ;;  %v1497_v50 = vld [vmem:[#allocation2 + $0x2e0] sm:$0xff] }
 0xddc   :  { %v1241_v53 = vadd.f32 %v1240_v52, %v1158_v49  ;;  %v1496_v49 = vld [vmem:[#allocation2 + $0x2d8] sm:$0xff]  ;;  %1511 = vmatpush.msra.mxu1 %v1495_v48  ;;  %1551 = vmatpush.msra.mxu3 %v1497_v50  ;;  %v2928_v48 = vld [vmem:[%s4326_s27 + $0x1] ss:$0 sm:$0xff] }
 0xddd   :  { %v1247_v54 = vmul.f32 0.044715, %v1181_v51  ;;  %v1243_v17 = vmul.f32 0.5, %v1181_v51  ;;  %1531 = vmatpush.msrb.mxu2 %v1496_v49 }
 0xdde   :  { %v1250_v57 = vmul.f32 0.044715, %v1241_v53  ;;  %v1246_v21 = vmul.f32 0.5, %v1241_v53 }
 0xddf   :  { %v1251_v59 = vmul.f32 %v1247_v54, %v1181_v51  ;;  %v1492_v54 = vld [vmem:[#allocation2 + $0x2b8] sm:$0xff] }
 0xde0   :  { %v1254_v30 = vmul.f32 %v1250_v57, %v1241_v53  ;;  %v1200_v18 = vpop.f32.mrf.mxu2  ;;  %v1494_v57 = vld [vmem:[#allocation2 + $0x2c8] sm:$0xff]  ;;  %1512 = vmatpush.msra.mxu1 %v1492_v54 }
 0xde1   :  { %v1255_v19 = vmul.f32 %v1251_v59, %v1181_v51  ;;  %v1201_v60 = vadd.f32 %v1200_v18, %v1156_v56  ;;  %v1220_v61 = vpop.f32.mrf.mxu3  ;;  %v1493_v56 = vld [vmem:[#allocation2 + $0x2c0] sm:$0xff]  ;;  %1552 = vmatpush.msra.mxu3 %v1494_v57  ;;  %v1490_v59 = vld [vmem:[#allocation2 + $0x2a8] sm:$0xff] }
 0xde2   :  { %v1258_v62 = vmul.f32 %v1254_v30, %v1241_v53  ;;  %v1221_v63 = vadd.f32 %v1220_v61, %v1157_v58  ;;  %1532 = vmatpush.msrb.mxu2 %v1493_v56  ;;  %v1489_v58 = vld [vmem:[#allocation2 + $0x2a0] sm:$0xff]  ;;  %v1491_v30 = vld [vmem:[#allocation2 + $0x2b0] sm:$0xff]  ;;  %v1486_v18 = vld [vmem:[#allocation2 + $0x288] sm:$0xff] }
 0xde3   :  { %v1248_v0 = vmul.f32 0.044715, %v1201_v60  ;;  %v1259_v1 = vadd.f32 %v1255_v19, %v1181_v51  ;;  %v1244_v27 = vmul.f32 0.5, %v1201_v60  ;;  %1513 = vmatpush.msra.mxu1 %v1489_v58  ;;  %1553 = vmatpush.msra.mxu3 %v1491_v30  ;;  %v1487_v19 = vld [vmem:[#allocation2 + $0x290] sm:$0xff] }
 0xde4   :  { %v1249_v2 = vmul.f32 0.044715, %v1221_v63  ;;  %v1262_v3 = vadd.f32 %v1258_v62, %v1241_v53  ;;  %v1245_v29 = vmul.f32 0.5, %v1221_v63  ;;  %1533 = vmatpush.msrb.mxu2 %v1490_v59  ;;  %v1483_v61 = vld [vmem:[#allocation2 + $0x270] sm:$0xff]  ;;  %v1484_v62 = vld [vmem:[#allocation2 + $0x278] sm:$0xff] }
 0xde5   :  { %v1252_v4 = vmul.f32 %v1248_v0, %v1201_v60  ;;  %v1263_v5 = vmul.f32 0.7978846, %v1259_v1  ;;  %1514 = vmatpush.msra.mxu1 %v1486_v18  ;;  %v1480_v0 = vld [vmem:[#allocation2 + $0x258] sm:$0xff]  ;;  %v1481_v1 = vld [vmem:[#allocation2 + $0x260] sm:$0xff] }
 0xde6   :  { %v1253_v6 = vmul.f32 %v1249_v2, %v1221_v63  ;;  %v1266_v7 = vmul.f32 0.7978846, %v1262_v3  ;;  %1534 = vmatpush.msrb.mxu2 %v1487_v19  ;;  %v1482_v2 = vld [vmem:[#allocation2 + $0x268] sm:$0xff]  ;;  %v1477_v3 = vld [vmem:[#allocation2 + $0x240] sm:$0xff] }
 0xde7   :  { %v1256_v9 = vmul.f32 %v1252_v4, %v1201_v60  ;;  %2979 = vtanh.f32 %v1263_v5  ;;  %1515 = vmatpush.msra.mxu1 %v1483_v61  ;;  %v1478_v4 = vld [vmem:[#allocation2 + $0x248] sm:$0xff]  ;;  %v1479_v5 = vld [vmem:[#allocation2 + $0x250] sm:$0xff] }
 0xde8   :  { %v1257_v10 = vmul.f32 %v1253_v6, %v1221_v63  ;;  %2981 = vtanh.f32 %v1266_v7  ;;  %1535 = vmatpush.msrb.mxu2 %v1484_v62  ;;  %v1474_v6 = vld [vmem:[#allocation2 + $0x228] sm:$0xff]  ;;  %v1475_v7 = vld [vmem:[#allocation2 + $0x230] sm:$0xff] }
 0xde9   :  { %v1260_v11 = vadd.f32 %v1256_v9, %v1201_v60  ;;  %v1488_v60 = vld [vmem:[#allocation2 + $0x298] sm:$0xff]  ;;  %1516 = vmatpush.msra.mxu1 %v1480_v0 }
 0xdea   :  { %v1261_v12 = vadd.f32 %v1257_v10, %v1221_v63  ;;  %1554 = vmatpush.msra.mxu3 %v1488_v60  ;;  %v1485_v63 = vld [vmem:[#allocation2 + $0x280] sm:$0xff]  ;;  %1536 = vmatpush.msrb.mxu2 %v1481_v1  ;;  %v1476_v9 = vld [vmem:[#allocation2 + $0x238] sm:$0xff]  ;;  %v1471_v10 = vld [vmem:[#allocation2 + $0x210] sm:$0xff] }
 0xdeb   :  { %v1264_v13 = vmul.f32 0.7978846, %v1260_v11  ;;  %1517 = vmatpush.msra.mxu1 %v1477_v3  ;;  %v1472_v11 = vld [vmem:[#allocation2 + $0x218] sm:$0xff] }
 0xdec   :  { %v1265_v14 = vmul.f32 0.7978846, %v1261_v12  ;;  %1555 = vmatpush.msra.mxu3 %v1485_v63  ;;  %1537 = vmatpush.msrb.mxu2 %v1478_v4  ;;  %v1473_v12 = vld [vmem:[#allocation2 + $0x220] sm:$0xff] }
 0xded   :  { %v2980_v15 = vpop.eup %2979  ;;  %2983 = vtanh.f32 %v1264_v13  ;;  %1518 = vmatpush.msra.mxu1 %v1474_v6  ;;  %v1468_v13 = vld [vmem:[#allocation2 + $0x1f8] sm:$0xff] }
 0xdee   :  { %v2982_v16 = vpop.eup %2981  ;;  %v1271_v20 = vadd.f32 1.0, %v2980_v15  ;;  %2985 = vtanh.f32 %v1265_v14  ;;  %1556 = vmatpush.msra.mxu3 %v1482_v2  ;;  %1538 = vmatpush.msrb.mxu2 %v1475_v7  ;;  %v1469_v14 = vld [vmem:[#allocation2 + $0x200] sm:$0xff]  ;;  %v1470_v15 = vld [vmem:[#allocation2 + $0x208] sm:$0xff] }
 0xdef   :  { %v1274_v22 = vadd.f32 1.0, %v2982_v16  ;;  %1519 = vmatpush.msra.mxu1 %v1471_v10  ;;  %v1465_v16 = vld [vmem:[#allocation2 + $0x1e0] sm:$0xff] }
 0xdf0   :  { %v1275_v8 = vmul.f32 %v1271_v20, %v1243_v17  ;;  %1557 = vmatpush.msra.mxu3 %v1479_v5  ;;  %1539 = vmatpush.msrb.mxu2 %v1472_v11  ;;  %v1466_v17 = vld [vmem:[#allocation2 + $0x1e8] sm:$0xff]  ;;  %v1467_v20 = vld [vmem:[#allocation2 + $0x1f0] sm:$0xff] }
 0xdf1   :  { %v1278_v23 = vmul.f32 %v1274_v22, %v1246_v21  ;;  %1520 = vmatpush.msra.mxu1 %v1468_v13  ;;  %v1462_v21 = vld [vmem:[#allocation2 + $0x1c8] sm:$0xff]  ;;  %v1463_v22 = vld [vmem:[#allocation2 + $0x1d0] sm:$0xff] }
 0xdf2   :  { %1361 = vmatmul.f32.vlgmr.msrb.gmra.mxu1 %v1275_v8  ;;  %1558 = vmatpush.msra.mxu3 %v1476_v9  ;;  %v1464_v8 = vld [vmem:[#allocation2 + $0x1d8] sm:$0xff] }
 0xdf3   :  { %v2984_v25 = vpop.eup %2983  ;;  %1421 = vmatmul.f32.vlgmr.msrb.gmra.mxu0 %v1278_v23  ;;  %1540 = vmatpush.msrb.mxu2 %v1469_v14  ;;  %v1459_v23 = vld [vmem:[#allocation2 + $0x1b0] sm:$0xff] }
 0xdf4   :  { %v2986_v26 = vpop.eup %2985  ;;  %v1272_v28 = vadd.f32 1.0, %v2984_v25  ;;  %1559 = vmatpush.msra.mxu3 %v1473_v12  ;;  %1521 = vmatpush.msra.mxu1 %v1465_v16  ;;  %v1460_v25 = vld [vmem:[#allocation2 + $0x1b8] sm:$0xff] }
 0xdf5   :  { %v1273_v31 = vadd.f32 1.0, %v2986_v26  ;;  %1541 = vmatpush.msrb.mxu2 %v1466_v17  ;;  %v1461_v26 = vld [vmem:[#allocation2 + $0x1c0] sm:$0xff] }
 0xdf6   :  { %v1276_v32 = vmul.f32 %v1272_v28, %v1244_v27  ;;  %1560 = vmatpush.msra.mxu3 %v1470_v15  ;;  %1522 = vmatpush.msra.mxu1 %v1462_v21  ;;  %v1456_v27 = vld [vmem:[#allocation2 + $0x198] sm:$0xff]  ;;  %v1457_v28 = vld [vmem:[#allocation2 + $0x1a0] sm:$0xff] }
 0xdf7   :  { %v1277_v33 = vmul.f32 %v1273_v31, %v1245_v29  ;;  %1542 = vmatpush.msrb.mxu2 %v1463_v22  ;;  %v1458_v29 = vld [vmem:[#allocation2 + $0x1a8] sm:$0xff]  ;;  %v1453_v31 = vld [vmem:[#allocation2 + $0x180] sm:$0xff] }
 0xdf8   :  { %1381 = vmatmul.f32.vlgmr.msra.gmra.mxu2 %v1276_v32  ;;  %1561 = vmatpush.msra.mxu3 %v1467_v20  ;;  %v1454_v32 = vld [vmem:[#allocation2 + $0x188] sm:$0xff] }
 0xdf9   :  { %1401 = vmatmul.f32.vlgmr.msrb.gmra.mxu3 %v1277_v33  ;;  %1523 = vmatpush.msra.mxu1 %v1459_v23  ;;  %v1455_v33 = vld [vmem:[#allocation2 + $0x190] sm:$0xff] }
 0xdfa   :  { %1562 = vmatpush.msra.mxu3 %v1464_v8  ;;  %1543 = vmatpush.msrb.mxu2 %v1460_v25 }
 0xdfb   :  { %1524 = vmatpush.msra.mxu1 %v1456_v27 }
 0xdfc   :  { %1563 = vmatpush.msra.mxu3 %v1461_v26  ;;  %1544 = vmatpush.msrb.mxu2 %v1457_v28 }
 0xdfd   :  { %1525 = vmatpush.msra.mxu1 %v1453_v31 }
 0xdfe   :  { %1564 = vmatpush.msra.mxu3 %v1458_v29  ;;  %1545 = vmatpush.msrb.mxu2 %v1454_v32 }
 0xe00   :  { %1565 = vmatpush.msra.mxu3 %v1455_v33 }
 0xe6f   :  { %v1362_v35 = vpop.f32.mrf.mxu1 }
 0xe70   :  { %v1363_v36 = vadd.f32 %v2926_v34, %v1362_v35  ;;  %v1422_v41 = vpop.f32.mrf.mxu0 }
 0xe7b   :  { %v1382_v37 = vpop.f32.mrf.mxu2 }
 0xe7c   :  { %v1383_v38 = vadd.f32 %v1382_v37, %v1363_v36  ;;  %v1402_v39 = vpop.f32.mrf.mxu3 }
 0xe7e   :  { %v1403_v40 = vadd.f32 %v1402_v39, %v1383_v38 }
 0xe80   :  { %v1423_v42 = vadd.f32 %v1422_v41, %v1403_v40 }
 0xe82   :  { %v3810_v43 = vadd.f32 %v1423_v42, %v3594_v24 }
 0xe84   :  { %1428 = vadd.xlane.f32.xlu1 %v3810_v43 }
 0xef7   :  { %v1429_v51 = vpop.xlane.xlu1 %1428 }
 0xef8   :  { %v1430_v52 = vmul.f32 %v1429_v51, %v3398_v46  ;;  %v2756_v51 = vld [vmem:[%s4327_s29 + $0x1] ss:$2 sm:$0x7] }
 0xef9   :  { %v1505_v57 = vperm.slane %v2756_v51, 1  ;;  %v1506_v58 = vperm.slane %v2756_v51, 2 }
 0xefa   :  { %v3815_v24 = vsub.f32 %v3810_v43, %v1430_v52  ;;  %v1504_v52 = vperm.slane %v2756_v51, 0 }
 0xefc   :  { %v1432_v53 = vmul.f32 %v3815_v24, %v3815_v24 }
 0xefe   :  { %1433 = vadd.xlane.f32.xlu0 %v1432_v53 }
 0xf71   :  { %v1434_v34 = vpop.xlane.xlu0 %1433 }
 0xf72   :  { %v1435_v35 = vmul.f32 %v1434_v34, %v3398_v46 }
 0xf74   :  { %v1436_v36 = vadd.f32 1e-05, %v1435_v35 }
 0xf76   :  { %2987 = vrsqrt.f32 %v1436_v36  ;;  %vm1443_vm2 = vweird.f32 %v1436_v36 }
 0xf7c   :  { %v2988_v37 = vpop.eup %2987 }
 0xf7d   :  { %v1438_v38 = vmul.f32 %v2988_v37, %v1436_v36  ;;  %vm1444_vm1 = vweird.f32 %v2988_v37 }
 0xf7e   :  { %vm1445_vm3 = vmor %vm1443_vm2, %vm1444_vm1 }
 0xf7f   :  { %v1439_v39 = vmul.f32 %v2988_v37, %v1438_v38 }
 0xf81   :  { %v1440_v40 = vmul.f32 0.5, %v1439_v39 }
 0xf83   :  { %v1441_v41 = vsub.f32 1.5, %v1440_v40 }
 0xf85   :  { %v1442_v42 = vmul.f32 %v2988_v37, %v1441_v41 }
 0xf87   :  { %v1446_v45 = vsel %vm1445_vm3, %v2988_v37, %v1442_v42 }
 0xf88   :  { %v1447_v47 = vmul.f32 %v1446_v45, %v3815_v24 }
 0xf8a   :  { %v1449_v49 = vmul.f32 %v2927_v44, %v1447_v47 }
 0xf8c   :  { %v1451_v50 = vadd.f32 %v2928_v48, %v1449_v49 }
 0xf8e   :  { %1526 = vmatmul.f32.vlgmr.msra.gmra.mxu1 %v1451_v50  ;;  %1546 = vmatmul.f32.vlgmr.msrb.gmra.mxu2 %v1451_v50 }
 0xf8f   :  { %1566 = vmatmul.f32.vlgmr.msra.gmra.mxu3 %v1451_v50 }
0x100b   :  { %v1527_v53 = vpop.f32.mrf.mxu1 }
0x100c   :  { %v1528_v54 = vadd.f32 %v1527_v53, %v1504_v52  ;;  %v2784_v53 = vld [vmem:[%s4328_s6 + $0xf8] sm:$0xff] }
0x100e   :  { %v1570_v56 = vmul.f32 0.17677669, %v1528_v54  ;;  %v2783_v54 = vld [vmem:[%s4328_s6 + $0xf0] sm:$0xff] }
0x1010   :  { %1631 = vrot.lane.b32.xlu1 %v1570_v56, %s3190_s2 }
0x1011   :  { %v1547_v24 = vpop.f32.mrf.mxu2 }
0x1012   :  { %v1548_v59 = vadd.f32 %v1547_v24, %v1505_v57  ;;  %v1567_v30 = vpop.f32.mrf.mxu3 }
0x1013   :  { %v3831_v18 = vadd.f32 %v1567_v30, %v1506_v58  ;;  %v2781_v30 = vld [vmem:[%s4328_s6 + $0xe0] sm:$0xff] }
0x1014   :  { %1764 = vrot.lane.b32.xlu0 %v1548_v59, %s3191_s30  ;;  %1633 = vrot.lane.b32.xlu2 %v1548_v59, %s3190_s2 }
0x1015   :  { %1626 = vmatpush.msrb.mxu1 %v3831_v18  ;;  %2757 = vmatpush.xpose.msk.msra.mxu0 %vm344_vm5, %v1548_v59 }
0x1018   :  { %2758 = vmatmul.msk.f32.vlgmr.msra.gmra.mxu0 %vm344_vm5, %v1570_v56  ;;  %1697 = vrot.lane.b32.xlu1 %v1570_v56, %s4331_s19 }
0x101c   :  { %1699 = vrot.lane.b32.xlu0 %v1548_v59, %s4331_s19  ;;  %1762 = vrot.lane.b32.xlu2 %v1570_v56, %s3191_s30  ;;  %v2782_v56 = vld [vmem:[%s4328_s6 + $0xe8] sm:$0xff] }
0x106e   :  { %v1634_v19 = vpop.permute.xlu2 %1633 }
0x106f   :  { %2760 = vmatpush.xpose.msk.msra.mxu2 %vm344_vm5, %v1634_v19  ;;  %v2779_v19 = vld [vmem:[%s4328_s6 + $0xd0] sm:$0xff] }
0x1076   :  { %v1763_v62 = vpop.permute.xlu2 %1762 }
0x1082   :  { %v1632_v60 = vpop.permute.xlu1 %1631 }
0x1083   :  { %2761 = vmatmul.msk.f32.vlgmr.msra.gmra.mxu2 %vm344_vm5, %v1632_v60  ;;  %v2778_v60 = vld [vmem:[%s4328_s6 + $0xc8] sm:$0xff] }
0x1086   :  { %v1765_v61 = vpop.permute.xlu0 %1764 }
0x1087   :  { %2766 = vmatpush.xpose.msk.msrb.mxu2 %vm344_vm5, %v1765_v61  ;;  %v2777_v61 = vld [vmem:[%s4328_s6 + $0xc0] sm:$0xff] }
0x108a   :  { %v1698_v0 = vpop.permute.xlu1 %1697 }
0x108b   :  { %2767 = vmatmul.msk.f32.vlgmr.msrb.gmra.mxu2 %vm344_vm5, %v1763_v62  ;;  %v2776_v62 = vld [vmem:[%s4328_s6 + $0xb8] sm:$0xff] }
0x108e   :  { %v1700_v63 = vpop.permute.xlu0 %1699 }
0x108f   :  { %2763 = vmatpush.xpose.msk.msrb.mxu0 %vm344_vm5, %v1700_v63  ;;  %v2775_v63 = vld [vmem:[%s4328_s6 + $0xb0] sm:$0xff] }
0x1092   :  { %2764 = vmatmul.msk.f32.vlgmr.msrb.gmra.mxu0 %vm344_vm5, %v1698_v0  ;;  %v2774_v0 = vld [vmem:[%s4328_s6 + $0xa8] sm:$0xff] }
0x1093   :  { %1861 = vmatpush.msra.mxu0 %v2784_v53 }
0x1095   :  { %v1594_v1 = vpop.f32.mrf.mxu0  ;;  %1862 = vmatpush.msra.mxu0 %v2783_v54  ;;  %v2931_v54 = vld [vmem:[%s4285_s10 + $0x1] ss:$0 sm:$0xff] }
0x1096   :  { %v1595_v2 = vadd.f32 %v1594_v1, %v3430_v55  ;;  %v2773_v1 = vld [vmem:[%s4328_s6 + $0xa0] sm:$0xff] }
0x1097   :  { %1863 = vmatpush.msra.mxu0 %v2782_v56 }
0x1098   :  { %v1597_v3 = vsel %vm371_vm7, %v1595_v2, -inf }
0x1099   :  { %1598 = vmax.xlane.f32.xlu0 %v1597_v3  ;;  %1864 = vmatpush.msra.mxu0 %v2781_v30  ;;  %v2771_v3 = vld [vmem:[%s4328_s6 + $0x90] sm:$0xff] }
0x1106   :  { %v1656_v4 = vpop.f32.mrf.mxu2 }
0x1107   :  { %v1657_v5 = vadd.f32 %v1656_v4, %v3430_v55  ;;  %v2770_v4 = vld [vmem:[%s4328_s6 + $0x88] sm:$0xff] }
0x1109   :  { %v1659_v6 = vsel %vm371_vm7, %v1657_v5, -inf }
0x110a   :  { %1660 = vmax.xlane.f32.xlu2 %v1659_v6 }
0x110c   :  { %v1599_v7 = vpop.xlane.xlu0 %1598 }
0x110d   :  { %v1600_v9 = vsub.f32 %v1595_v2, %v1599_v7  ;;  %v2772_v2 = vld [vmem:[%s4328_s6 + $0x98] sm:$0xff] }
0x110e   :  { %v1787_v10 = vpop.f32.mrf.mxu2 }
0x110f   :  { %v1601_v11 = vmul.f32 1.442695, %v1600_v9  ;;  %v1788_v12 = vadd.f32 %v1787_v10, %v3430_v55  ;;  %v1722_v13 = vpop.f32.mrf.mxu0 }
0x1110   :  { %v1723_v14 = vadd.f32 %v1722_v13, %v3430_v55  ;;  %v2929_v13 = vld [vmem:[%s4329_s1 + $0x1] ss:$0 sm:$0xff] }
0x1111   :  { %2989 = vpow2.f32 %v1601_v11  ;;  %v1790_v15 = vsel %vm371_vm7, %v1788_v12, -inf }
0x1112   :  { %1791 = vmax.xlane.f32.xlu1 %v1790_v15  ;;  %v1725_v16 = vsel %vm371_vm7, %v1723_v14, -inf }
0x1113   :  { %1726 = vmax.xlane.f32.xlu2 %v1725_v16 }
0x1117   :  { %v2990_v17 = vpop.eup %2989 }
0x1118   :  { %v1603_v20 = vsel %vm371_vm7, %v2990_v17, 0.0 }
0x111a   :  { %1604 = vadd.xlane.f32.xlu1 %v1603_v20  ;;  %v1923_v20 = vld [vmem:[#allocation5 + $0xf0] sm:$0xff] }
0x117d   :  { %v1661_v21 = vpop.xlane.xlu2 %1660 }
0x117e   :  { %v1662_v22 = vsub.f32 %v1657_v5, %v1661_v21  ;;  %v2769_v5 = vld [vmem:[%s4328_s6 + $0x80] sm:$0xff] }
0x1180   :  { %v1663_v8 = vmul.f32 1.442695, %v1662_v22 }
0x1182   :  { %2991 = vpow2.f32 %v1663_v8 }
0x1185   :  { %v1792_v23 = vpop.xlane.xlu1 %1791 }
0x1186   :  { %v1793_v25 = vsub.f32 %v1788_v12, %v1792_v23  ;;  %v1727_v26 = vpop.xlane.xlu2 %1726 }
0x1187   :  { %v1728_v27 = vsub.f32 %v1723_v14, %v1727_v26  ;;  %v1921_v26 = vld [vmem:[#allocation5 + $0xe0] sm:$0xff] }
0x1188   :  { %v2992_v55 = vpop.eup %2991  ;;  %v1794_v28 = vmul.f32 1.442695, %v1793_v25  ;;  %v1922_v25 = vld [vmem:[#allocation5 + $0xe8] sm:$0xff] }
0x1189   :  { %v1729_v29 = vmul.f32 1.442695, %v1728_v27  ;;  %v1665_v31 = vsel %vm371_vm7, %v2992_v55, 0.0  ;;  %v1920_v27 = vld [vmem:[#allocation5 + $0xd8] sm:$0xff] }
0x118a   :  { %2993 = vpow2.f32 %v1794_v28  ;;  %1666 = vadd.xlane.f32.xlu0 %v1665_v31  ;;  %v1917_v28 = vld [vmem:[#allocation5 + $0xc0] sm:$0xff]  ;;  %v1915_v31 = vld [vmem:[#allocation5 + $0xb0] sm:$0xff] }
0x118b   :  { %2995 = vpow2.f32 %v1729_v29  ;;  %v1916_v29 = vld [vmem:[#allocation5 + $0xb8] sm:$0xff] }
0x118d   :  { %v1605_v32 = vpop.xlane.xlu1 %1604 }
0x118e   :  { %2997 = vrcp.f32 %v1605_v32  ;;  %v1914_v32 = vld [vmem:[#allocation5 + $0xa8] sm:$0xff] }
0x1190   :  { %v2994_v33 = vpop.eup %2993 }
0x1191   :  { %v2996_v34 = vpop.eup %2995  ;;  %v1796_v35 = vsel %vm371_vm7, %v2994_v33, 0.0 }
0x1192   :  { %1797 = vadd.xlane.f32.xlu2 %v1796_v35  ;;  %v1731_v36 = vsel %vm371_vm7, %v2996_v34, 0.0  ;;  %v1911_v35 = vld [vmem:[#allocation5 + $0x90] sm:$0xff] }
0x1193   :  { %1732 = vadd.xlane.f32.xlu1 %v1731_v36  ;;  %v1910_v36 = vld [vmem:[#allocation5 + $0x88] sm:$0xff] }
0x1194   :  { %v2998_v37 = vpop.eup %2997 }
0x1195   :  { %v1607_v38 = vmul.f32 %v2998_v37, %v2990_v17  ;;  %v1924_v17 = vld [vmem:[#allocation5 + $0xf8] sm:$0xff]  ;;  %v1909_v37 = vld [vmem:[#allocation5 + $0x80] sm:$0xff] }
0x1197   :  { %2759 = vmatmul.msk.f32.vlgmr.msrb.gmra.mxu1 %vm371_vm7, %v1607_v38  ;;  %v2786_v38 = vld [vmem:[%s4296_s21 + $0x18] sm:$0xff] }
0x1198   :  { %2789 = vmatpush.xpose.msk.msra.mxu2 %vm344_vm5, %v2786_v38 }
0x119e   :  { %1671 = vrot.lane.b32.xlu0 %v3831_v18, %s3190_s2 }
0x11aa   :  { %1801 = vrot.lane.b32.xlu2 %v3831_v18, %s3191_s30 }
0x11ac   :  { %1736 = vrot.lane.b32.xlu1 %v3831_v18, %s4331_s19  ;;  %v2780_v18 = vld [vmem:[%s4328_s6 + $0xd8] sm:$0xff] }
0x11ad   :  { %1865 = vmatpush.msra.mxu0 %v2780_v18 }
0x11af   :  { %1866 = vmatpush.msra.mxu0 %v2779_v19 }
0x11b1   :  { %1867 = vmatpush.msra.mxu0 %v2778_v60 }
0x11b3   :  { %1868 = vmatpush.msra.mxu0 %v2777_v61 }
0x11b5   :  { %1869 = vmatpush.msra.mxu0 %v2776_v62 }
0x11b7   :  { %1870 = vmatpush.msra.mxu0 %v2775_v63 }
0x11b9   :  { %1871 = vmatpush.msra.mxu0 %v2774_v0 }
0x11bb   :  { %1872 = vmatpush.msra.mxu0 %v2773_v1 }
0x11bd   :  { %1873 = vmatpush.msra.mxu0 %v2772_v2 }
0x11bf   :  { %1874 = vmatpush.msra.mxu0 %v2771_v3 }
0x11c1   :  { %1875 = vmatpush.msra.mxu0 %v2770_v4 }
0x11c3   :  { %1876 = vmatpush.msra.mxu0 %v2769_v5 }
0x11fd   :  { %v1667_v39 = vpop.xlane.xlu0 %1666 }
0x11fe   :  { %2999 = vrcp.f32 %v1667_v39  ;;  %v2785_v39 = vld [vmem:[%s4296_s21 + $0x10] sm:$0xff] }
0x11ff   :  { %2790 = vmatpush.xpose.msk.msra.mxu2 %vm344_vm5, %v2785_v39 }
0x1204   :  { %v3000_v41 = vpop.eup %2999 }
0x1205   :  { %v1798_v40 = vpop.xlane.xlu2 %1797  ;;  %v1669_v42 = vmul.f32 %v3000_v41, %v2992_v55  ;;  %v1918_v55 = vld [vmem:[#allocation5 + $0xc8] sm:$0xff] }
0x1206   :  { %3001 = vrcp.f32 %v1798_v40  ;;  %v1733_v45 = vpop.xlane.xlu1 %1732 }
0x1207   :  { %3003 = vrcp.f32 %v1733_v45 }
0x120c   :  { %v3002_v48 = vpop.eup %3001 }
0x120d   :  { %v1802_v47 = vpop.permute.xlu2 %1801  ;;  %v1800_v49 = vmul.f32 %v3002_v48, %v2994_v33  ;;  %v3004_v50 = vpop.eup %3003  ;;  %v1913_v33 = vld [vmem:[#allocation5 + $0xa0] sm:$0xff] }
0x120e   :  { %v1735_v51 = vmul.f32 %v3004_v50, %v2996_v34  ;;  %v1912_v34 = vld [vmem:[#allocation5 + $0x98] sm:$0xff] }
0x1210   :  { %v1672_v44 = vpop.permute.xlu0 %1671 }
0x1211   :  { %1692 = vmatpush.msrb.mxu3 %v1672_v44 }
0x1212   :  { %2762 = vmatmul.msk.f32.vlgmr.msrb.gmra.mxu3 %vm371_vm7, %v1669_v42 }
0x1213   :  { %1822 = vmatpush.msra.mxu3 %v1802_v47 }
0x1214   :  { %v1628_v57 = vpop.f32.mrf.mxu1 }
0x121a   :  { %2768 = vmatmul.msk.f32.vlgmr.msra.gmra.mxu3 %vm371_vm7, %v1800_v49 }
0x121e   :  { %v1737_v52 = vpop.permute.xlu1 %1736 }
0x121f   :  { %1757 = vmatpush.msra.mxu1 %v1737_v52 }
0x1220   :  { %2765 = vmatmul.msk.f32.vlgmr.msra.gmra.mxu1 %vm371_vm7, %v1735_v51  ;;  %v2930_v51 = vld [vmem:[%s4330_s0 + $0x1] ss:$0 sm:$0xff] }
0x1221   :  { %1927 = vmatpush.msrb.mxu1 %v1924_v17 }
0x1223   :  { %1928 = vmatpush.msrb.mxu1 %v1923_v20  ;;  %v2787_v20 = vld [vmem:[%s4297_s22 + $0x10] sm:$0xff] }
0x1225   :  { %1929 = vmatpush.msrb.mxu1 %v1922_v25 }
0x1227   :  { %1930 = vmatpush.msrb.mxu1 %v1921_v26 }
0x1229   :  { %1931 = vmatpush.msrb.mxu1 %v1920_v27 }
0x1295   :  { %v1694_v58 = vpop.f32.mrf.mxu3 }
0x1296   :  { %1828 = vrot.lane.b32.xlu0 %v1694_v58, %s3191_s30 }
0x129d   :  { %v1759_v24 = vpop.f32.mrf.mxu1  ;;  %v1824_v59 = vpop.f32.mrf.mxu3 }
0x129e   :  { %1832 = vrot.lane.b32.xlu2 %v1759_v24, %s4331_s19  ;;  %1836 = vrot.lane.b32.xlu0 %v1824_v59, %s3190_s2  ;;  %v2932_v24 = vld [vmem:[%s4287_s12 + $0x1] ss:$0 sm:$0xff] }
0x12a6   :  { %2021 = vrot.lane.b32.xlu0 %v2786_v38, %s3190_s2 }
0x12ae   :  { %2019 = vrot.lane.b32.xlu0 %v2785_v39, %s3190_s2 }
0x12b6   :  { %2095 = vrot.lane.b32.xlu0 %v2786_v38, %s4331_s19 }
0x12be   :  { %2093 = vrot.lane.b32.xlu0 %v2785_v39, %s4331_s19 }
0x12f8   :  { %v1833_v9 = vpop.permute.xlu2 %1832 }
0x1308   :  { %v1829_v6 = vpop.permute.xlu0 %1828 }
0x1309   :  { %v1839_v7 = vsel %vm344_vm5, %v1628_v57, %v1829_v6 }
0x130a   :  { %v1840_v10 = vsel %vm615_vm8, %v1839_v7, %v1833_v9 }
0x1310   :  { %v1837_v11 = vpop.permute.xlu0 %1836 }
0x1311   :  { %v1841_v12 = vsel %vm617_vm9, %v1840_v10, %v1837_v11 }
0x1312   :  { %1877 = vmatmul.f32.vlgmr.msra.gmra.mxu0 %v1841_v12 }
0x1318   :  { %v2022_v58 = vpop.permute.xlu0 %2021 }
0x1319   :  { %2793 = vmatpush.xpose.msk.msrb.mxu2 %vm344_vm5, %v2022_v58 }
0x1320   :  { %v2020_v59 = vpop.permute.xlu0 %2019 }
0x1321   :  { %2794 = vmatpush.xpose.msk.msrb.mxu2 %vm344_vm5, %v2020_v59 }
0x1328   :  { %v2096_v60 = vpop.permute.xlu0 %2095 }
0x1330   :  { %v2094_v61 = vpop.permute.xlu0 %2093 }
0x138f   :  { %v1878_v14 = vpop.f32.mrf.mxu0 }
0x1390   :  { %v1879_v15 = vadd.f32 %v2929_v13, %v1878_v14 }
0x1392   :  { %v3927_v16 = vadd.f32 %v1879_v15, %v3810_v43  ;;  %v1919_v43 = vld [vmem:[#allocation5 + $0xd0] sm:$0xff] }
0x1393   :  { %1932 = vmatpush.msrb.mxu1 %v1919_v43 }
0x1394   :  { %1884 = vadd.xlane.f32.xlu1 %v3927_v16 }
0x1395   :  { %1933 = vmatpush.msrb.mxu1 %v1918_v55 }
0x1397   :  { %1934 = vmatpush.msrb.mxu1 %v1917_v28 }
0x1399   :  { %1935 = vmatpush.msrb.mxu1 %v1916_v29 }
0x139b   :  { %1936 = vmatpush.msrb.mxu1 %v1915_v31 }
0x139d   :  { %1937 = vmatpush.msrb.mxu1 %v1914_v32 }
0x139f   :  { %1938 = vmatpush.msrb.mxu1 %v1913_v33 }
0x13a1   :  { %1939 = vmatpush.msrb.mxu1 %v1912_v34 }
0x13a3   :  { %1940 = vmatpush.msrb.mxu1 %v1911_v35 }
0x13a5   :  { %1941 = vmatpush.msrb.mxu1 %v1910_v36 }
0x13a7   :  { %1942 = vmatpush.msrb.mxu1 %v1909_v37 }
0x13ad   :  { %2165 = vrot.lane.b32.xlu1 %v2785_v39, %s3191_s30 }
0x1407   :  { %v1885_v21 = vpop.xlane.xlu1 %1884 }
0x1408   :  { %v1886_v22 = vmul.f32 %v1885_v21, %v3398_v46  ;;  %v2788_v21 = vld [vmem:[%s4297_s22 + $0x18] sm:$0xff] }
0x1409   :  { %2011 = vmatpush.msrb.mxu3 %v2788_v21 }
0x140a   :  { %v1887_v8 = vsub.f32 %v3927_v16, %v1886_v22  ;;  %v2902_v22 = vpack.i.bf16 %v2787_v20, %v2788_v21 }
0x140b   :  { %2012 = vmatpush.msrb.mxu3 %v2787_v20 }
0x140c   :  { %v1888_v23 = vmul.f32 %v1887_v8, %v1887_v8 }
0x140e   :  { %1889 = vadd.xlane.f32.xlu2 %v1888_v23 }
0x141f   :  { %v2166_v0 = vpop.permute.xlu1 %2165 }
0x1426   :  { %2167 = vrot.lane.b32.xlu2 %v2786_v38, %s3191_s30 }
0x1481   :  { %v1890_v40 = vpop.xlane.xlu2 %1889 }
0x1482   :  { %v1891_v41 = vmul.f32 %v1890_v40, %v3398_v46 }
0x1484   :  { %v1892_v42 = vadd.f32 1e-05, %v1891_v41 }
0x1486   :  { %3005 = vrsqrt.f32 %v1892_v42  ;;  %vm1899_vm6 = vweird.f32 %v1892_v42 }
0x1489   :  { %v2168_v62 = vpop.permute.xlu2 %2167 }
0x148c   :  { %v3006_v44 = vpop.eup %3005 }
0x148d   :  { %v1894_v45 = vmul.f32 %v3006_v44, %v1892_v42  ;;  %vm1900_vm4 = vweird.f32 %v3006_v44 }
0x148e   :  { %vm1901_vm7 = vmor %vm1899_vm6, %vm1900_vm4 }
0x148f   :  { %v1895_v47 = vmul.f32 %v3006_v44, %v1894_v45 }
0x1491   :  { %v1896_v48 = vmul.f32 0.5, %v1895_v47 }
0x1493   :  { %v1897_v49 = vsub.f32 1.5, %v1896_v48 }
0x1495   :  { %v1898_v50 = vmul.f32 %v3006_v44, %v1897_v49 }
0x1497   :  { %v1902_v52 = vsel %vm1901_vm7, %v3006_v44, %v1898_v50 }
0x1498   :  { %v1903_v53 = vmul.f32 %v1902_v52, %v1887_v8 }
0x149a   :  { %v1905_v56 = vmul.f32 %v2930_v51, %v1903_v53 }
0x149c   :  { %v1907_v57 = vadd.f32 %v2931_v54, %v1905_v56 }
0x149e   :  { %1943 = vmatmul.f32.vlgmr.msrb.gmra.mxu1 %v1907_v57 }
0x151b   :  { %v1944_v30 = vpop.f32.mrf.mxu1 }
0x151c   :  { %v1945_v18 = vadd.f32 %v2932_v24, %v1944_v30 }
0x151e   :  { %v1953_v19 = vmul.f32 0.17677669, %v1945_v18  ;;  %v2266_v18 = vld [vmem:[#allocation7 + $0xf8] sm:$0xff] }
0x151f   :  { %2269 = vmatpush.msrb.mxu0 %v2266_v18  ;;  %v2839_v18 = vld [vmem:[%s4292_s17 + $0x310] sm:$0xff] }
0x1520   :  { %2017 = vrot.lane.b32.xlu0 %v1953_v19, %s3190_s2  ;;  %2791 = vmatmul.msk.f32.vlgmr.msra.gmra.mxu2 %vm344_vm5, %v1953_v19 }
0x1521   :  { %2797 = vmatpush.xpose.msk.msra.mxu2 %vm344_vm5, %v2096_v60  ;;  %v2264_v60 = vld [vmem:[#allocation7 + $0xe8] sm:$0xff] }
0x1525   :  { %2798 = vmatpush.xpose.msk.msra.mxu2 %vm344_vm5, %v2094_v61  ;;  %v2263_v61 = vld [vmem:[#allocation7 + $0xe0] sm:$0xff] }
0x1528   :  { %2091 = vrot.lane.b32.xlu0 %v1953_v19, %s4331_s19 }
0x1530   :  { %2163 = vrot.lane.b32.xlu0 %v1953_v19, %s3191_s30  ;;  %v2265_v19 = vld [vmem:[#allocation7 + $0xf0] sm:$0xff] }
0x1531   :  { %2270 = vmatpush.msrb.mxu0 %v2265_v19  ;;  %v2840_v19 = vld [vmem:[%s4292_s17 + $0x318] sm:$0xff] }
0x1533   :  { %2271 = vmatpush.msrb.mxu0 %v2264_v60  ;;  %v2833_v60 = vld [vmem:[%s4292_s17 + $0x2e0] sm:$0xff] }
0x1535   :  { %2272 = vmatpush.msrb.mxu0 %v2263_v61  ;;  %v2834_v61 = vld [vmem:[%s4292_s17 + $0x2e8] sm:$0xff] }
0x1592   :  { %v2018_v63 = vpop.permute.xlu0 %2017 }
0x1593   :  { %2795 = vmatmul.msk.f32.vlgmr.msrb.gmra.mxu2 %vm344_vm5, %v2018_v63 }
0x1594   :  { %2801 = vmatpush.xpose.msk.msrb.mxu2 %vm344_vm5, %v2168_v62 }
0x1598   :  { %2802 = vmatpush.xpose.msk.msrb.mxu2 %vm344_vm5, %v2166_v0 }
0x159a   :  { %v2092_v1 = vpop.permute.xlu0 %2091 }
0x159b   :  { %2799 = vmatmul.msk.f32.vlgmr.msra.gmra.mxu2 %vm344_vm5, %v2092_v1  ;;  %v2262_v1 = vld [vmem:[#allocation7 + $0xd8] sm:$0xff] }
0x159c   :  { %2273 = vmatpush.msrb.mxu0 %v2262_v1  ;;  %v2830_v1 = vld [vmem:[%s4292_s17 + $0x2c8] sm:$0xff] }
0x15a2   :  { %v2164_v2 = vpop.permute.xlu0 %2163 }
0x15a3   :  { %v1980_v3 = vpop.f32.mrf.mxu2  ;;  %2803 = vmatmul.msk.f32.vlgmr.msrb.gmra.mxu2 %vm344_vm5, %v2164_v2  ;;  %v2261_v2 = vld [vmem:[#allocation7 + $0xd0] sm:$0xff] }
0x15a4   :  { %v1983_v4 = vsel %vm756_vm13, %v1980_v3, -inf  ;;  %2274 = vmatpush.msrb.mxu0 %v2261_v2  ;;  %v2831_v2 = vld [vmem:[%s4292_s17 + $0x2d0] sm:$0xff] }
0x15a5   :  { %1984 = vmax.xlane.f32.xlu0 %v1983_v4  ;;  %v2259_v4 = vld [vmem:[#allocation7 + $0xc0] sm:$0xff] }
0x1616   :  { %v2046_v5 = vpop.f32.mrf.mxu2 }
0x1617   :  { %v2049_v6 = vsel %vm756_vm13, %v2046_v5, -inf }
0x1618   :  { %2050 = vmax.xlane.f32.xlu2 %v2049_v6  ;;  %v1985_v7 = vpop.xlane.xlu0 %1984  ;;  %v2257_v6 = vld [vmem:[#allocation7 + $0xb0] sm:$0xff] }
0x1619   :  { %v1986_v9 = vsub.f32 %v1980_v3, %v1985_v7  ;;  %v2260_v3 = vld [vmem:[#allocation7 + $0xc8] sm:$0xff] }
0x161a   :  { %2275 = vmatpush.msrb.mxu0 %v2260_v3  ;;  %v2256_v7 = vld [vmem:[#allocation7 + $0xa8] sm:$0xff]  ;;  %v2832_v3 = vld [vmem:[%s4292_s17 + $0x2d8] sm:$0xff] }
0x161b   :  { %v1987_v10 = vmul.f32 1.442695, %v1986_v9  ;;  %v2255_v9 = vld [vmem:[#allocation7 + $0xa0] sm:$0xff] }
0x161c   :  { %2276 = vmatpush.msrb.mxu0 %v2259_v4  ;;  %v2825_v4 = vld [vmem:[%s4292_s17 + $0x2a0] sm:$0xff] }
0x161d   :  { %3007 = vpow2.f32 %v1987_v10  ;;  %v2254_v10 = vld [vmem:[#allocation7 + $0x98] sm:$0xff] }
0x161e   :  { %v2120_v11 = vpop.f32.mrf.mxu2 }
0x161f   :  { %v2123_v12 = vsel %vm756_vm13, %v2120_v11, -inf }
0x1620   :  { %2124 = vmax.xlane.f32.xlu1 %v2123_v12  ;;  %v2252_v12 = vld [vmem:[#allocation7 + $0x88] sm:$0xff] }
0x1623   :  { %v3008_v13 = vpop.eup %3007 }
0x1624   :  { %v1989_v14 = vsel %vm756_vm13, %v3008_v13, 0.0 }
0x1625   :  { %1990 = vadd.xlane.f32.xlu2 %v1989_v14 }
0x1626   :  { %v2192_v15 = vpop.f32.mrf.mxu2 }
0x1627   :  { %v2195_v17 = vsel %vm756_vm13, %v2192_v15, -inf }
0x1628   :  { %2196 = vmax.xlane.f32.xlu0 %v2195_v17 }
0x1639   :  { %2903 = vrot.lane.b32.xlu1 %v2902_v22, %s3190_s2 }
0x168b   :  { %v2051_v8 = vpop.xlane.xlu2 %2050 }
0x168c   :  { %v2052_v23 = vsub.f32 %v2046_v5, %v2051_v8  ;;  %v2258_v5 = vld [vmem:[#allocation7 + $0xb8] sm:$0xff]  ;;  %v2933_v8 = vld [vmem:[%s4289_s14 + $0x1] ss:$0 sm:$0xff]  ;;  %s2714_s14 = sshll.u32 %s4332_s4, 4  ;;  %s2715_s14 = int_to_ptr.hbm [resolvable:$true] %s2714_s14 }
0x168d   :  { %2277 = vmatpush.msrb.mxu0 %v2258_v5  ;;  %v2826_v5 = vld [vmem:[%s4292_s17 + $0x2a8] sm:$0xff] }
0x168e   :  { %v2053_v25 = vmul.f32 1.442695, %v2052_v23 }
0x168f   :  { %2278 = vmatpush.msrb.mxu0 %v2257_v6  ;;  %v2827_v6 = vld [vmem:[%s4292_s17 + $0x2b0] sm:$0xff] }
0x1690   :  { %3009 = vpow2.f32 %v2053_v25 }
0x1691   :  { %2279 = vmatpush.msrb.mxu0 %v2256_v7  ;;  %v2828_v7 = vld [vmem:[%s4292_s17 + $0x2b8] sm:$0xff] }
0x1693   :  { %v2125_v26 = vpop.xlane.xlu1 %2124  ;;  %2280 = vmatpush.msrb.mxu0 %v2255_v9  ;;  %v2821_v9 = vld [vmem:[%s4292_s17 + $0x280] sm:$0xff] }
0x1694   :  { %v2126_v27 = vsub.f32 %v2120_v11, %v2125_v26  ;;  %v2253_v11 = vld [vmem:[#allocation7 + $0x90] sm:$0xff] }
0x1695   :  { %2281 = vmatpush.msrb.mxu0 %v2254_v10  ;;  %v2822_v10 = vld [vmem:[%s4292_s17 + $0x288] sm:$0xff] }
0x1696   :  { %v3010_v43 = vpop.eup %3009  ;;  %v2127_v55 = vmul.f32 1.442695, %v2126_v27  ;;  %v2865_v27 = vld [vmem:[%s4292_s17 + $0x3e0] sm:$0xff] }
0x1697   :  { %v2055_v28 = vsel %vm756_vm13, %v3010_v43, 0.0  ;;  %2282 = vmatpush.msrb.mxu0 %v2253_v11  ;;  %2392 = vmatpush.msra.mxu1 %v2865_v27  ;;  %v2823_v11 = vld [vmem:[%s4292_s17 + $0x290] sm:$0xff] }
0x1698   :  { %3011 = vpow2.f32 %v2127_v55  ;;  %2056 = vadd.xlane.f32.xlu0 %v2055_v28  ;;  %v1991_v29 = vpop.xlane.xlu2 %1990  ;;  %v2867_v55 = vld [vmem:[%s4292_s17 + $0x3f0] sm:$0xff]  ;;  %v2861_v28 = vld [vmem:[%s4292_s17 + $0x3c0] sm:$0xff] }
0x1699   :  { %3013 = vrcp.f32 %v1991_v29  ;;  %2283 = vmatpush.msrb.mxu0 %v2252_v12  ;;  %v2862_v29 = vld [vmem:[%s4292_s17 + $0x3c8] sm:$0xff]  ;;  %2393 = vmatpush.msra.mxu1 %v2861_v28  ;;  %v2824_v12 = vld [vmem:[%s4292_s17 + $0x298] sm:$0xff]  ;;  %v2811_v27 = vld [vmem:[%s4292_s17 + $0x230] sm:$0xff] }
0x169a   :  { %v2807_v28 = vld [vmem:[%s4292_s17 + $0x210] sm:$0xff] }
0x169b   :  { %v2197_v31 = vpop.xlane.xlu0 %2196 }
0x169c   :  { %v2198_v32 = vsub.f32 %v2192_v15, %v2197_v31  ;;  %v2863_v31 = vld [vmem:[%s4292_s17 + $0x3d0] sm:$0xff] }
0x169e   :  { %v3012_v33 = vpop.eup %3011  ;;  %v2199_v34 = vmul.f32 1.442695, %v2198_v32  ;;  %v2864_v32 = vld [vmem:[%s4292_s17 + $0x3d8] sm:$0xff] }
0x169f   :  { %v3014_v35 = vpop.eup %3013  ;;  %v2129_v36 = vsel %vm756_vm13, %v3012_v33, 0.0 }
0x16a0   :  { %v1993_v37 = vmul.f32 %v3014_v35, %v3008_v13  ;;  %3015 = vpow2.f32 %v2199_v34  ;;  %2130 = vadd.xlane.f32.xlu2 %v2129_v36  ;;  %v2251_v13 = vld [vmem:[#allocation7 + $0x80] sm:$0xff] }
0x16a1   :  { %2284 = vmatpush.msrb.mxu0 %v2251_v13  ;;  %v2817_v13 = vld [vmem:[%s4292_s17 + $0x260] sm:$0xff] }
0x16a2   :  { %2792 = vmatmul.msk.f32.vlgmr.msrb.gmra.mxu3 %vm756_vm13, %v1993_v37  ;;  %v2857_v37 = vld [vmem:[%s4292_s17 + $0x3a0] sm:$0xff] }
0x16a3   :  { %2394 = vmatpush.msra.mxu1 %v2857_v37 }
0x16a6   :  { %v3016_v38 = vpop.eup %3015 }
0x16a7   :  { %v2201_v39 = vsel %vm756_vm13, %v3016_v38, 0.0 }
0x16a8   :  { %2202 = vadd.xlane.f32.xlu2 %v2201_v39  ;;  %v2859_v39 = vld [vmem:[%s4292_s17 + $0x3b0] sm:$0xff] }
0x16ab   :  { %v2904_v40 = vpop.permute.xlu1 %2903 }
0x16ac   :  { %2908 = vrot.lane.b32.xlu0 %v2902_v22, %s4331_s19  ;;  %v2905_v41 = vunpack.i.l.bf16 %v2904_v40  ;;  %v2906_v42 = vunpack.i.h.bf16 %v2904_v40  ;;  %v2860_v40 = vld [vmem:[%s4292_s17 + $0x3b8] sm:$0xff] }
0x16ae   :  { %2085 = vmatpush.msra.mxu3 %v2905_v41  ;;  %v2853_v41 = vld [vmem:[%s4292_s17 + $0x380] sm:$0xff] }
0x16af   :  { %2395 = vmatpush.msra.mxu1 %v2853_v41 }
0x16b0   :  { %2086 = vmatpush.msra.mxu3 %v2906_v42  ;;  %v2854_v42 = vld [vmem:[%s4292_s17 + $0x388] sm:$0xff] }
0x16c0   :  { %2913 = vrot.lane.b32.xlu2 %v2902_v22, %s3191_s30 }
0x170b   :  { %v2057_v44 = vpop.xlane.xlu0 %2056 }
0x170c   :  { %3017 = vrcp.f32 %v2057_v44  ;;  %v2855_v44 = vld [vmem:[%s4292_s17 + $0x390] sm:$0xff] }
0x1712   :  { %v3018_v45 = vpop.eup %3017 }
0x1713   :  { %v2059_v47 = vmul.f32 %v3018_v45, %v3010_v43  ;;  %v2131_v48 = vpop.xlane.xlu2 %2130  ;;  %v2866_v43 = vld [vmem:[%s4292_s17 + $0x3e8] sm:$0xff]  ;;  %v2856_v45 = vld [vmem:[%s4292_s17 + $0x398] sm:$0xff] }
0x1714   :  { %3019 = vrcp.f32 %v2131_v48  ;;  %2412 = vmatpush.msra.mxu2 %v2866_v43  ;;  %v2850_v48 = vld [vmem:[%s4292_s17 + $0x368] sm:$0xff]  ;;  %v2812_v43 = vld [vmem:[%s4292_s17 + $0x238] sm:$0xff] }
0x1715   :  { %2796 = vmatmul.msk.f32.vlgmr.msra.gmra.mxu3 %vm756_vm13, %v2059_v47  ;;  %v2849_v47 = vld [vmem:[%s4292_s17 + $0x360] sm:$0xff] }
0x1716   :  { %2413 = vmatpush.msra.mxu2 %v2862_v29  ;;  %2396 = vmatpush.msra.mxu1 %v2849_v47  ;;  %v2808_v29 = vld [vmem:[%s4292_s17 + $0x218] sm:$0xff] }
0x171a   :  { %v3020_v51 = vpop.eup %3019 }
0x171b   :  { %v2203_v49 = vpop.xlane.xlu2 %2202  ;;  %v2133_v54 = vmul.f32 %v3020_v51, %v3012_v33  ;;  %v2845_v51 = vld [vmem:[%s4292_s17 + $0x340] sm:$0xff] }
0x171c   :  { %3021 = vrcp.f32 %v2203_v49  ;;  %v2851_v49 = vld [vmem:[%s4292_s17 + $0x370] sm:$0xff]  ;;  %2397 = vmatpush.msra.mxu1 %v2845_v51 }
0x171e   :  { %v2909_v50 = vpop.permute.xlu0 %2908 }
0x171f   :  { %v2910_v52 = vunpack.i.l.bf16 %v2909_v50  ;;  %v2911_v53 = vunpack.i.h.bf16 %v2909_v50  ;;  %v2852_v50 = vld [vmem:[%s4292_s17 + $0x378] sm:$0xff] }
0x1721   :  { %2157 = vmatpush.msrb.mxu3 %v2910_v52  ;;  %v2846_v52 = vld [vmem:[%s4292_s17 + $0x348] sm:$0xff] }
0x1722   :  { %v3022_v24 = vpop.eup %3021 }
0x1723   :  { %2158 = vmatpush.msrb.mxu3 %v2911_v53  ;;  %v2914_v56 = vpop.permute.xlu2 %2913  ;;  %v2205_v59 = vmul.f32 %v3022_v24, %v3016_v38  ;;  %v2858_v38 = vld [vmem:[%s4292_s17 + $0x3a8] sm:$0xff]  ;;  %v2847_v53 = vld [vmem:[%s4292_s17 + $0x350] sm:$0xff]  ;;  %v2844_v24 = vld [vmem:[%s4292_s17 + $0x338] sm:$0xff] }
0x1724   :  { %2800 = vmatmul.msk.f32.vlgmr.msrb.gmra.mxu3 %vm756_vm13, %v2133_v54  ;;  %v2916_v57 = vunpack.i.h.bf16 %v2914_v56  ;;  %v2915_v58 = vunpack.i.l.bf16 %v2914_v56  ;;  %2414 = vmatpush.msra.mxu2 %v2858_v38  ;;  %v2848_v54 = vld [vmem:[%s4292_s17 + $0x358] sm:$0xff]  ;;  %v2841_v56 = vld [vmem:[%s4292_s17 + $0x320] sm:$0xff]  ;;  %v2570_v38 = vld [vmem:[#allocation8 + $0x3e8] sm:$0xff] }
0x1725   :  { %v2014_v30 = vpop.f32.mrf.mxu3  ;;  %2398 = vmatpush.msra.mxu1 %v2841_v56 }
0x1726   :  { %2229 = vmatpush.msra.mxu3 %v2915_v58  ;;  %2415 = vmatpush.msra.mxu2 %v2854_v42  ;;  %v2843_v58 = vld [vmem:[%s4292_s17 + $0x330] sm:$0xff]  ;;  %v2521_v42 = vld [vmem:[#allocation8 + $0x260] sm:$0xff] }
0x1728   :  { %2230 = vmatpush.msra.mxu3 %v2916_v57  ;;  %2416 = vmatpush.msra.mxu2 %v2850_v48  ;;  %v2842_v57 = vld [vmem:[%s4292_s17 + $0x328] sm:$0xff] }
0x172a   :  { %2432 = vmatpush.msrb.mxu3 %v2867_v55  ;;  %2417 = vmatpush.msra.mxu2 %v2846_v52  ;;  %v2805_v55 = vld [vmem:[%s4292_s17 + $0x200] sm:$0xff] }
0x172c   :  { %2804 = vmatmul.msk.f32.vlgmr.msra.gmra.mxu3 %vm756_vm13, %v2205_v59  ;;  %2418 = vmatpush.msra.mxu2 %v2842_v57  ;;  %v2837_v59 = vld [vmem:[%s4292_s17 + $0x300] sm:$0xff] }
0x172d   :  { %2433 = vmatpush.msrb.mxu3 %v2863_v31  ;;  %2399 = vmatpush.msra.mxu1 %v2837_v59  ;;  %v2524_v31 = vld [vmem:[#allocation8 + $0x278] sm:$0xff]  ;;  %v2935_v57 = vld [vmem:[%s4291_s16 + $0x1] ss:$0 sm:$0xff] }
0x172e   :  { %v2520_v59 = vld [vmem:[#allocation8 + $0x258] sm:$0xff] }
0x172f   :  { %2434 = vmatpush.msrb.mxu3 %v2859_v39  ;;  %2400 = vmatpush.msra.mxu1 %v2833_v60  ;;  %v2540_v39 = vld [vmem:[#allocation8 + $0x2f8] sm:$0xff]  ;;  %v2519_v60 = vld [vmem:[#allocation8 + $0x250] sm:$0xff] }
0x1731   :  { %2435 = vmatpush.msrb.mxu3 %v2855_v44  ;;  %v2569_v44 = vld [vmem:[#allocation8 + $0x3e0] sm:$0xff] }
0x1733   :  { %2436 = vmatpush.msrb.mxu3 %v2851_v49 }
0x1735   :  { %2437 = vmatpush.msrb.mxu3 %v2847_v53  ;;  %v2934_v53 = vld [vmem:[%s4290_s15 + $0x1] ss:$0 sm:$0xff] }
0x1737   :  { %2438 = vmatpush.msrb.mxu3 %v2843_v58 }
0x1739   :  { %2439 = vmatpush.msrb.mxu3 %v2839_v18  ;;  %v2555_v18 = vld [vmem:[#allocation8 + $0x370] sm:$0xff] }
0x1798   :  { %v2088_v62 = vpop.f32.mrf.mxu3 }
0x1799   :  { %2236 = vrot.lane.b32.xlu1 %v2088_v62, %s3191_s30  ;;  %v2835_v62 = vld [vmem:[%s4292_s17 + $0x2f0] sm:$0xff] }
0x179a   :  { %2440 = vmatpush.msrb.mxu3 %v2835_v62  ;;  %v2567_v62 = vld [vmem:[#allocation8 + $0x3d0] sm:$0xff] }
0x179c   :  { %2441 = vmatpush.msrb.mxu3 %v2831_v2  ;;  %v2566_v2 = vld [vmem:[#allocation8 + $0x3c8] sm:$0xff] }
0x179e   :  { %2442 = vmatpush.msrb.mxu3 %v2827_v6  ;;  %v2565_v6 = vld [vmem:[#allocation8 + $0x3c0] sm:$0xff] }
0x17a0   :  { %2443 = vmatpush.msrb.mxu3 %v2823_v11  ;;  %v2564_v11 = vld [vmem:[#allocation8 + $0x3b8] sm:$0xff] }
0x17a7   :  { %v2160_v63 = vpop.f32.mrf.mxu3 }
0x17a8   :  { %2240 = vrot.lane.b32.xlu0 %v2160_v63, %s4331_s19  ;;  %v2836_v63 = vld [vmem:[%s4292_s17 + $0x2f8] sm:$0xff]  ;;  %s3194_s19 = smov [#allocation10]  }
0x17a9   :  { %s2712_s3 = sshll.u32 %s3194_s19, 4  ;;  %s2713_s3 = int_to_ptr.vmem [resolvable:$true] %s2712_s3 }
0x17af   :  { %v2232_v0 = vpop.f32.mrf.mxu3 }
0x17b0   :  { %2244 = vrot.lane.b32.xlu1 %v2232_v0, %s3190_s2  ;;  %v2829_v0 = vld [vmem:[%s4292_s17 + $0x2c0] sm:$0xff] }
0x17b1   :  { %2401 = vmatpush.msra.mxu1 %v2829_v0  ;;  %v2537_v0 = vld [vmem:[#allocation8 + $0x2e0] sm:$0xff] }
0x17b3   :  { %2402 = vmatpush.msra.mxu1 %v2825_v4  ;;  %v2536_v4 = vld [vmem:[#allocation8 + $0x2d8] sm:$0xff] }
0x17b5   :  { %2403 = vmatpush.msra.mxu1 %v2821_v9  ;;  %v2535_v9 = vld [vmem:[#allocation8 + $0x2d0] sm:$0xff] }
0x17b7   :  { %2404 = vmatpush.msra.mxu1 %v2817_v13  ;;  %v2534_v13 = vld [vmem:[#allocation8 + $0x2c8] sm:$0xff] }
0x180b   :  { %v2237_v14 = vpop.permute.xlu1 %2236 }
0x180c   :  { %v2247_v17 = vsel %vm344_vm5, %v2014_v30, %v2237_v14  ;;  %v2838_v30 = vld [vmem:[%s4292_s17 + $0x308] sm:$0xff] }
0x180d   :  { %2419 = vmatpush.msra.mxu2 %v2838_v30  ;;  %v2818_v14 = vld [vmem:[%s4292_s17 + $0x268] sm:$0xff]  ;;  %v2539_v30 = vld [vmem:[#allocation8 + $0x2f0] sm:$0xff] }
0x180f   :  { %2420 = vmatpush.msra.mxu2 %v2834_v61  ;;  %v2554_v61 = vld [vmem:[#allocation8 + $0x368] sm:$0xff] }
0x1811   :  { %2421 = vmatpush.msra.mxu2 %v2830_v1  ;;  %v2553_v1 = vld [vmem:[#allocation8 + $0x360] sm:$0xff] }
0x1813   :  { %2422 = vmatpush.msra.mxu2 %v2826_v5  ;;  %v2552_v5 = vld [vmem:[#allocation8 + $0x358] sm:$0xff] }
0x1815   :  { %2423 = vmatpush.msra.mxu2 %v2822_v10  ;;  %v2551_v10 = vld [vmem:[#allocation8 + $0x350] sm:$0xff] }
0x1817   :  { %2424 = vmatpush.msra.mxu2 %v2818_v14  ;;  %v2550_v14 = vld [vmem:[#allocation8 + $0x348] sm:$0xff] }
0x181a   :  { %v2241_v15 = vpop.permute.xlu0 %2240 }
0x181b   :  { %v2248_v20 = vsel %vm615_vm8, %v2247_v17, %v2241_v15  ;;  %v2819_v15 = vld [vmem:[%s4292_s17 + $0x270] sm:$0xff]  ;;  %v2820_v17 = vld [vmem:[%s4292_s17 + $0x278] sm:$0xff] }
0x181c   :  { %2444 = vmatpush.msrb.mxu3 %v2819_v15  ;;  %v2563_v15 = vld [vmem:[#allocation8 + $0x3b0] sm:$0xff] }
0x1822   :  { %v2245_v21 = vpop.permute.xlu1 %2244 }
0x1823   :  { %v2249_v22 = vsel %vm617_vm9, %v2248_v20, %v2245_v21  ;;  %v2813_v20 = vld [vmem:[%s4292_s17 + $0x240] sm:$0xff]  ;;  %v2814_v21 = vld [vmem:[%s4292_s17 + $0x248] sm:$0xff] }
0x1824   :  { %2285 = vmatmul.f32.vlgmr.msrb.gmra.mxu0 %v2249_v22  ;;  %v2815_v22 = vld [vmem:[%s4292_s17 + $0x250] sm:$0xff]  ;;  %2405 = vmatpush.msra.mxu1 %v2813_v20  ;;  %v2533_v20 = vld [vmem:[#allocation8 + $0x2c0] sm:$0xff] }
0x1825   :  { %2425 = vmatpush.msra.mxu2 %v2814_v21  ;;  %2445 = vmatpush.msrb.mxu3 %v2815_v22  ;;  %v2549_v21 = vld [vmem:[#allocation8 + $0x340] sm:$0xff]  ;;  %v2562_v22 = vld [vmem:[#allocation8 + $0x3a8] sm:$0xff] }
0x1827   :  { %2446 = vmatpush.msrb.mxu3 %v2811_v27  ;;  %v2561_v27 = vld [vmem:[#allocation8 + $0x3a0] sm:$0xff] }
0x1829   :  { %2447 = vmatpush.msrb.mxu3 %v2807_v28  ;;  %v2560_v28 = vld [vmem:[#allocation8 + $0x398] sm:$0xff] }
0x18a1   :  { %v2286_v23 = vpop.f32.mrf.mxu0 }
0x18a2   :  { %v2287_v25 = vadd.f32 %v2933_v8, %v2286_v23  ;;  %v2816_v8 = vld [vmem:[%s4292_s17 + $0x258] sm:$0xff]  ;;  %v2809_v23 = vld [vmem:[%s4292_s17 + $0x220] sm:$0xff] }
0x18a3   :  { %2406 = vmatpush.msra.mxu1 %v2809_v23  ;;  %v2532_v23 = vld [vmem:[#allocation8 + $0x2b8] sm:$0xff] }
0x18a4   :  { %v4000_v26 = vadd.f32 %v2287_v25, %v3927_v16  ;;  %v2868_v16 = vld [vmem:[%s4292_s17 + $0x3f8] sm:$0xff]  ;;  %v2810_v25 = vld [vmem:[%s4292_s17 + $0x228] sm:$0xff] }
0x18a5   :  { %2452 = vmatpush.msra.mxu0 %v2868_v16  ;;  %v2806_v16 = vld [vmem:[%s4292_s17 + $0x208] sm:$0xff]  ;;  %2426 = vmatpush.msra.mxu2 %v2810_v25  ;;  %v2548_v25 = vld [vmem:[#allocation8 + $0x338] sm:$0xff] }
0x18a6   :  { %2292 = vadd.xlane.f32.xlu0 %v4000_v26  ;;  %2407 = vmatpush.msra.mxu1 %v2805_v55  ;;  %v2531_v55 = vld [vmem:[#allocation8 + $0x2b0] sm:$0xff] }
0x18a7   :  { %2453 = vmatpush.msra.mxu0 %v2864_v32  ;;  %2427 = vmatpush.msra.mxu2 %v2806_v16  ;;  %v2572_v32 = vld [vmem:[#allocation8 + $0x3f8] sm:$0xff]  ;;  %v2547_v16 = vld [vmem:[#allocation8 + $0x330] sm:$0xff] }
0x18a8   :  { %2575 = vmatpush.msrb.mxu1 %v2524_v31  ;;  %v2530_v31 = vld [vmem:[#allocation8 + $0x2a8] sm:$0xff] }
0x18a9   :  { %2454 = vmatpush.msra.mxu0 %v2860_v40  ;;  %v2556_v40 = vld [vmem:[#allocation8 + $0x378] sm:$0xff]  ;;  %2595 = vmatpush.msrb.mxu2 %v2540_v39  ;;  %v2509_v39 = vld [vmem:[#allocation8 + $0x200] sm:$0xff] }
0x18aa   :  { %2615 = vmatpush.msra.mxu3 %v2556_v40  ;;  %v2528_v40 = vld [vmem:[#allocation8 + $0x298] sm:$0xff] }
0x18ab   :  { %2455 = vmatpush.msra.mxu0 %v2856_v45  ;;  %2596 = vmatpush.msrb.mxu2 %v2539_v30  ;;  %v3037_v30 = vld [vmem:[%s4323_s25 + $0x68] sm:$0xff] }
0x18ac   :  { %2616 = vmatpush.msra.mxu3 %v2555_v18 }
0x18ad   :  { %2456 = vmatpush.msra.mxu0 %v2852_v50 }
0x18ae   :  { %2617 = vmatpush.msra.mxu3 %v2554_v61 }
0x18af   :  { %2457 = vmatpush.msra.mxu0 %v2848_v54 }
0x18b0   :  { %2618 = vmatpush.msra.mxu3 %v2553_v1 }
0x18b1   :  { %2458 = vmatpush.msra.mxu0 %v2844_v24 }
0x18b2   :  { %2619 = vmatpush.msra.mxu3 %v2552_v5 }
0x18b3   :  { %2459 = vmatpush.msra.mxu0 %v2840_v19  ;;  %v2568_v19 = vld [vmem:[#allocation8 + $0x3d8] sm:$0xff] }
0x18b4   :  { %2620 = vmatpush.msra.mxu3 %v2551_v10 }
0x18b5   :  { %2460 = vmatpush.msra.mxu0 %v2836_v63  ;;  %v2518_v63 = vld [vmem:[#allocation8 + $0x248] sm:$0xff] }
0x18b6   :  { %2621 = vmatpush.msra.mxu3 %v2550_v14 }
0x18b7   :  { %2461 = vmatpush.msra.mxu0 %v2832_v3  ;;  %v2517_v3 = vld [vmem:[#allocation8 + $0x240] sm:$0xff] }
0x18b8   :  { %2622 = vmatpush.msra.mxu3 %v2549_v21  ;;  %v3040_v21 = vld [vmem:[%s4323_s25 + $0x50] sm:$0xff] }
0x18b9   :  { %2462 = vmatpush.msra.mxu0 %v2828_v7  ;;  %v2516_v7 = vld [vmem:[#allocation8 + $0x238] sm:$0xff] }
0x18ba   :  { %2623 = vmatpush.msra.mxu3 %v2548_v25 }
0x18bb   :  { %2463 = vmatpush.msra.mxu0 %v2824_v12  ;;  %v2515_v12 = vld [vmem:[#allocation8 + $0x230] sm:$0xff] }
0x18bc   :  { %2624 = vmatpush.msra.mxu3 %v2547_v16 }
0x18bd   :  { %2464 = vmatpush.msra.mxu0 %v2820_v17  ;;  %v2514_v17 = vld [vmem:[#allocation8 + $0x228] sm:$0xff] }
0x18bf   :  { %2465 = vmatpush.msra.mxu0 %v2816_v8  ;;  %v2513_v8 = vld [vmem:[#allocation8 + $0x220] sm:$0xff] }
0x18c1   :  { %2466 = vmatpush.msra.mxu0 %v2812_v43  ;;  %v2512_v43 = vld [vmem:[#allocation8 + $0x218] sm:$0xff] }
0x18c3   :  { %2467 = vmatpush.msra.mxu0 %v2808_v29  ;;  %v2511_v29 = vld [vmem:[#allocation8 + $0x210] sm:$0xff] }
0x18c5   :  { %2635 = vmatpush.msrb.mxu0 %v2572_v32  ;;  %v2546_v32 = vld [vmem:[#allocation8 + $0x328] sm:$0xff] }
0x18c6   :  { %2625 = vmatpush.msra.mxu3 %v2546_v32 }
0x1919   :  { %v2293_v33 = vpop.xlane.xlu0 %2292 }
0x191a   :  { %v2294_v34 = vmul.f32 %v2293_v33, %v3398_v46  ;;  %v2523_v33 = vld [vmem:[#allocation8 + $0x270] sm:$0xff] }
0x191b   :  { %2576 = vmatpush.msrb.mxu1 %v2523_v33  ;;  %v2559_v33 = vld [vmem:[#allocation8 + $0x390] sm:$0xff] }
0x191c   :  { %v4029_v35 = vsub.f32 %v4000_v26, %v2294_v34  ;;  %v2571_v34 = vld [vmem:[#allocation8 + $0x3f0] sm:$0xff] }
0x191d   :  { %2636 = vmatpush.msrb.mxu0 %v2571_v34  ;;  %v2510_v34 = vld [vmem:[#allocation8 + $0x208] sm:$0xff] }
0x191e   :  { %v2296_v36 = vmul.f32 %v4029_v35, %v4029_v35 }
0x191f   :  { %2637 = vmatpush.msrb.mxu0 %v2570_v38  ;;  %v2558_v38 = vld [vmem:[#allocation8 + $0x388] sm:$0xff] }
0x1920   :  { %2297 = vadd.xlane.f32.xlu1 %v2296_v36  ;;  %v2522_v36 = vld [vmem:[#allocation8 + $0x268] sm:$0xff] }
0x1921   :  { %2577 = vmatpush.msrb.mxu1 %v2522_v36  ;;  %2638 = vmatpush.msrb.mxu0 %v2569_v44  ;;  %v2529_v36 = vld [vmem:[#allocation8 + $0x2a0] sm:$0xff]  ;;  %v2527_v44 = vld [vmem:[#allocation8 + $0x290] sm:$0xff] }
0x1923   :  { %2578 = vmatpush.msrb.mxu1 %v2521_v42  ;;  %2639 = vmatpush.msrb.mxu0 %v2568_v19  ;;  %v2557_v42 = vld [vmem:[#allocation8 + $0x380] sm:$0xff] }
0x1925   :  { %2579 = vmatpush.msrb.mxu1 %v2520_v59  ;;  %2640 = vmatpush.msrb.mxu0 %v2567_v62 }
0x1927   :  { %2580 = vmatpush.msrb.mxu1 %v2519_v60  ;;  %2641 = vmatpush.msrb.mxu0 %v2566_v2 }
0x1929   :  { %2581 = vmatpush.msrb.mxu1 %v2518_v63  ;;  %2642 = vmatpush.msrb.mxu0 %v2565_v6 }
0x192b   :  { %2582 = vmatpush.msrb.mxu1 %v2517_v3  ;;  %2643 = vmatpush.msrb.mxu0 %v2564_v11  ;;  %v3039_v11 = vld [vmem:[%s4323_s25 + $0x58] sm:$0xff] }
0x192d   :  { %2583 = vmatpush.msrb.mxu1 %v2516_v7  ;;  %2644 = vmatpush.msrb.mxu0 %v2563_v15 }
0x192f   :  { %2584 = vmatpush.msrb.mxu1 %v2515_v12  ;;  %2645 = vmatpush.msrb.mxu0 %v2562_v22 }
0x1931   :  { %2585 = vmatpush.msrb.mxu1 %v2514_v17  ;;  %2646 = vmatpush.msrb.mxu0 %v2561_v27  ;;  %v3041_v27 = vld [vmem:[%s4323_s25 + $0x48] sm:$0xff] }
0x1933   :  { %2586 = vmatpush.msrb.mxu1 %v2513_v8  ;;  %2647 = vmatpush.msrb.mxu0 %v2560_v28 }
0x1935   :  { %2587 = vmatpush.msrb.mxu1 %v2512_v43  ;;  %2648 = vmatpush.msrb.mxu0 %v2559_v33  ;;  %v3042_v33 = vld [vmem:[%s4323_s25 + $0x40] sm:$0xff] }
0x1937   :  { %2588 = vmatpush.msrb.mxu1 %v2511_v29  ;;  %2649 = vmatpush.msrb.mxu0 %v2558_v38 }
0x1939   :  { %2589 = vmatpush.msrb.mxu1 %v2510_v34  ;;  %2650 = vmatpush.msrb.mxu0 %v2557_v42 }
0x193b   :  { %2590 = vmatpush.msrb.mxu1 %v2509_v39 }
0x1993   :  { %v2298_v37 = vpop.xlane.xlu1 %2297 }
0x1994   :  { %v2299_v41 = vmul.f32 %v2298_v37, %v3398_v46  ;;  %v2545_v37 = vld [vmem:[#allocation8 + $0x320] sm:$0xff] }
0x1995   :  { %2626 = vmatpush.msra.mxu3 %v2545_v37 }
0x1996   :  { %v2300_v45 = vadd.f32 1e-05, %v2299_v41  ;;  %v2544_v41 = vld [vmem:[#allocation8 + $0x318] sm:$0xff] }
0x1997   :  { %2627 = vmatpush.msra.mxu3 %v2544_v41 }
0x1998   :  { %3023 = vrsqrt.f32 %v2300_v45  ;;  %vm2307_vm8 = vweird.f32 %v2300_v45 }
0x199e   :  { %v3024_v47 = vpop.eup %3023 }
0x199f   :  { %v2302_v48 = vmul.f32 %v3024_v47, %v2300_v45  ;;  %vm2308_vm5 = vweird.f32 %v3024_v47  ;;  %v2543_v45 = vld [vmem:[#allocation8 + $0x310] sm:$0xff] }
0x19a0   :  { %vm2309_vm9 = vmor %vm2307_vm8, %vm2308_vm5  ;;  %2628 = vmatpush.msra.mxu3 %v2543_v45 }
0x19a1   :  { %v2303_v49 = vmul.f32 %v3024_v47, %v2302_v48  ;;  %v2869_v48 = vld [vmem:[%s4293_s18 + $0x1] ss:$2 sm:$0xf] }
0x19a2   :  { %v2385_v19 = vperm.slane %v2869_v48, 1 }
0x19a3   :  { %v2304_v50 = vmul.f32 0.5, %v2303_v49  ;;  %v2542_v49 = vld [vmem:[#allocation8 + $0x308] sm:$0xff] }
0x19a4   :  { %2629 = vmatpush.msra.mxu3 %v2542_v49  ;;  %v3046_v49 = vld [vmem:[%s4323_s25 + $0x20] sm:$0xff] }
0x19a5   :  { %v2305_v51 = vsub.f32 1.5, %v2304_v50  ;;  %v3035_v50 = vld [vmem:[%s4323_s25 + $0x78] sm:$0xff] }
0x19a7   :  { %v2306_v52 = vmul.f32 %v3024_v47, %v2305_v51  ;;  %v2525_v51 = vld [vmem:[#allocation8 + $0x280] sm:$0xff] }
0x19a9   :  { %v2310_v54 = vsel %vm2309_vm9, %v3024_v47, %v2306_v52  ;;  %v2526_v47 = vld [vmem:[#allocation8 + $0x288] sm:$0xff]  ;;  %v2541_v52 = vld [vmem:[#allocation8 + $0x300] sm:$0xff] }
0x19aa   :  { %v2311_v56 = vmul.f32 %v2310_v54, %v4029_v35  ;;  %v2538_v35 = vld [vmem:[#allocation8 + $0x2e8] sm:$0xff]  ;;  %v2387_v54 = vperm.slane %v2869_v48, 3  ;;  %2630 = vmatpush.msra.mxu3 %v2541_v52 }
0x19ab   :  { %2597 = vmatpush.msrb.mxu2 %v2538_v35  ;;  %v2386_v35 = vperm.slane %v2869_v48, 2  ;;  %v3049_v52 = vld [vmem:[%s4323_s25 + $0x8] sm:$0xff] }
0x19ac   :  { %v2313_v58 = vmul.f32 %v2934_v53, %v2311_v56  ;;  %v2384_v53 = vperm.slane %v2869_v48, 0  ;;  %v3036_v56 = vld [vmem:[%s4323_s25 + $0x70] sm:$0xff]  ;;  %v3045_v48 = vld [vmem:[%s4323_s25 + $0x28] sm:$0xff] }
0x19ad   :  { %2598 = vmatpush.msrb.mxu2 %v2537_v0  ;;  %v3038_v0 = vld [vmem:[%s4323_s25 + $0x60] sm:$0xff] }
0x19ae   :  { %v2315_v24 = vadd.f32 %v2935_v57, %v2313_v58 }
0x19af   :  { %2599 = vmatpush.msrb.mxu2 %v2536_v4 }
0x19b0   :  { %2408 = vmatmul.f32.vlgmr.msra.gmra.mxu1 %v2315_v24  ;;  %2428 = vmatmul.f32.vlgmr.msra.gmra.mxu2 %v2315_v24 }
0x19b1   :  { %2448 = vmatmul.f32.vlgmr.msrb.gmra.mxu3 %v2315_v24  ;;  %2468 = vmatmul.f32.vlgmr.msra.gmra.mxu0 %v2315_v24 }
0x19b2   :  { %2600 = vmatpush.msrb.mxu2 %v2535_v9  ;;  %2686 = vmatpush.xpose.msra.mxu1 %v3035_v50  ;;  %v3047_v50 = vld [vmem:[%s4323_s25 + $0x18] sm:$0xff] }
0x19b4   :  { %2601 = vmatpush.msrb.mxu2 %v2534_v13 }
0x19b6   :  { %2602 = vmatpush.msrb.mxu2 %v2533_v20  ;;  %2687 = vmatpush.xpose.msra.mxu1 %v3036_v56 }
0x19b8   :  { %2603 = vmatpush.msrb.mxu2 %v2532_v23 }
0x19ba   :  { %2604 = vmatpush.msrb.mxu2 %v2531_v55  ;;  %2688 = vmatpush.xpose.msra.mxu1 %v3037_v30 }
0x19bc   :  { %2605 = vmatpush.msrb.mxu2 %v2530_v31 }
0x19be   :  { %2606 = vmatpush.msrb.mxu2 %v2529_v36  ;;  %2689 = vmatpush.xpose.msra.mxu1 %v3038_v0 }
0x19c0   :  { %2607 = vmatpush.msrb.mxu2 %v2528_v40  ;;  %v3043_v40 = vld [vmem:[%s4323_s25 + $0x38] sm:$0xff] }
0x19c2   :  { %2608 = vmatpush.msrb.mxu2 %v2527_v44  ;;  %2690 = vmatpush.xpose.msra.mxu1 %v3039_v11 }
0x19c4   :  { %2609 = vmatpush.msrb.mxu2 %v2526_v47  ;;  %v3044_v47 = vld [vmem:[%s4323_s25 + $0x30] sm:$0xff] }
0x19c6   :  { %2610 = vmatpush.msrb.mxu2 %v2525_v51  ;;  %2691 = vmatpush.xpose.msra.mxu1 %v3040_v21  ;;  %v3048_v51 = vld [vmem:[%s4323_s25 + $0x10] sm:$0xff] }
0x19ca   :  { %2692 = vmatpush.xpose.msra.mxu1 %v3041_v27 }
0x19ce   :  { %2693 = vmatpush.xpose.msra.mxu1 %v3042_v33 }
0x19d2   :  { %2694 = vmatpush.xpose.msra.mxu1 %v3043_v40 }
0x19d6   :  { %2695 = vmatpush.xpose.msra.mxu1 %v3044_v47 }
0x19da   :  { %2696 = vmatpush.xpose.msra.mxu1 %v3045_v48 }
0x19de   :  { %2697 = vmatpush.xpose.msra.mxu1 %v3046_v49 }
0x19e2   :  { %2698 = vmatpush.xpose.msra.mxu1 %v3047_v50 }
0x19e6   :  { %2699 = vmatpush.xpose.msra.mxu1 %v3048_v51 }
0x19ea   :  { %2700 = vmatpush.xpose.msra.mxu1 %v3049_v52 }
0x1a2d   :  { %v2409_v57 = vpop.f32.mrf.mxu1 }
0x1a2e   :  { %v2410_v58 = vadd.f32 %v2409_v57, %v2384_v53  ;;  %v2469_v24 = vpop.f32.mrf.mxu0  ;;  %v3050_v53 = vld [vmem:[%s4323_s25] sm:$0xff] }
0x1a2f   :  { %v2470_v59 = vadd.f32 %v2469_v24, %v2387_v54  ;;  %2701 = vmatpush.xpose.msra.mxu1 %v3050_v53  ;;  %v2936_v54 = vld [vmem:[%s4295_s20 + $0x1] ss:$0 sm:$0xff] }
0x1a30   :  { %v2476_v18 = vmul.f32 0.044715, %v2410_v58  ;;  %v2472_v16 = vmul.f32 0.5, %v2410_v58 }
0x1a31   :  { %v2479_v60 = vmul.f32 0.044715, %v2470_v59  ;;  %v2475_v29 = vmul.f32 0.5, %v2470_v59 }
0x1a32   :  { %v2480_v61 = vmul.f32 %v2476_v18, %v2410_v58 }
0x1a33   :  { %v2483_v62 = vmul.f32 %v2479_v60, %v2470_v59  ;;  %v2429_v63 = vpop.f32.mrf.mxu2 }
0x1a34   :  { %v2484_v1 = vmul.f32 %v2480_v61, %v2410_v58  ;;  %v2430_v2 = vadd.f32 %v2429_v63, %v2385_v19  ;;  %v2449_v3 = vpop.f32.mrf.mxu3 }
0x1a35   :  { %v2487_v4 = vmul.f32 %v2483_v62, %v2470_v59  ;;  %v2450_v5 = vadd.f32 %v2449_v3, %v2386_v35 }
0x1a36   :  { %v2477_v6 = vmul.f32 0.044715, %v2430_v2  ;;  %v2488_v7 = vadd.f32 %v2484_v1, %v2410_v58  ;;  %v2473_v38 = vmul.f32 0.5, %v2430_v2 }
0x1a37   :  { %v2478_v9 = vmul.f32 0.044715, %v2450_v5  ;;  %v2491_v10 = vadd.f32 %v2487_v4, %v2470_v59  ;;  %v2474_v41 = vmul.f32 0.5, %v2450_v5 }
0x1a38   :  { %v2481_v12 = vmul.f32 %v2477_v6, %v2430_v2  ;;  %v2492_v13 = vmul.f32 0.7978846, %v2488_v7 }
0x1a39   :  { %v2482_v14 = vmul.f32 %v2478_v9, %v2450_v5  ;;  %v2495_v15 = vmul.f32 0.7978846, %v2491_v10 }
0x1a3a   :  { %v2485_v17 = vmul.f32 %v2481_v12, %v2430_v2  ;;  %3025 = vtanh.f32 %v2492_v13 }
0x1a3b   :  { %v2486_v20 = vmul.f32 %v2482_v14, %v2450_v5  ;;  %3027 = vtanh.f32 %v2495_v15 }
0x1a3c   :  { %v2489_v22 = vadd.f32 %v2485_v17, %v2430_v2 }
0x1a3d   :  { %v2490_v8 = vadd.f32 %v2486_v20, %v2450_v5 }
0x1a3e   :  { %v2493_v23 = vmul.f32 0.7978846, %v2489_v22 }
0x1a3f   :  { %v2494_v25 = vmul.f32 0.7978846, %v2490_v8 }
0x1a40   :  { %v3026_v43 = vpop.eup %3025  ;;  %3029 = vtanh.f32 %v2493_v23 }
0x1a41   :  { %v3028_v55 = vpop.eup %3027  ;;  %v2500_v28 = vadd.f32 1.0, %v3026_v43  ;;  %3031 = vtanh.f32 %v2494_v25 }
0x1a42   :  { %v2503_v31 = vadd.f32 1.0, %v3028_v55 }
0x1a43   :  { %v2504_v32 = vmul.f32 %v2500_v28, %v2472_v16 }
0x1a44   :  { %v2507_v34 = vmul.f32 %v2503_v31, %v2475_v29 }
0x1a45   :  { %2591 = vmatmul.f32.vlgmr.msrb.gmra.mxu1 %v2504_v32 }
0x1a46   :  { %v3030_v36 = vpop.eup %3029  ;;  %2651 = vmatmul.f32.vlgmr.msrb.gmra.mxu0 %v2507_v34 }
0x1a47   :  { %v3032_v37 = vpop.eup %3031  ;;  %v2501_v39 = vadd.f32 1.0, %v3030_v36 }
0x1a48   :  { %v2502_v42 = vadd.f32 1.0, %v3032_v37 }
0x1a49   :  { %v2505_v44 = vmul.f32 %v2501_v39, %v2473_v38 }
0x1a4a   :  { %v2506_v45 = vmul.f32 %v2502_v42, %v2474_v41 }
0x1a4b   :  { %2611 = vmatmul.f32.vlgmr.msrb.gmra.mxu2 %v2505_v44 }
0x1a4c   :  { %2631 = vmatmul.f32.vlgmr.msra.gmra.mxu3 %v2506_v45 }
0x1ac2   :  { %v2592_v56 = vpop.f32.mrf.mxu1 }
0x1ac3   :  { %v2593_v57 = vadd.f32 %v2936_v54, %v2592_v56  ;;  %v2652_v18 = vpop.f32.mrf.mxu0 }
0x1ace   :  { %v2612_v58 = vpop.f32.mrf.mxu2 }
0x1acf   :  { %v2613_v24 = vadd.f32 %v2612_v58, %v2593_v57  ;;  %v2632_v59 = vpop.f32.mrf.mxu3 }
0x1ad1   :  { %v2633_v30 = vadd.f32 %v2632_v59, %v2613_v24 }
0x1ad3   :  { %v2653_v19 = vadd.f32 %v2652_v18, %v2633_v30 }
0x1ad5   :  { %v2655_v60 = vadd.f32 %v2653_v19, %v4000_v26  ;;  %v2937_v26 = vld [vmem:[%s4298_s23] ss:$0 sm:$0xff] }
0x1ad7   :  { %2658 = vadd.xlane.f32.xlu2 %v2655_v60 }
0x1b4a   :  { %v2659_v35 = vpop.xlane.xlu2 %2658 }
0x1b4b   :  { %v2660_v61 = vmul.f32 %v2659_v35, %v3398_v46 }
0x1b4d   :  { %v2661_v62 = vsub.f32 %v2655_v60, %v2660_v61 }
0x1b4f   :  { %v2662_v63 = vmul.f32 %v2661_v62, %v2661_v62 }
0x1b51   :  { %2663 = vadd.xlane.f32.xlu0 %v2662_v63 }
0x1bc4   :  { %v2664_v0 = vpop.xlane.xlu0 %2663 }
0x1bc5   :  { %v2665_v1 = vmul.f32 %v2664_v0, %v3398_v46  ;;  %v2938_v46 = vld [vmem:[%s4299_s24] ss:$0 sm:$0xff] }
0x1bc7   :  { %v2666_v2 = vadd.f32 1e-05, %v2665_v1 }
0x1bc9   :  { %3033 = vrsqrt.f32 %v2666_v2  ;;  %vm2673_vm11 = vweird.f32 %v2666_v2 }
0x1bcf   :  { %v3034_v3 = vpop.eup %3033 }
0x1bd0   :  { %v2668_v4 = vmul.f32 %v3034_v3, %v2666_v2  ;;  %vm2674_vm10 = vweird.f32 %v3034_v3 }
0x1bd1   :  { %vm2675_vm12 = vmor %vm2673_vm11, %vm2674_vm10 }
0x1bd2   :  { %v2669_v5 = vmul.f32 %v3034_v3, %v2668_v4 }
0x1bd4   :  { %v2670_v6 = vmul.f32 0.5, %v2669_v5 }
0x1bd6   :  { %v2671_v7 = vsub.f32 1.5, %v2670_v6 }
0x1bd8   :  { %v2672_v9 = vmul.f32 %v3034_v3, %v2671_v7 }
0x1bda   :  { %v2676_v10 = vsel %vm2675_vm12, %v3034_v3, %v2672_v9 }
0x1bdb   :  { %v2677_v11 = vmul.f32 %v2676_v10, %v2661_v62 }
0x1bdd   :  { %v2681_v12 = vmul.f32 %v2937_v26, %v2677_v11 }
0x1bdf   :  { %v2685_v13 = vadd.f32 %v2938_v46, %v2681_v12 }
0x1be1   :  { %2702 = vmatmul.f32.vlgmr.msra.gmra.mxu1 %v2685_v13 }
0x1c5e   :  { %v2703_v14 = vpop.f32.mrf.mxu1 }
0x1c5f   :  { %2706 = vst [vmem:[#allocation10] sm:$0xff] %v2703_v14 }
0x1c60   :  { %2717 = dma.vmem_to_hbm [thread:$0]  %s2713_s3, 128, %s2715_s14, [#allocation4]  }
0x1c61   :  { %3177 = dma.done.wait [#allocation4], 128  }
0x1c62   :  { %3178 = vsyncadd [#allocation4], 4294967168 }
0x1c63   :  { %2722 = vsyncpa [#allocation3], 1 }
0x1c64   :  { %2723 = vsyncpa [#allocation6], 1 }
0x1c65   :  { %2724 = vsyncpa [#allocation9], 1 }
0x1c66   :  { %2725 = vsyncpa [#allocation4], 1 }

</bundles_post_ra>
